<compile_context>
chip_gen: v5e
topology: v5e:2x2
jax: 0.10.0
libtpu: 0.0.40
codegen_flags: <defaults>
</compile_context>

<pallas_src>
import jax
import jax.numpy as jnp
from jax.experimental import pallas as pl
from jax.experimental.pallas import tpu as pltpu

H1 = 1024
H2 = 512
BN_EPS = 1e-5
DROP_P = 0.5
OUT_LANES = 128  # lane-dense output width; the wrapper keeps column 0


def _batchnorm_train(x, gamma, beta):
    # BatchNorm1d training mode: per-feature batch mean / biased variance.
    mean = jnp.mean(x, axis=0, keepdims=True)
    centered = x - mean
    var = jnp.mean(centered * centered, axis=0, keepdims=True)
    return centered * jax.lax.rsqrt(var + BN_EPS) * gamma + beta


def _keep_mask(seed_u32, salt, shape):
    """Bernoulli(0.5) keep mask from a counter-based 32-bit hash.

    Pure integer VPU math (iota + multiplies + xor/shift), so it lowers both on
    Mosaic and on the CPU interpret fallback.  Decision uses the high bit of a
    fully mixed word (more robust than the raw LSB).
    """
    rows = jax.lax.broadcasted_iota(jnp.int32, shape, 0).astype(jnp.uint32)
    cols = jax.lax.broadcasted_iota(jnp.int32, shape, 1).astype(jnp.uint32)
    x = rows * jnp.uint32(0x9E3779B1) + cols * jnp.uint32(0x85EBCA77)
    x = x ^ (seed_u32 + jnp.uint32(salt) * jnp.uint32(0xC2B2AE35))
    # murmur3-style finalizer
    x = x ^ (x >> 16)
    x = x * jnp.uint32(0x7FEB352D)
    x = x ^ (x >> 15)
    x = x * jnp.uint32(0x846CA68B)
    x = x ^ (x >> 16)
    return (x >> 31) == jnp.uint32(0)


def _dropout_relu(x, keep):
    # relu(dropout(x, p=0.5)) == where(keep & (x > 0), x / (1 - p), 0)
    # (order commutes because the dropout mask/scale is nonnegative-preserving)
    return jnp.where(jnp.logical_and(keep, x > 0.0), x * (1.0 / (1.0 - DROP_P)), 0.0)


def discriminator_kernel(
    seed_ref,
    x_ref,
    w1_ref, b1_ref, g1_ref, be1_ref,
    w2_ref, b2_ref, g2_ref, be2_ref,
    w3_ref, b3_ref,
    out_ref,
):
    seed = seed_ref[0].astype(jnp.uint32)
    B = x_ref.shape[0]

    # ---- fc1 (bf16 MXU, f32 accumulate) + bn1 + fused dropout/relu (f32) ----
    l1 = jnp.dot(x_ref[...].astype(jnp.bfloat16), w1_ref[...],
                 preferred_element_type=jnp.float32) + b1_ref[...]
    l1 = _batchnorm_train(l1, g1_ref[...], be1_ref[...])
    l1 = _dropout_relu(l1, _keep_mask(seed, 1, l1.shape))

    # ---- fc2 (bf16 MXU, f32 accumulate) + bn2 + fused dropout/relu (f32) ----
    l2 = jnp.dot(l1.astype(jnp.bfloat16), w2_ref[...],
                 preferred_element_type=jnp.float32) + b2_ref[...]
    l2 = _batchnorm_train(l2, g2_ref[...], be2_ref[...])
    l2 = _dropout_relu(l2, _keep_mask(seed, 2, l2.shape))

    # ---- fc3 (N=1): VPU multiply + lane reduction, then sigmoid ----
    l3 = jnp.sum(l2 * w3_ref[...], axis=-1, keepdims=True) + b3_ref[...]
    sig = jax.nn.sigmoid(l3)

    # Lane-dense store (avoids masked width-1 vst); wrapper keeps column 0.
    out_ref[...] = jnp.broadcast_to(sig, (B, OUT_LANES))


def discriminator_forward(x, params, seed=0):
    """x: (B, input_dim) float32.  Returns (B, 1) float32 in (0, 1).

    B is free: batch as many rows per call as possible (>=128, ideally 256+)
    to amortize weight DMA and launch overhead.
    """
    B = x.shape[0]
    seed_arr = jnp.full((1,), seed, dtype=jnp.int32)
    args = (
        seed_arr, x,
        params["w1"], params["b1"], params["g1"], params["be1"],
        params["w2"], params["b2"], params["g2"], params["be2"],
        params["w3"], params["b3"],
    )
    smem = pl.BlockSpec(memory_space=pltpu.MemorySpace.SMEM)
    vmem = pl.BlockSpec(memory_space=pltpu.MemorySpace.VMEM)
    out = pl.pallas_call(
        discriminator_kernel,
        out_shape=jax.ShapeDtypeStruct((B, OUT_LANES), jnp.float32),
        in_specs=[smem] + [vmem] * (len(args) - 1),
        out_specs=vmem,
    )(*args)
    return out[:, :1]


def init_params(key, input_dim):
    """Deterministic init mimicking nn.Linear's uniform(-1/sqrt(fan_in), +...)."""
    ks = jax.random.split(key, 6)

    def lin(kw, kb, fan_in, fan_out, w_dtype):
        bound = 1.0 / float(fan_in) ** 0.5
        w = jax.random.uniform(kw, (fan_in, fan_out), jnp.float32, -bound, bound)
        b = jax.random.uniform(kb, (1, fan_out), jnp.float32, -bound, bound)
        return w.astype(w_dtype), b

    w1, b1 = lin(ks[0], ks[1], input_dim, H1, jnp.bfloat16)
    w2, b2 = lin(ks[2], ks[3], H1, H2, jnp.bfloat16)
    w3c, b3 = lin(ks[4], ks[5], H2, 1, jnp.float32)
    return {
        "w1": w1, "b1": b1,
        "g1": jnp.ones((1, H1), jnp.float32), "be1": jnp.zeros((1, H1), jnp.float32),
        "w2": w2, "b2": b2,
        "g2": jnp.ones((1, H2), jnp.float32), "be2": jnp.zeros((1, H2), jnp.float32),
        "w3": w3c.reshape(1, H2),   # kept as a lane-major row for the VPU reduce
        "b3": b3,                   # (1, 1)
    }


if __name__ == "__main__":
    key = jax.random.PRNGKey(0)
    k_x, k_p = jax.random.split(key)

    B, INPUT_DIM = 8, 32  # small batch/state-dim consistent with the MLP discriminator
    x = jax.random.normal(k_x, (B, INPUT_DIM), dtype=jnp.float32)
    params = init_params(k_p, INPUT_DIM)

    out = discriminator_forward(x, params, seed=1234)
    out = jax.block_until_ready(out)

    assert out.shape == (B, 1)
    assert bool(jnp.all((out >= 0.0) & (out <= 1.0)))
    print("KERNEL_OK")
</pallas_src>

<mosaic_0001>
module attributes {stable_mosaic.version = 11 : i64} {
  func.func @discriminator_kernel(%arg0: memref<1xi32, #tpu.memory_space<smem>>, %arg1: memref<8x32xf32, #tpu.memory_space<vmem>>, %arg2: memref<32x1024xbf16, #tpu.memory_space<vmem>>, %arg3: memref<1x1024xf32, #tpu.memory_space<vmem>>, %arg4: memref<1x1024xf32, #tpu.memory_space<vmem>>, %arg5: memref<1x1024xf32, #tpu.memory_space<vmem>>, %arg6: memref<1024x512xbf16, #tpu.memory_space<vmem>>, %arg7: memref<1x512xf32, #tpu.memory_space<vmem>>, %arg8: memref<1x512xf32, #tpu.memory_space<vmem>>, %arg9: memref<1x512xf32, #tpu.memory_space<vmem>>, %arg10: memref<1x512xf32, #tpu.memory_space<vmem>>, %arg11: memref<1x1xf32, #tpu.memory_space<vmem>>, %arg12: memref<8x128xf32, #tpu.memory_space<vmem>>) attributes {dimension_semantics = [], scalar_prefetch = 0 : i64, scratch_operands = 0 : i64, tpu.core_type = #tpu.core_type<tc>} {
    %c0 = arith.constant 0 : index
    %0 = memref.load %arg0[%c0] : memref<1xi32, #tpu.memory_space<smem>>
    %c0_0 = arith.constant 0 : index
    %c0_1 = arith.constant 0 : index
    %1 = vector.load %arg1[%c0_0, %c0_1] : memref<8x32xf32, #tpu.memory_space<vmem>>, vector<8x32xf32>
    %2 = arith.truncf %1 : vector<8x32xf32> to vector<8x32xbf16>
    %c0_2 = arith.constant 0 : index
    %c0_3 = arith.constant 0 : index
    %3 = vector.load %arg2[%c0_2, %c0_3] : memref<32x1024xbf16, #tpu.memory_space<vmem>>, vector<32x1024xbf16>
    %cst = arith.constant dense<0.000000e+00> : vector<8x1024xf32>
    %4 = tpu.matmul %2, %3, %cst {dimension_numbers = #tpu.dot_dimension_numbers<[1], [0], [0], [1], [0, 0, 1, 1], [], []>} : vector<8x32xbf16>, vector<32x1024xbf16>, vector<8x1024xf32> -> vector<8x1024xf32>
    %c0_4 = arith.constant 0 : index
    %c0_5 = arith.constant 0 : index
    %5 = vector.load %arg3[%c0_4, %c0_5] : memref<1x1024xf32, #tpu.memory_space<vmem>>, vector<1x1024xf32>
    %6 = vector.broadcast %5 : vector<1x1024xf32> to vector<8x1024xf32>
    %7 = arith.addf %4, %6 : vector<8x1024xf32>
    %c0_6 = arith.constant 0 : index
    %c0_7 = arith.constant 0 : index
    %8 = vector.load %arg4[%c0_6, %c0_7] : memref<1x1024xf32, #tpu.memory_space<vmem>>, vector<1x1024xf32>
    %c0_8 = arith.constant 0 : index
    %c0_9 = arith.constant 0 : index
    %9 = vector.load %arg5[%c0_8, %c0_9] : memref<1x1024xf32, #tpu.memory_space<vmem>>, vector<1x1024xf32>
    %cst_10 = arith.constant dense<0.000000e+00> : vector<1024xf32>
    %10 = vector.multi_reduction <add>, %7, %cst_10 [0] : vector<8x1024xf32> to vector<1024xf32>
    %11 = vector.shape_cast %10 : vector<1024xf32> to vector<1x1024xf32>
    %cst_11 = arith.constant 8.000000e+00 : f32
    %12 = vector.broadcast %cst_11 : f32 to vector<1x1024xf32>
    %13 = arith.divf %11, %12 : vector<1x1024xf32>
    %14 = vector.broadcast %13 : vector<1x1024xf32> to vector<8x1024xf32>
    %15 = arith.subf %7, %14 : vector<8x1024xf32>
    %16 = arith.mulf %15, %15 : vector<8x1024xf32>
    %cst_12 = arith.constant dense<0.000000e+00> : vector<1024xf32>
    %17 = vector.multi_reduction <add>, %16, %cst_12 [0] : vector<8x1024xf32> to vector<1024xf32>
    %18 = vector.shape_cast %17 : vector<1024xf32> to vector<1x1024xf32>
    %cst_13 = arith.constant 8.000000e+00 : f32
    %19 = vector.broadcast %cst_13 : f32 to vector<1x1024xf32>
    %20 = arith.divf %18, %19 : vector<1x1024xf32>
    %cst_14 = arith.constant 9.99999974E-6 : f32
    %21 = vector.broadcast %cst_14 : f32 to vector<1x1024xf32>
    %22 = arith.addf %20, %21 : vector<1x1024xf32>
    %23 = math.rsqrt %22 : vector<1x1024xf32>
    %24 = vector.broadcast %23 : vector<1x1024xf32> to vector<8x1024xf32>
    %25 = arith.mulf %15, %24 : vector<8x1024xf32>
    %26 = vector.broadcast %8 : vector<1x1024xf32> to vector<8x1024xf32>
    %27 = arith.mulf %25, %26 : vector<8x1024xf32>
    %28 = vector.broadcast %9 : vector<1x1024xf32> to vector<8x1024xf32>
    %29 = arith.addf %27, %28 : vector<8x1024xf32>
    %30 = tpu.iota {dimensions = array<i32: 0>} : vector<8x1024xi32>
    %31 = tpu.iota {dimensions = array<i32: 1>} : vector<8x1024xi32>
    %c-1640531535_i32 = arith.constant -1640531535 : i32
    %32 = vector.broadcast %c-1640531535_i32 : i32 to vector<8x1024xi32>
    %33 = arith.muli %30, %32 : vector<8x1024xi32>
    %c-2048144777_i32 = arith.constant -2048144777 : i32
    %34 = vector.broadcast %c-2048144777_i32 : i32 to vector<8x1024xi32>
    %35 = arith.muli %31, %34 : vector<8x1024xi32>
    %36 = arith.addi %33, %35 : vector<8x1024xi32>
    %c1_i32 = arith.constant 1 : i32
    %c-1028477387_i32 = arith.constant -1028477387 : i32
    %37 = arith.muli %c1_i32, %c-1028477387_i32 : i32
    %38 = arith.addi %0, %37 : i32
    %39 = vector.broadcast %38 : i32 to vector<8x1024xi32>
    %40 = arith.xori %36, %39 : vector<8x1024xi32>
    %c16_i32 = arith.constant 16 : i32
    %41 = vector.broadcast %c16_i32 : i32 to vector<8x1024xi32>
    %42 = arith.shrui %40, %41 : vector<8x1024xi32>
    %43 = arith.xori %40, %42 : vector<8x1024xi32>
    %c2146121005_i32 = arith.constant 2146121005 : i32
    %44 = vector.broadcast %c2146121005_i32 : i32 to vector<8x1024xi32>
    %45 = arith.muli %43, %44 : vector<8x1024xi32>
    %c15_i32 = arith.constant 15 : i32
    %46 = vector.broadcast %c15_i32 : i32 to vector<8x1024xi32>
    %47 = arith.shrui %45, %46 : vector<8x1024xi32>
    %48 = arith.xori %45, %47 : vector<8x1024xi32>
    %c-2073254261_i32 = arith.constant -2073254261 : i32
    %49 = vector.broadcast %c-2073254261_i32 : i32 to vector<8x1024xi32>
    %50 = arith.muli %48, %49 : vector<8x1024xi32>
    %c16_i32_15 = arith.constant 16 : i32
    %51 = vector.broadcast %c16_i32_15 : i32 to vector<8x1024xi32>
    %52 = arith.shrui %50, %51 : vector<8x1024xi32>
    %53 = arith.xori %50, %52 : vector<8x1024xi32>
    %c31_i32 = arith.constant 31 : i32
    %54 = vector.broadcast %c31_i32 : i32 to vector<8x1024xi32>
    %55 = arith.shrui %53, %54 : vector<8x1024xi32>
    %c0_i32 = arith.constant 0 : i32
    %56 = vector.broadcast %c0_i32 : i32 to vector<8x1024xi32>
    %57 = arith.cmpi eq, %55, %56 : vector<8x1024xi32>
    %cst_16 = arith.constant 0.000000e+00 : f32
    %58 = vector.broadcast %cst_16 : f32 to vector<8x1024xf32>
    %59 = arith.cmpf ogt, %29, %58 : vector<8x1024xf32>
    %60 = arith.andi %57, %59 : vector<8x1024xi1>
    %cst_17 = arith.constant 2.000000e+00 : f32
    %61 = vector.broadcast %cst_17 : f32 to vector<8x1024xf32>
    %62 = arith.mulf %29, %61 : vector<8x1024xf32>
    %cst_18 = arith.constant 0.000000e+00 : f32
    %63 = vector.broadcast %cst_18 : f32 to vector<8x1024xf32>
    %64 = arith.select %60, %62, %63 : vector<8x1024xi1>, vector<8x1024xf32>
    %65 = arith.truncf %64 : vector<8x1024xf32> to vector<8x1024xbf16>
    %c0_19 = arith.constant 0 : index
    %c0_20 = arith.constant 0 : index
    %66 = vector.load %arg6[%c0_19, %c0_20] : memref<1024x512xbf16, #tpu.memory_space<vmem>>, vector<1024x512xbf16>
    %cst_21 = arith.constant dense<0.000000e+00> : vector<8x512xf32>
    %67 = tpu.matmul %65, %66, %cst_21 {dimension_numbers = #tpu.dot_dimension_numbers<[1], [0], [0], [1], [0, 0, 1, 1], [], []>} : vector<8x1024xbf16>, vector<1024x512xbf16>, vector<8x512xf32> -> vector<8x512xf32>
    %c0_22 = arith.constant 0 : index
    %c0_23 = arith.constant 0 : index
    %68 = vector.load %arg7[%c0_22, %c0_23] : memref<1x512xf32, #tpu.memory_space<vmem>>, vector<1x512xf32>
    %69 = vector.broadcast %68 : vector<1x512xf32> to vector<8x512xf32>
    %70 = arith.addf %67, %69 : vector<8x512xf32>
    %c0_24 = arith.constant 0 : index
    %c0_25 = arith.constant 0 : index
    %71 = vector.load %arg8[%c0_24, %c0_25] : memref<1x512xf32, #tpu.memory_space<vmem>>, vector<1x512xf32>
    %c0_26 = arith.constant 0 : index
    %c0_27 = arith.constant 0 : index
    %72 = vector.load %arg9[%c0_26, %c0_27] : memref<1x512xf32, #tpu.memory_space<vmem>>, vector<1x512xf32>
    %cst_28 = arith.constant dense<0.000000e+00> : vector<512xf32>
    %73 = vector.multi_reduction <add>, %70, %cst_28 [0] : vector<8x512xf32> to vector<512xf32>
    %74 = vector.shape_cast %73 : vector<512xf32> to vector<1x512xf32>
    %cst_29 = arith.constant 8.000000e+00 : f32
    %75 = vector.broadcast %cst_29 : f32 to vector<1x512xf32>
    %76 = arith.divf %74, %75 : vector<1x512xf32>
    %77 = vector.broadcast %76 : vector<1x512xf32> to vector<8x512xf32>
    %78 = arith.subf %70, %77 : vector<8x512xf32>
    %79 = arith.mulf %78, %78 : vector<8x512xf32>
    %cst_30 = arith.constant dense<0.000000e+00> : vector<512xf32>
    %80 = vector.multi_reduction <add>, %79, %cst_30 [0] : vector<8x512xf32> to vector<512xf32>
    %81 = vector.shape_cast %80 : vector<512xf32> to vector<1x512xf32>
    %cst_31 = arith.constant 8.000000e+00 : f32
    %82 = vector.broadcast %cst_31 : f32 to vector<1x512xf32>
    %83 = arith.divf %81, %82 : vector<1x512xf32>
    %cst_32 = arith.constant 9.99999974E-6 : f32
    %84 = vector.broadcast %cst_32 : f32 to vector<1x512xf32>
    %85 = arith.addf %83, %84 : vector<1x512xf32>
    %86 = math.rsqrt %85 : vector<1x512xf32>
    %87 = vector.broadcast %86 : vector<1x512xf32> to vector<8x512xf32>
    %88 = arith.mulf %78, %87 : vector<8x512xf32>
    %89 = vector.broadcast %71 : vector<1x512xf32> to vector<8x512xf32>
    %90 = arith.mulf %88, %89 : vector<8x512xf32>
    %91 = vector.broadcast %72 : vector<1x512xf32> to vector<8x512xf32>
    %92 = arith.addf %90, %91 : vector<8x512xf32>
    %93 = tpu.iota {dimensions = array<i32: 0>} : vector<8x512xi32>
    %94 = tpu.iota {dimensions = array<i32: 1>} : vector<8x512xi32>
    %c-1640531535_i32_33 = arith.constant -1640531535 : i32
    %95 = vector.broadcast %c-1640531535_i32_33 : i32 to vector<8x512xi32>
    %96 = arith.muli %93, %95 : vector<8x512xi32>
    %c-2048144777_i32_34 = arith.constant -2048144777 : i32
    %97 = vector.broadcast %c-2048144777_i32_34 : i32 to vector<8x512xi32>
    %98 = arith.muli %94, %97 : vector<8x512xi32>
    %99 = arith.addi %96, %98 : vector<8x512xi32>
    %c2_i32 = arith.constant 2 : i32
    %c-1028477387_i32_35 = arith.constant -1028477387 : i32
    %100 = arith.muli %c2_i32, %c-1028477387_i32_35 : i32
    %101 = arith.addi %0, %100 : i32
    %102 = vector.broadcast %101 : i32 to vector<8x512xi32>
    %103 = arith.xori %99, %102 : vector<8x512xi32>
    %c16_i32_36 = arith.constant 16 : i32
    %104 = vector.broadcast %c16_i32_36 : i32 to vector<8x512xi32>
    %105 = arith.shrui %103, %104 : vector<8x512xi32>
    %106 = arith.xori %103, %105 : vector<8x512xi32>
    %c2146121005_i32_37 = arith.constant 2146121005 : i32
    %107 = vector.broadcast %c2146121005_i32_37 : i32 to vector<8x512xi32>
    %108 = arith.muli %106, %107 : vector<8x512xi32>
    %c15_i32_38 = arith.constant 15 : i32
    %109 = vector.broadcast %c15_i32_38 : i32 to vector<8x512xi32>
    %110 = arith.shrui %108, %109 : vector<8x512xi32>
    %111 = arith.xori %108, %110 : vector<8x512xi32>
    %c-2073254261_i32_39 = arith.constant -2073254261 : i32
    %112 = vector.broadcast %c-2073254261_i32_39 : i32 to vector<8x512xi32>
    %113 = arith.muli %111, %112 : vector<8x512xi32>
    %c16_i32_40 = arith.constant 16 : i32
    %114 = vector.broadcast %c16_i32_40 : i32 to vector<8x512xi32>
    %115 = arith.shrui %113, %114 : vector<8x512xi32>
    %116 = arith.xori %113, %115 : vector<8x512xi32>
    %c31_i32_41 = arith.constant 31 : i32
    %117 = vector.broadcast %c31_i32_41 : i32 to vector<8x512xi32>
    %118 = arith.shrui %116, %117 : vector<8x512xi32>
    %c0_i32_42 = arith.constant 0 : i32
    %119 = vector.broadcast %c0_i32_42 : i32 to vector<8x512xi32>
    %120 = arith.cmpi eq, %118, %119 : vector<8x512xi32>
    %cst_43 = arith.constant 0.000000e+00 : f32
    %121 = vector.broadcast %cst_43 : f32 to vector<8x512xf32>
    %122 = arith.cmpf ogt, %92, %121 : vector<8x512xf32>
    %123 = arith.andi %120, %122 : vector<8x512xi1>
    %cst_44 = arith.constant 2.000000e+00 : f32
    %124 = vector.broadcast %cst_44 : f32 to vector<8x512xf32>
    %125 = arith.mulf %92, %124 : vector<8x512xf32>
    %cst_45 = arith.constant 0.000000e+00 : f32
    %126 = vector.broadcast %cst_45 : f32 to vector<8x512xf32>
    %127 = arith.select %123, %125, %126 : vector<8x512xi1>, vector<8x512xf32>
    %c0_46 = arith.constant 0 : index
    %c0_47 = arith.constant 0 : index
    %128 = vector.load %arg10[%c0_46, %c0_47] : memref<1x512xf32, #tpu.memory_space<vmem>>, vector<1x512xf32>
    %129 = vector.broadcast %128 : vector<1x512xf32> to vector<8x512xf32>
    %130 = arith.mulf %127, %129 : vector<8x512xf32>
    %cst_48 = arith.constant dense<0.000000e+00> : vector<8xf32>
    %131 = vector.multi_reduction <add>, %130, %cst_48 [1] : vector<8x512xf32> to vector<8xf32>
    %132 = vector.shape_cast %131 : vector<8xf32> to vector<8x1xf32>
    %c0_49 = arith.constant 0 : index
    %c0_50 = arith.constant 0 : index
    %133 = vector.load %arg11[%c0_49, %c0_50] : memref<1x1xf32, #tpu.memory_space<vmem>>, vector<1x1xf32>
    %134 = vector.broadcast %133 : vector<1x1xf32> to vector<8x1xf32>
    %135 = arith.addf %132, %134 : vector<8x1xf32>
    %136 = arith.negf %135 : vector<8x1xf32>
    %137 = math.exp %136 : vector<8x1xf32>
    %cst_51 = arith.constant 1.000000e+00 : f32
    %138 = vector.broadcast %cst_51 : f32 to vector<8x1xf32>
    %139 = arith.addf %138, %137 : vector<8x1xf32>
    %140 = arith.divf %138, %139 : vector<8x1xf32>
    %141 = vector.shape_cast %140 : vector<8x1xf32> to vector<8x1xf32>
    %142 = vector.broadcast %141 : vector<8x1xf32> to vector<8x128xf32>
    %c0_52 = arith.constant 0 : index
    %c0_53 = arith.constant 0 : index
    %143 = vector.load %arg12[%c0_52, %c0_53] : memref<8x128xf32, #tpu.memory_space<vmem>>, vector<8x128xf32>
    tpu.vector_store %arg12[%c0_52, %c0_53], %142 {strides = array<i32>} : memref<8x128xf32, #tpu.memory_space<vmem>>, vector<8x128xf32>,
    return
  }
}

</mosaic_0001>

<bundles_post_ra>
// kernel: tpu_custom_call.1
= control target key start
LH: loop header
LB: loop body
LE: loop exit
PB: predicated region body
PF: predicated region fallthrough
CT: control target
= control target key end

     0   :  { %s5622_s0 = inlined_call_operand.<no memory space> [shape: s32[1], index: 0, kind: input, shape index: {}]   ;;  %s5623_s1 = inlined_call_operand.hbm [shape: f32[8,32], index: 1, kind: input, shape index: {}]   ;;  %s5624_s2 = inlined_call_operand.hbm [shape: bf16[32,1024], index: 2, kind: input, shape index: {}]   ;;  %s5625_s3 = inlined_call_operand.hbm [shape: f32[1,1024], index: 3, kind: input, shape index: {}]   ;;  %s5626_s4 = inlined_call_operand.hbm [shape: f32[1,1024], index: 4, kind: input, shape index: {}]   ;;  %s5627_s5 = inlined_call_operand.hbm [shape: f32[1,1024], index: 5, kind: input, shape index: {}]   ;;  %s5628_s6 = inlined_call_operand.hbm [shape: bf16[1024,512], index: 6, kind: input, shape index: {}]   ;;  %s5629_s7 = inlined_call_operand.vmem [shape: f32[1,512], index: 7, kind: input, shape index: {}]   ;;  %s5630_s8 = inlined_call_operand.vmem [shape: f32[1,512], index: 8, kind: input, shape index: {}]   ;;  %s5631_s9 = inlined_call_operand.hbm [shape: f32[1,512], index: 9, kind: input, shape index: {}]   ;;  %s5632_s10 = inlined_call_operand.vmem [shape: f32[1,512], index: 10, kind: input, shape index: {}]   ;;  %s5633_s11 = inlined_call_operand.<no memory space> [shape: f32[1,1], index: 11, kind: input, shape index: {}]   ;;  %s5634_s12 = inlined_call_operand.hbm [shape: f32[8,128], index: 12, kind: output, shape index: {}]  }
   0x1   :  { %v18_v0 = vstv %s5633_s11 }
   0x2   :  { %19 = vst [vmem:[#allocation3] sm:$0x1] %v18_v0 }
   0x3   :  { %20 = vsyncpa [#allocation5], 0 }
   0x4   :  { %21 = vsyncpa [#allocation8], 0 }
   0x5   :  { %22 = vsyncpa [#allocation11], 0 }
   0x6   :  { %23 = vsyncpa [#allocation14], 0  ;;  %s42_s25 = sshll.u32 %s5624_s2, 4  ;;  %s43_s25 = int_to_ptr.hbm [resolvable:$true] %s42_s25 }
   0x7   :  { %24 = vsyncpa [#allocation6], 0  ;;  %s4757_s26 = smov [#allocation7]   ;;  %s67_s30 = sshll.u32 %s5626_s4, 4  ;;  %s68_s30 = int_to_ptr.hbm [resolvable:$true] %s67_s30 }
   0x8   :  { %s44_s27 = sshll.u32 %s4757_s26, 4  ;;  %s4758_s13 = smov 512   ;;  %s45_s27 = int_to_ptr.vmem [resolvable:$true] %s44_s27 }
   0x9   :  { %s4759_s11 = smov 32   ;;  %s4760_s14 = smov [#allocation10]  }
   0xa   :  { %50 = dma.hbm_to_vmem [thread:$0]  %s43_s25, 2048, %s45_s27, [#allocation8], %s4758_s13, %s4758_s13, %s4759_s11  }
   0xb   :  { %s69_s15 = sshll.u32 %s4760_s14, 4  ;;  %s88_s18 = sshll.u32 %s5628_s6, 4  ;;  %s70_s15 = int_to_ptr.vmem [resolvable:$true] %s69_s15  ;;  %s89_s18 = int_to_ptr.hbm [resolvable:$true] %s88_s18 }
   0xc   :  { %72 = dma.hbm_to_vmem [thread:$0]  %s68_s30, 128, %s70_s15, [#allocation11]  }
   0xd   :  { %s4761_s2 = smov [#allocation13]   ;;  %s32_s4 = sshll.u32 %s5623_s1, 4  ;;  %s33_s4 = int_to_ptr.hbm [resolvable:$true] %s32_s4 }
   0xe   :  { %s90_s19 = sshll.u32 %s4761_s2, 4  ;;  %s4762_s22 = smov 256   ;;  %s91_s19 = int_to_ptr.vmem [resolvable:$true] %s90_s19 }
   0xf   :  { %s4763_s23 = smov 16   ;;  %s4764_s24 = smov [#allocation4]  }
  0x10   :  { %96 = dma.hbm_to_vmem [thread:$0]  %s89_s18, 32768, %s91_s19, [#allocation14], %s4762_s22, %s4762_s22, %s4763_s23  }
  0x11   :  { %s34_s25 = sshll.u32 %s4764_s24, 4  ;;  %s56_s6 = sshll.u32 %s5625_s3, 4  ;;  %s35_s25 = int_to_ptr.vmem [resolvable:$true] %s34_s25  ;;  %s57_s6 = int_to_ptr.hbm [resolvable:$true] %s56_s6 }
  0x12   :  { %37 = dma.hbm_to_vmem [thread:$0]  %s33_s4, 128, %s35_s25, [#allocation5]  }
  0x13   :  { %s78_s30 = sshll.u32 %s5627_s5, 4  ;;  %s4765_s13 = smov [#allocation9]   ;;  %s79_s30 = int_to_ptr.hbm [resolvable:$true] %s78_s30 }
  0x14   :  { %s58_s11 = sshll.u32 %s4765_s13, 4  ;;  %s4766_s1 = smov [#allocation12]   ;;  %s59_s11 = int_to_ptr.vmem [resolvable:$true] %s58_s11 }
  0x15   :  { %61 = dma.hbm_to_vmem [thread:$0]  %s57_s6, 128, %s59_s11, [#allocation8]  }
  0x16   :  { %s80_s14 = sshll.u32 %s4766_s1, 4  ;;  %s106_s17 = sshll.u32 %s5631_s9, 4  ;;  %s81_s14 = int_to_ptr.vmem [resolvable:$true] %s80_s14  ;;  %s107_s17 = int_to_ptr.hbm [resolvable:$true] %s106_s17 }
  0x17   :  { %83 = dma.hbm_to_vmem [thread:$0]  %s79_s30, 128, %s81_s14, [#allocation11]  }
  0x18   :  { %s4767_s3 = smov [#allocation15]  }
  0x19   :  { %s108_s18 = sshll.u32 %s4767_s3, 4  ;;  %s109_s18 = int_to_ptr.vmem [resolvable:$true] %s108_s18 }
  0x1a   :  { %111 = dma.hbm_to_vmem [thread:$0]  %s107_s17, 64, %s109_s18, [#allocation14]  }
  0x1b   :  { %4747 = dma.done.wait [#allocation5], 128  }
  0x1c   :  { %4748 = vsyncadd [#allocation5], 4294967168 }
  0x1d   :  { %4749 = dma.done.wait [#allocation8], 2176  }
  0x1e   :  { %4750 = vsyncadd [#allocation8], 4294965120 }
  0x1f   :  { %4751 = dma.done.wait [#allocation11], 256  }
  0x20   :  { %4752 = vsyncadd [#allocation11], 4294967040 }
  0x21   :  { %4753 = dma.done.wait [#allocation14], 32832  }
  0x22   :  { %4754 = vsyncadd [#allocation14], 4294934464  ;;  %v3078_v1 = vld [vmem:[#allocation7 + $0x40] sm:$0xf]  ;;  %v4245_v3 = vld [vmem:[#allocation7 + $0x44] sm:$0xf] }
  0x23   :  { %v4249_v2 = vld [vmem:[#allocation7 + $0x5c] sm:$0xf0]  ;;  %v3080_v5 = vld [vmem:[#allocation7 + $0x60] sm:$0xf0]  ;;  %v3086_v6 = vld [vmem:[#allocation7 + $0x48] sm:$0xf] }
  0x24   :  { %v3079_v4 = vor.u32 %v4249_v2, %v3078_v1  ;;  %v4250_v7 = vld [vmem:[#allocation7 + $0x64] sm:$0xf0]  ;;  %v3083_v8 = vor.u32 %v4245_v3, %v3080_v5  ;;  %v4246_v10 = vld [vmem:[#allocation7 + $0x4c] sm:$0xf]  ;;  %v3046_v12 = vld [vmem:[#allocation7] sm:$0xf] }
  0x25   :  { %v3087_v9 = vor.u32 %v4250_v7, %v3086_v6  ;;  %v3088_v11 = vld [vmem:[#allocation7 + $0x68] sm:$0xf0]  ;;  %v4241_v14 = vld [vmem:[#allocation7 + $0x1c] sm:$0xf0]  ;;  %v4237_v15 = vld [vmem:[#allocation7 + $0x4] sm:$0xf] }
  0x26   :  { %272 = vmatpush.bf16.msra.mxu0 %v3079_v4  ;;  %v3091_v13 = vor.u32 %v4246_v10, %v3088_v11  ;;  %v3048_v16 = vld [vmem:[#allocation7 + $0x20] sm:$0xf0]  ;;  %285 = vmatpush.bf16.msra.mxu1 %v3083_v8  ;;  %v3047_v17 = vor.u32 %v4241_v14, %v3046_v12  ;;  %v3054_v19 = vld [vmem:[#allocation7 + $0x8] sm:$0xf]  ;;  %v4238_v21 = vld [vmem:[#allocation7 + $0xc] sm:$0xf] }
  0x27   :  { %298 = vmatpush.bf16.msra.mxu2 %v3087_v9  ;;  %v3051_v18 = vor.u32 %v4237_v15, %v3048_v16  ;;  %v4242_v20 = vld [vmem:[#allocation7 + $0x24] sm:$0xf0]  ;;  %v3056_v23 = vld [vmem:[#allocation7 + $0x28] sm:$0xf0]  ;;  %v146_v24 = vld [vmem:[#allocation4] sm:$0xff]  ;;  %vm262_vm0 = vcmask 261120  }
  0x28   :  { %311 = vmatpush.bf16.msra.mxu3 %v3091_v13  ;;  %v3055_v22 = vor.u32 %v4242_v20, %v3054_v19  ;;  %v3094_v25 = vld [vmem:[#allocation7 + $0x50] sm:$0xf]  ;;  %v3059_v26 = vor.u32 %v4238_v21, %v3056_v23  ;;  %v147_v27 = vpack.c.bf16 %v146_v24, %v146_v24  ;;  %v4247_v29 = vld [vmem:[#allocation7 + $0x54] sm:$0xf]  ;;  %v3102_v33 = vld [vmem:[#allocation7 + $0x58] sm:$0xf] }
  0x29   :  { %v4251_v28 = vld [vmem:[#allocation7 + $0x6c] sm:$0xf0]  ;;  %v3096_v30 = vld [vmem:[#allocation7 + $0x70] sm:$0xf0]  ;;  %v4252_v34 = vld [vmem:[#allocation7 + $0x74] sm:$0xf0] }
  0x2a   :  { %273 = vmatpush.bf16.msra.mxu0 %v3047_v17  ;;  %v3095_v31 = vor.u32 %v4251_v28, %v3094_v25  ;;  %v3099_v32 = vor.u32 %v4247_v29, %v3096_v30  ;;  %v4248_v35 = vld [vmem:[#allocation7 + $0x5c] sm:$0xf]  ;;  %286 = vmatpush.bf16.msra.mxu1 %v3051_v18  ;;  %v3103_v36 = vor.u32 %v4252_v34, %v3102_v33  ;;  %v3062_v38 = vld [vmem:[#allocation7 + $0x10] sm:$0xf]  ;;  %v4239_v42 = vld [vmem:[#allocation7 + $0x14] sm:$0xf] }
  0x2b   :  { %299 = vmatpush.bf16.msra.mxu2 %v3055_v22  ;;  %v3104_v37 = vld [vmem:[#allocation7 + $0x78] sm:$0xf0]  ;;  %v4243_v39 = vld [vmem:[#allocation7 + $0x2c] sm:$0xf0]  ;;  %v3064_v43 = vld [vmem:[#allocation7 + $0x30] sm:$0xf0] }
  0x2c   :  { %312 = vmatpush.bf16.msra.mxu3 %v3059_v26  ;;  %v3107_v40 = vor.u32 %v4248_v35, %v3104_v37  ;;  %v3063_v41 = vor.u32 %v4243_v39, %v3062_v38  ;;  %v3070_v44 = vld [vmem:[#allocation7 + $0x18] sm:$0xf]  ;;  %v3067_v45 = vor.u32 %v4239_v42, %v3064_v43  ;;  %v4240_v47 = vld [vmem:[#allocation7 + $0x1c] sm:$0xf]  ;;  %v4283_v52 = vld [vmem:[#allocation13 + $0xec] sm:$0xf0] }
  0x2d   :  { %3108 = vmatmul.msk.bf16.vlgmr.msra.gmra.mxu0 %vm262_vm0, %v147_v27  ;;  %v4244_v46 = vld [vmem:[#allocation7 + $0x34] sm:$0xf0]  ;;  %v3072_v48 = vld [vmem:[#allocation7 + $0x38] sm:$0xf0]  ;;  %3109 = vmatmul.msk.bf16.vlgmr.msra.gmra.mxu1 %vm262_vm0, %v147_v27  ;;  %v4315_v55 = vld [vmem:[#allocation13 + $0x1ec] sm:$0xf0] }
  0x2e   :  { %324 = vmatpush.bf16.msrb.mxu0 %v3095_v31  ;;  %337 = vmatpush.bf16.msrb.mxu1 %v3099_v32  ;;  %v3071_v49 = vor.u32 %v4244_v46, %v3070_v44  ;;  %v3075_v50 = vor.u32 %v4240_v47, %v3072_v48  ;;  %v3230_v51 = vld [vmem:[#allocation13 + $0xe0] sm:$0xf]  ;;  %v4279_v58 = vld [vmem:[#allocation13 + $0xcc] sm:$0xf0]  ;;  %v4768_v14 = vmov 8.0   ;;  %v4868_v31 = vld [vmem:[#allocation9] sm:$0xff] }
  0x2f   :  { %3110 = vmatmul.msk.bf16.vlgmr.msra.gmra.mxu2 %vm262_vm0, %v147_v27  ;;  %3111 = vmatmul.msk.bf16.vlgmr.msra.gmra.mxu3 %vm262_vm0, %v147_v27  ;;  %v3358_v53 = vld [vmem:[#allocation13 + $0x1e0] sm:$0xf]  ;;  %v3231_v54 = vor.u32 %v4283_v52, %v3230_v51  ;;  %v4311_v61 = vld [vmem:[#allocation13 + $0x1cc] sm:$0xf0]  ;;  %4525 = vrcp.f32 %v4768_v14  ;;  %v166_v33 = vperm.slane %v4868_v31, 0  ;;  %v167_v34 = vperm.slane %v4868_v31, 1 }
  0x30   :  { %350 = vmatpush.bf16.msrb.mxu2 %v3103_v36  ;;  %363 = vmatpush.bf16.msrb.mxu3 %v3107_v40  ;;  %v3359_v56 = vor.u32 %v4315_v55, %v3358_v53  ;;  %v3214_v57 = vld [vmem:[#allocation13 + $0xc0] sm:$0xf]  ;;  %v4347_v0 = vld [vmem:[#allocation13 + $0x2ec] sm:$0xf0]  ;;  %v168_v43 = vperm.slane %v4868_v31, 2  ;;  %s3031_s27 = sshll.u32 %s5634_s12, 4  ;;  %s3032_s27 = int_to_ptr.hbm [resolvable:$true] %s3031_s27 }
  0x31   :  { %v3215_v59 = vor.u32 %v4279_v58, %v3214_v57  ;;  %v3342_v60 = vld [vmem:[#allocation13 + $0x1c0] sm:$0xf]  ;;  %v4379_v3 = vld [vmem:[#allocation13 + $0x3ec] sm:$0xf0]  ;;  %s681_s2 = sadd.s32 3266489909, %s5622_s0 }
  0x32   :  { %325 = vmatpush.bf16.msrb.mxu0 %v3063_v41  ;;  %338 = vmatpush.bf16.msrb.mxu1 %v3067_v45  ;;  %v3343_v62 = vor.u32 %v4311_v61, %v3342_v60  ;;  %v3486_v63 = vld [vmem:[#allocation13 + $0x2e0] sm:$0xf]  ;;  %v4275_v6 = vld [vmem:[#allocation13 + $0xac] sm:$0xf0]  ;;  %v169_v45 = vperm.slane %v4868_v31, 3 }
  0x33   :  { %v3614_v1 = vld [vmem:[#allocation13 + $0x3e0] sm:$0xf]  ;;  %v3487_v2 = vor.u32 %v4347_v0, %v3486_v63  ;;  %v4307_v9 = vld [vmem:[#allocation13 + $0x1ac] sm:$0xf0]  ;;  %s2913_s4 = sadd.s32 2238012522, %s5622_s0 }
  0x34   :  { %351 = vmatpush.bf16.msrb.mxu2 %v3071_v49  ;;  %364 = vmatpush.bf16.msrb.mxu3 %v3075_v50  ;;  %v3615_v4 = vor.u32 %v4379_v3, %v3614_v1  ;;  %v3198_v5 = vld [vmem:[#allocation13 + $0xa0] sm:$0xf]  ;;  %v4343_v12 = vld [vmem:[#allocation13 + $0x2cc] sm:$0xf0] }
  0x35   :  { %v3326_v7 = vld [vmem:[#allocation13 + $0x1a0] sm:$0xf]  ;;  %v3199_v8 = vor.u32 %v4275_v6, %v3198_v5  ;;  %v4375_v16 = vld [vmem:[#allocation13 + $0x3cc] sm:$0xf0]  ;;  %v4526_v30 = vpop.eup %4525 }
  0x36   :  { %2357 = vmatpush.bf16.msra.mxu0 %v3231_v54  ;;  %2370 = vmatpush.bf16.msra.mxu1 %v3359_v56  ;;  %v3327_v10 = vor.u32 %v4307_v9, %v3326_v7  ;;  %v3470_v11 = vld [vmem:[#allocation13 + $0x2c0] sm:$0xf]  ;;  %v4271_v19 = vld [vmem:[#allocation13 + $0x8c] sm:$0xf0]  ;;  %v421_v32 = vmul.f32 8.0, %v4526_v30  ;;  %vm425_vm1 = vweird.f32 %v4526_v30 }
  0x37   :  { %v3598_v13 = vld [vmem:[#allocation13 + $0x3c0] sm:$0xf]  ;;  %v3471_v15 = vor.u32 %v4343_v12, %v3470_v11  ;;  %v4303_v22 = vld [vmem:[#allocation13 + $0x18c] sm:$0xf0] }
  0x38   :  { %2383 = vmatpush.bf16.msra.mxu2 %v3487_v2  ;;  %2396 = vmatpush.bf16.msra.mxu3 %v3615_v4  ;;  %v3599_v17 = vor.u32 %v4375_v16, %v3598_v13  ;;  %v3182_v18 = vld [vmem:[#allocation13 + $0x80] sm:$0xf]  ;;  %v4339_v25 = vld [vmem:[#allocation13 + $0x2ac] sm:$0xf0]  ;;  %v422_v36 = vsub.f32 1.0, %v421_v32 }
  0x39   :  { %v3310_v20 = vld [vmem:[#allocation13 + $0x180] sm:$0xf]  ;;  %v3183_v21 = vor.u32 %v4271_v19, %v3182_v18  ;;  %v4371_v28 = vld [vmem:[#allocation13 + $0x3ac] sm:$0xf0] }
  0x3a   :  { %2358 = vmatpush.bf16.msra.mxu0 %v3215_v59  ;;  %2371 = vmatpush.bf16.msra.mxu1 %v3343_v62  ;;  %v3311_v23 = vor.u32 %v4303_v22, %v3310_v20  ;;  %v3454_v24 = vld [vmem:[#allocation13 + $0x2a0] sm:$0xf]  ;;  %v423_v41 = vmul.f32 %v4526_v30, %v422_v36  ;;  %v4267_v48 = vld [vmem:[#allocation13 + $0x6c] sm:$0xf0]  ;;  %v170_v22 = vperm.slane %v4868_v31, 4  ;;  %v172_v36 = vperm.slane %v4868_v31, 6 }
  0x3b   :  { %v3582_v26 = vld [vmem:[#allocation13 + $0x3a0] sm:$0xf]  ;;  %v4299_v53 = vld [vmem:[#allocation13 + $0x16c] sm:$0xf0] }
  0x3c   :  { %2384 = vmatpush.bf16.msra.mxu2 %v3471_v15  ;;  %2397 = vmatpush.bf16.msra.mxu3 %v3599_v17  ;;  %v3583_v29 = vor.u32 %v4371_v28, %v3582_v26  ;;  %v3166_v47 = vld [vmem:[#allocation13 + $0x60] sm:$0xf]  ;;  %v424_v54 = vadd.f32 %v4526_v30, %v423_v41  ;;  %v4335_v61 = vld [vmem:[#allocation13 + $0x28c] sm:$0xf0]  ;;  %v171_v28 = vperm.slane %v4868_v31, 5 }
  0x3d   :  { %3112 = vmatmul.msk.bf16.vlgmr.msrb.gmra.mxu0 %vm262_vm0, %v147_v27  ;;  %3113 = vmatmul.msk.bf16.vlgmr.msrb.gmra.mxu1 %vm262_vm0, %v147_v27  ;;  %v3294_v49 = vld [vmem:[#allocation13 + $0x160] sm:$0xf]  ;;  %v3167_v52 = vor.u32 %v4267_v48, %v3166_v47  ;;  %v4367_v3 = vld [vmem:[#allocation13 + $0x38c] sm:$0xf0] }
  0x3e   :  { %2359 = vmatpush.bf16.msra.mxu0 %v3199_v8  ;;  %2372 = vmatpush.bf16.msra.mxu1 %v3327_v10  ;;  %v3295_v59 = vor.u32 %v4299_v53, %v3294_v49  ;;  %v3438_v60 = vld [vmem:[#allocation13 + $0x280] sm:$0xf]  ;;  %v4263_v8 = vld [vmem:[#allocation13 + $0x4c] sm:$0xf0]  ;;  %v4889_v14 = vsel %vm425_vm1, %v4526_v30, %v424_v54 }
  0x3f   :  { %3114 = vmatmul.msk.bf16.vlgmr.msrb.gmra.mxu2 %vm262_vm0, %v147_v27  ;;  %3115 = vmatmul.msk.bf16.vlgmr.msrb.gmra.mxu3 %vm262_vm0, %v147_v27  ;;  %v3455_v27 = vor.u32 %v4339_v25, %v3454_v24  ;;  %v3439_v1 = vor.u32 %v4335_v61, %v3438_v60  ;;  %v3566_v2 = vld [vmem:[#allocation13 + $0x380] sm:$0xf]  ;;  %v4295_v13 = vld [vmem:[#allocation13 + $0x14c] sm:$0xf0] }
  0x40   :  { %2398 = vmatpush.bf16.msra.mxu3 %v3583_v29  ;;  %v3567_v6 = vor.u32 %v4367_v3, %v3566_v2  ;;  %v3150_v7 = vld [vmem:[#allocation13 + $0x40] sm:$0xf]  ;;  %v4331_v19 = vld [vmem:[#allocation13 + $0x26c] sm:$0xf0] }
  0x41   :  { %2385 = vmatpush.bf16.msra.mxu2 %v3455_v27  ;;  %v3151_v11 = vor.u32 %v4263_v8, %v3150_v7  ;;  %v3278_v12 = vld [vmem:[#allocation13 + $0x140] sm:$0xf]  ;;  %v4363_v25 = vld [vmem:[#allocation13 + $0x36c] sm:$0xf0] }
  0x42   :  { %2360 = vmatpush.bf16.msra.mxu0 %v3183_v21  ;;  %2373 = vmatpush.bf16.msra.mxu1 %v3311_v23  ;;  %v3279_v17 = vor.u32 %v4295_v13, %v3278_v12  ;;  %v3422_v18 = vld [vmem:[#allocation13 + $0x260] sm:$0xf]  ;;  %v4259_v32 = vld [vmem:[#allocation13 + $0x2c] sm:$0xf0] }
  0x43   :  { %v3423_v23 = vor.u32 %v4331_v19, %v3422_v18  ;;  %v3550_v24 = vld [vmem:[#allocation13 + $0x360] sm:$0xf]  ;;  %v4291_v41 = vld [vmem:[#allocation13 + $0x12c] sm:$0xf0] }
  0x44   :  { %2399 = vmatpush.bf16.msra.mxu3 %v3567_v6  ;;  %v3551_v29 = vor.u32 %v4363_v25, %v3550_v24  ;;  %v3134_v30 = vld [vmem:[#allocation13 + $0x20] sm:$0xf]  ;;  %v4327_v48 = vld [vmem:[#allocation13 + $0x24c] sm:$0xf0]  ;;  %v173_v25 = vperm.slane %v4868_v31, 7 }
  0x45   :  { %2386 = vmatpush.bf16.msra.mxu2 %v3439_v1  ;;  %v3406_v47 = vld [vmem:[#allocation13 + $0x240] sm:$0xf] }
  0x46   :  { %2361 = vmatpush.bf16.msra.mxu0 %v3167_v52  ;;  %2374 = vmatpush.bf16.msra.mxu1 %v3295_v59  ;;  %v3534_v49 = vld [vmem:[#allocation13 + $0x340] sm:$0xf]  ;;  %v3407_v54 = vor.u32 %v4327_v48, %v3406_v47 }
  0x47   :  { %v3118_v61 = vld [vmem:[#allocation13] sm:$0xf] }
  0x48   :  { %2400 = vmatpush.bf16.msra.mxu3 %v3551_v29  ;;  %v3246_v3 = vld [vmem:[#allocation13 + $0x100] sm:$0xf] }
  0x49   :  { %2387 = vmatpush.bf16.msra.mxu2 %v3423_v23  ;;  %v3742_v8 = vld [vmem:[#allocation13 + $0x4e0] sm:$0xf] }
  0x4a   :  { %2362 = vmatpush.bf16.msra.mxu0 %v3151_v11  ;;  %2375 = vmatpush.bf16.msra.mxu1 %v3279_v17 }
  0x4d   :  { %2388 = vmatpush.bf16.msra.mxu2 %v3407_v54 }
  0xaa   :  { %v275_v35 = vpop.f32.mrf.mxu0  ;;  %v288_v38 = vpop.f32.mrf.mxu1 }
  0xab   :  { %v4872_v37 = vadd.f32 %v275_v35, %v166_v33  ;;  %v4874_v39 = vadd.f32 %v288_v38, %v167_v34  ;;  %v3135_v38 = vor.u32 %v4259_v32, %v3134_v30 }
  0xad   :  { %v372_v40 = vrot.slane %v4872_v37, 4  ;;  %v378_v42 = vrot.slane %v4874_v39, 4  ;;  %2363 = vmatpush.bf16.msra.mxu0 %v3135_v38 }
  0xaf   :  { %v373_v44 = vadd.f32 %v372_v40, %v4872_v37  ;;  %v379_v46 = vadd.f32 %v378_v42, %v4874_v39  ;;  %v3262_v40 = vld [vmem:[#allocation13 + $0x120] sm:$0xf] }
  0xb1   :  { %v374_v50 = vrot.slane %v373_v44, 2  ;;  %v380_v55 = vrot.slane %v379_v46, 2 }
  0xb2   :  { %v301_v51 = vpop.f32.mrf.mxu2  ;;  %v314_v57 = vpop.f32.mrf.mxu3 }
  0xb3   :  { %v4882_v56 = vadd.f32 %v301_v51, %v168_v43  ;;  %v277_v58 = vpop.f32.mrf.mxu0  ;;  %v375_v62 = vadd.f32 %v374_v50, %v373_v44  ;;  %v4884_v63 = vadd.f32 %v314_v57, %v169_v45  ;;  %v290_v0 = vpop.f32.mrf.mxu1  ;;  %v381_v4 = vadd.f32 %v380_v55, %v379_v46  ;;  %v4359_v55 = vld [vmem:[#allocation13 + $0x34c] sm:$0xf0] }
  0xb4   :  { %v3263_v46 = vor.u32 %v4291_v41, %v3262_v40  ;;  %v3535_v60 = vor.u32 %v4359_v55, %v3534_v49 }
  0xb5   :  { %v384_v5 = vrot.slane %v4882_v56, 4  ;;  %v376_v9 = vrot.slane %v375_v62, 1  ;;  %v390_v10 = vrot.slane %v4884_v63, 4  ;;  %v382_v15 = vrot.slane %v381_v4, 1 }
  0xb6   :  { %2376 = vmatpush.bf16.msra.mxu1 %v3263_v46  ;;  %2401 = vmatpush.bf16.msra.mxu3 %v3535_v60 }
  0xb7   :  { %v385_v16 = vadd.f32 %v384_v5, %v4882_v56  ;;  %v377_v20 = vadd.f32 %v376_v9, %v375_v62  ;;  %v391_v21 = vadd.f32 %v390_v10, %v4884_v63  ;;  %v383_v26 = vadd.f32 %v382_v15, %v381_v4  ;;  %v4255_v62 = vld [vmem:[#allocation13 + $0xc] sm:$0xf0]  ;;  %v3870_v15 = vld [vmem:[#allocation13 + $0x5e0] sm:$0xf] }
  0xb8   :  { %v3119_v2 = vor.u32 %v4255_v62, %v3118_v61  ;;  %v4287_v4 = vld [vmem:[#allocation13 + $0x10c] sm:$0xf0] }
  0xb9   :  { %v386_v27 = vrot.slane %v385_v16, 2  ;;  %v427_v33 = vmul.f32 %v4889_v14, %v377_v20  ;;  %v392_v34 = vrot.slane %v391_v21, 2  ;;  %v428_v42 = vmul.f32 %v4889_v14, %v383_v26  ;;  %v4411_v9 = vld [vmem:[#allocation13 + $0x4ec] sm:$0xf0] }
  0xba   :  { %v303_v35 = vpop.f32.mrf.mxu2  ;;  %v316_v44 = vpop.f32.mrf.mxu3  ;;  %v3247_v7 = vor.u32 %v4287_v4, %v3246_v3  ;;  %2364 = vmatpush.bf16.msra.mxu0 %v3119_v2  ;;  %v3743_v13 = vor.u32 %v4411_v9, %v3742_v8 }
  0xbb   :  { %v387_v43 = vadd.f32 %v386_v27, %v385_v16  ;;  %v327_v45 = vpop.f32.mrf.mxu0  ;;  %v4899_v50 = vsub.f32 %v4872_v37, %v427_v33  ;;  %v393_v51 = vadd.f32 %v392_v34, %v391_v21  ;;  %v340_v53 = vpop.f32.mrf.mxu1  ;;  %v4904_v57 = vsub.f32 %v4874_v39, %v428_v42  ;;  %v4443_v16 = vld [vmem:[#allocation13 + $0x5ec] sm:$0xf0] }
  0xbc   :  { %v4901_v52 = vadd.f32 %v327_v45, %v170_v22  ;;  %v4906_v59 = vadd.f32 %v340_v53, %v171_v28  ;;  %2377 = vmatpush.bf16.msra.mxu1 %v3247_v7  ;;  %v3871_v20 = vor.u32 %v4443_v16, %v3870_v15 }
  0xbd   :  { %v388_v58 = vrot.slane %v387_v43, 1  ;;  %v443_v37 = vmul.f32 %v4899_v50, %v4899_v50  ;;  %v394_v0 = vrot.slane %v393_v51, 1  ;;  %v444_v39 = vmul.f32 %v4904_v57, %v4904_v57 }
  0xbe   :  { %v396_v1 = vrot.slane %v4901_v52, 4  ;;  %v402_v6 = vrot.slane %v4906_v59, 4  ;;  %2409 = vmatpush.bf16.msrb.mxu0 %v3743_v13 }
  0xbf   :  { %v389_v5 = vadd.f32 %v388_v58, %v387_v43  ;;  %v451_v10 = vrot.slane %v443_v37, 4  ;;  %v395_v11 = vadd.f32 %v394_v0, %v393_v51  ;;  %v457_v17 = vrot.slane %v444_v39, 4 }
  0xc0   :  { %v397_v12 = vadd.f32 %v396_v1, %v4901_v52  ;;  %v403_v19 = vadd.f32 %v402_v6, %v4906_v59  ;;  %2422 = vmatpush.bf16.msrb.mxu1 %v3871_v20 }
  0xc1   :  { %v429_v18 = vmul.f32 %v4889_v14, %v389_v5  ;;  %v452_v21 = vadd.f32 %v451_v10, %v443_v37  ;;  %v430_v22 = vmul.f32 %v4889_v14, %v395_v11  ;;  %v458_v26 = vadd.f32 %v457_v17, %v444_v39 }
  0xc2   :  { %v398_v23 = vrot.slane %v397_v12, 2  ;;  %v353_v24 = vpop.f32.mrf.mxu2  ;;  %v404_v28 = vrot.slane %v403_v19, 2  ;;  %v366_v30 = vpop.f32.mrf.mxu3 }
  0xc3   :  { %v4920_v27 = vsub.f32 %v4882_v56, %v429_v18  ;;  %v4924_v29 = vadd.f32 %v353_v24, %v172_v36  ;;  %v329_v32 = vpop.f32.mrf.mxu0  ;;  %v453_v33 = vrot.slane %v452_v21, 2  ;;  %v4927_v34 = vsub.f32 %v4884_v63, %v430_v22  ;;  %v342_v38 = vpop.f32.mrf.mxu1  ;;  %v4323_v22 = vld [vmem:[#allocation13 + $0x22c] sm:$0xf0] }
  0xc4   :  { %v399_v35 = vadd.f32 %v398_v23, %v397_v12  ;;  %v459_v40 = vrot.slane %v458_v26, 2  ;;  %v405_v56 = vadd.f32 %v404_v28, %v403_v19  ;;  %v4934_v44 = vadd.f32 %v366_v30, %v173_v25  ;;  %v3518_v25 = vld [vmem:[#allocation13 + $0x320] sm:$0xf]  ;;  %v4407_v38 = vld [vmem:[#allocation13 + $0x4cc] sm:$0xf0] }
  0xc5   :  { %v445_v41 = vmul.f32 %v4920_v27, %v4920_v27  ;;  %v408_v42 = vrot.slane %v4924_v29, 4  ;;  %v454_v43 = vadd.f32 %v453_v33, %v452_v21  ;;  %v446_v31 = vmul.f32 %v4927_v34, %v4927_v34  ;;  %v3390_v21 = vld [vmem:[#allocation13 + $0x220] sm:$0xf]  ;;  %v4355_v33 = vld [vmem:[#allocation13 + $0x32c] sm:$0xf0] }
  0xc6   :  { %v400_v36 = vrot.slane %v399_v35, 1  ;;  %v460_v45 = vadd.f32 %v459_v40, %v458_v26  ;;  %v406_v63 = vrot.slane %v405_v56, 1  ;;  %v414_v53 = vrot.slane %v4934_v44, 4 }
  0xc7   :  { %v463_v46 = vrot.slane %v445_v41, 4  ;;  %v409_v47 = vadd.f32 %v408_v42, %v4924_v29  ;;  %v455_v48 = vrot.slane %v454_v43, 1  ;;  %v469_v49 = vrot.slane %v446_v31, 4 }
  0xc8   :  { %v401_v51 = vadd.f32 %v400_v36, %v399_v35  ;;  %v461_v54 = vrot.slane %v460_v45, 1  ;;  %v407_v58 = vadd.f32 %v406_v63, %v405_v56  ;;  %v415_v7 = vadd.f32 %v414_v53, %v4934_v44  ;;  %v3726_v35 = vld [vmem:[#allocation13 + $0x4c0] sm:$0xf] }
  0xc9   :  { %v464_v55 = vadd.f32 %v463_v46, %v445_v41  ;;  %v456_v60 = vadd.f32 %v455_v48, %v454_v43  ;;  %v470_v61 = vadd.f32 %v469_v49, %v446_v31  ;;  %v410_v3 = vrot.slane %v409_v47, 2  ;;  %v3854_v53 = vld [vmem:[#allocation13 + $0x5c0] sm:$0xf] }
  0xca   :  { %v431_v62 = vmul.f32 %v4889_v14, %v401_v51  ;;  %v355_v37 = vpop.f32.mrf.mxu2  ;;  %v462_v0 = vadd.f32 %v461_v54, %v460_v45  ;;  %v432_v2 = vmul.f32 %v4889_v14, %v407_v58  ;;  %v368_v4 = vpop.f32.mrf.mxu3  ;;  %v416_v16 = vrot.slane %v415_v7, 2  ;;  %v3374_v58 = vld [vmem:[#allocation13 + $0x200] sm:$0xf] }
  0xcb   :  { %v465_v1 = vrot.slane %v464_v55, 2  ;;  %v499_v39 = vmul.f32 %v456_v60, %v4889_v14  ;;  %v471_v5 = vrot.slane %v470_v61, 2  ;;  %v411_v11 = vadd.f32 %v410_v3, %v409_v47  ;;  %v4319_v60 = vld [vmem:[#allocation13 + $0x20c] sm:$0xf0]  ;;  %v3502_v37 = vld [vmem:[#allocation13 + $0x300] sm:$0xf] }
  0xcc   :  { %v4942_v6 = vsub.f32 %v4901_v52, %v431_v62  ;;  %v500_v8 = vmul.f32 %v462_v0, %v4889_v14  ;;  %v4947_v10 = vsub.f32 %v4906_v59, %v432_v2  ;;  %v417_v32 = vadd.f32 %v416_v16, %v415_v7  ;;  %v4351_v0 = vld [vmem:[#allocation13 + $0x30c] sm:$0xf0]  ;;  %v3998_v3 = vld [vmem:[#allocation13 + $0x6e0] sm:$0xf] }
  0xcd   :  { %v466_v9 = vadd.f32 %v465_v1, %v464_v55  ;;  %v4949_v12 = vadd.f32 1e-05, %v499_v39  ;;  %v472_v13 = vadd.f32 %v471_v5, %v470_v61  ;;  %v412_v19 = vrot.slane %v411_v11, 1  ;;  %v4439_v55 = vld [vmem:[#allocation13 + $0x5cc] sm:$0xf0] }
  0xce   :  { %v447_v15 = vmul.f32 %v4942_v6, %v4942_v6  ;;  %v4953_v17 = vadd.f32 1e-05, %v500_v8  ;;  %v448_v18 = vmul.f32 %v4947_v10, %v4947_v10  ;;  %v3391_v56 = vor.u32 %v4323_v22, %v3390_v21  ;;  %v4475_v4 = vld [vmem:[#allocation13 + $0x6ec] sm:$0xf0] }
  0xcf   :  { %v467_v52 = vrot.slane %v466_v9, 1  ;;  %4527 = vrsqrt.f32 %v4949_v12  ;;  %v473_v20 = vrot.slane %v472_v13, 1  ;;  %v413_v30 = vadd.f32 %v412_v19, %v411_v11 }
  0xd0   :  { %v475_v59 = vrot.slane %v447_v15, 4  ;;  %4529 = vrsqrt.f32 %v4953_v17  ;;  %v481_v24 = vrot.slane %v448_v18, 4  ;;  %2389 = vmatpush.bf16.msra.mxu2 %v3391_v56  ;;  %v3519_v46 = vor.u32 %v4355_v33, %v3518_v25 }
  0xd1   :  { %v468_v23 = vadd.f32 %v467_v52, %v466_v9  ;;  %v474_v26 = vadd.f32 %v473_v20, %v472_v13  ;;  %v433_v31 = vmul.f32 %v4889_v14, %v413_v30  ;;  %v3727_v63 = vor.u32 %v4407_v38, %v3726_v35 }
  0xd2   :  { %v476_v28 = vadd.f32 %v475_v59, %v447_v15  ;;  %v482_v41 = vadd.f32 %v481_v24, %v448_v18  ;;  %v418_v51 = vrot.slane %v417_v32, 1  ;;  %2402 = vmatpush.bf16.msra.mxu3 %v3519_v46  ;;  %v3855_v5 = vor.u32 %v4439_v55, %v3854_v53  ;;  %v4980_v15 = vld [vmem:[#allocation10] sm:$0xff]  ;;  %v3838_v46 = vld [vmem:[#allocation13 + $0x5a0] sm:$0xf] }
  0xd3   :  { %v501_v40 = vmul.f32 %v468_v23, %v4889_v14  ;;  %v502_v42 = vmul.f32 %v474_v26, %v4889_v14  ;;  %v4967_v49 = vsub.f32 %v4924_v29, %v433_v31  ;;  %2410 = vmatpush.bf16.msrb.mxu0 %v3727_v63  ;;  %v3375_v7 = vor.u32 %v4319_v60, %v3374_v58  ;;  %v4435_v63 = vld [vmem:[#allocation13 + $0x5ac] sm:$0xf0]  ;;  %v3982_v53 = vld [vmem:[#allocation13 + $0x6c0] sm:$0xf] }
  0xd4   :  { %v477_v43 = vrot.slane %v476_v28, 2  ;;  %v483_v45 = vrot.slane %v482_v41, 2  ;;  %v419_v39 = vadd.f32 %v418_v51, %v417_v32  ;;  %2423 = vmatpush.bf16.msrb.mxu1 %v3855_v5  ;;  %v3503_v52 = vor.u32 %v4351_v0, %v3502_v37  ;;  %v4471_v55 = vld [vmem:[#allocation13 + $0x6cc] sm:$0xf0]  ;;  %v4110_v37 = vld [vmem:[#allocation13 + $0x7c0] sm:$0xf] }
  0xd5   :  { %v4962_v36 = vadd.f32 1e-05, %v501_v40  ;;  %v4964_v47 = vpop.eup %4527  ;;  %v4974_v62 = vadd.f32 1e-05, %v502_v42  ;;  %v449_v2 = vmul.f32 %v4967_v49, %v4967_v49  ;;  %2390 = vmatpush.bf16.msra.mxu2 %v3375_v7  ;;  %v3999_v18 = vor.u32 %v4475_v4, %v3998_v3  ;;  %v4126_v40 = vld [vmem:[#allocation13 + $0x7e0] sm:$0xf] }
  0xd6   :  { %v478_v48 = vadd.f32 %v477_v43, %v476_v28  ;;  %v4969_v54 = vpop.eup %4529  ;;  %v516_v61 = vmul.f32 %v4964_v47, %v4949_v12  ;;  %v484_v1 = vadd.f32 %v483_v45, %v482_v41  ;;  %v434_v21 = vmul.f32 %v4889_v14, %v419_v39  ;;  %2403 = vmatpush.bf16.msra.mxu3 %v3503_v52  ;;  %v4507_v42 = vld [vmem:[#allocation13 + $0x7ec] sm:$0xf0]  ;;  %v3710_v43 = vld [vmem:[#allocation13 + $0x4a0] sm:$0xf] }
  0xd7   :  { %4531 = vrsqrt.f32 %v4962_v36  ;;  %v526_v8 = vmul.f32 %v4969_v54, %v4953_v17  ;;  %v487_v13 = vrot.slane %v449_v2, 4  ;;  %v604_v23 = vperm.slane %v4980_v15, 0  ;;  %v4403_v45 = vld [vmem:[#allocation13 + $0x4ac] sm:$0xf0]  ;;  %v3694_v4 = vld [vmem:[#allocation13 + $0x480] sm:$0xf] }
  0xd8   :  { %v479_v29 = vrot.slane %v478_v48, 1  ;;  %v485_v11 = vrot.slane %v484_v1, 1  ;;  %v517_v16 = vmul.f32 %v4964_v47, %v516_v61  ;;  %4533 = vrsqrt.f32 %v4974_v62  ;;  %v4503_v0 = vld [vmem:[#allocation13 + $0x7cc] sm:$0xf0] }
  0xd9   :  { %v488_v59 = vadd.f32 %v487_v13, %v449_v2  ;;  %2435 = vmatpush.bf16.msrb.mxu2 %v3999_v18  ;;  %v605_v24 = vperm.slane %v4980_v15, 1  ;;  %v527_v28 = vmul.f32 %v4969_v54, %v526_v8  ;;  %v606_v35 = vperm.slane %v4980_v15, 2  ;;  %v4399_v39 = vld [vmem:[#allocation13 + $0x48c] sm:$0xf0] }
  0xda   :  { %v480_v9 = vadd.f32 %v479_v29, %v478_v48  ;;  %v486_v20 = vadd.f32 %v485_v11, %v484_v1  ;;  %v518_v26 = vmul.f32 0.5, %v517_v16  ;;  %v4999_v38 = vsub.f32 %v4934_v44, %v434_v21  ;;  %v3822_v11 = vld [vmem:[#allocation13 + $0x580] sm:$0xf]  ;;  %v4431_v13 = vld [vmem:[#allocation13 + $0x58c] sm:$0xf0] }
  0xdb   :  { %v489_v32 = vrot.slane %v488_v59, 2  ;;  %v528_v51 = vmul.f32 0.5, %v527_v28  ;;  %v607_v29 = vperm.slane %v4980_v15, 3  ;;  %v4127_v1 = vor.u32 %v4507_v42, %v4126_v40  ;;  %v3678_v40 = vld [vmem:[#allocation13 + $0x460] sm:$0xf] }
  0xdc   :  { %v503_v19 = vmul.f32 %v480_v9, %v4889_v14  ;;  %v504_v30 = vmul.f32 %v486_v20, %v4889_v14  ;;  %v519_v48 = vsub.f32 1.5, %v518_v26  ;;  %v450_v61 = vmul.f32 %v4999_v38, %v4999_v38  ;;  %v3966_v20 = vld [vmem:[#allocation13 + $0x6a0] sm:$0xf]  ;;  %v4395_v42 = vld [vmem:[#allocation13 + $0x46c] sm:$0xf0] }
  0xdd   :  { %v4986_v22 = vpop.eup %4531  ;;  %v490_v31 = vadd.f32 %v489_v32, %v488_v59  ;;  %v3711_v2 = vor.u32 %v4403_v45, %v3710_v43  ;;  %v3839_v3 = vor.u32 %v4435_v63, %v3838_v46  ;;  %vm522_vm2 = vweird.f32 %v4964_v47  ;;  %2448 = vmatpush.bf16.msrb.mxu3 %v4127_v1  ;;  %v4467_v59 = vld [vmem:[#allocation13 + $0x6ac] sm:$0xf0]  ;;  %v4094_v32 = vld [vmem:[#allocation13 + $0x7a0] sm:$0xf] }
  0xde   :  { %v4990_v25 = vadd.f32 1e-05, %v503_v19  ;;  %v536_v33 = vmul.f32 %v4986_v22, %v4962_v36  ;;  %v5001_v41 = vpop.eup %4533  ;;  %v5003_v56 = vadd.f32 1e-05, %v504_v30  ;;  %v493_v8 = vrot.slane %v450_v61, 4 }
  0xdf   :  { %v546_v58 = vmul.f32 %v5001_v41, %v4974_v62  ;;  %v491_v60 = vrot.slane %v490_v31, 1  ;;  %v3983_v9 = vor.u32 %v4471_v55, %v3982_v53  ;;  %v5016_v16 = vmul.f32 %v4964_v47, %v519_v48  ;;  %2411 = vmatpush.bf16.msrb.mxu0 %v3711_v2  ;;  %2424 = vmatpush.bf16.msrb.mxu1 %v3839_v3  ;;  %v3806_v46 = vld [vmem:[#allocation13 + $0x560] sm:$0xf]  ;;  %v4427_v63 = vld [vmem:[#allocation13 + $0x56c] sm:$0xf0] }
  0xe0   :  { %4535 = vrsqrt.f32 %v4990_v25  ;;  %v537_v44 = vmul.f32 %v4986_v22, %v536_v33  ;;  %v529_v52 = vsub.f32 1.5, %v528_v51  ;;  %v4111_v19 = vor.u32 %v4503_v0, %v4110_v37  ;;  %v4499_v33 = vld [vmem:[#allocation13 + $0x7ac] sm:$0xf0]  ;;  %v3950_v48 = vld [vmem:[#allocation13 + $0x680] sm:$0xf] }
  0xe1   :  { %4537 = vrsqrt.f32 %v5003_v56  ;;  %v492_v7 = vadd.f32 %v491_v60, %v490_v31  ;;  %v547_v26 = vmul.f32 %v5001_v41, %v546_v58  ;;  %v494_v30 = vadd.f32 %v493_v8, %v450_v61  ;;  %2436 = vmatpush.bf16.msrb.mxu2 %v3983_v9  ;;  %v4495_v1 = vld [vmem:[#allocation13 + $0x78c] sm:$0xf0]  ;;  %v3918_v58 = vld [vmem:[#allocation13 + $0x640] sm:$0xf] }
  0xe2   :  { %v5020_v21 = vmul.f32 0.5, %v537_v44  ;;  %vm521_vm3 = vweird.f32 %v4949_v12  ;;  %vm531_vm4 = vweird.f32 %v4953_v17  ;;  %v608_v31 = vperm.slane %v4980_v15, 4  ;;  %v4463_v44 = vld [vmem:[#allocation13 + $0x68c] sm:$0xf0]  ;;  %v4078_v12 = vld [vmem:[#allocation13 + $0x780] sm:$0xf]  ;;  %2449 = vmatpush.bf16.msrb.mxu3 %v4111_v19 }
  0xe3   :  { %v505_v28 = vmul.f32 %v492_v7, %v4889_v14  ;;  %v3695_v45 = vor.u32 %v4399_v39, %v3694_v4  ;;  %vm532_vm5 = vweird.f32 %v4969_v54  ;;  %v609_v55 = vperm.slane %v4980_v15, 5  ;;  %vm5036_vm6 = vmor %vm521_vm3, %vm522_vm2  ;;  %v3662_v7 = vld [vmem:[#allocation13 + $0x440] sm:$0xf]  ;;  %v4391_v8 = vld [vmem:[#allocation13 + $0x44c] sm:$0xf0] }
  0xe4   :  { %v5041_v60 = vmul.f32 %v4969_v54, %v529_v52  ;;  %v495_v37 = vrot.slane %v494_v30, 2  ;;  %v3823_v0 = vor.u32 %v4431_v13, %v3822_v11  ;;  %v524_v2 = vsel %vm5036_vm6, %v4964_v47, %v5016_v16  ;;  %v3790_v11 = vld [vmem:[#allocation13 + $0x540] sm:$0xf]  ;;  %v4423_v13 = vld [vmem:[#allocation13 + $0x54c] sm:$0xf0]  ;;  %vm5060_vm8 = vmor %vm531_vm4, %vm532_vm5 }
  0xe5   :  { %v5043_v61 = vadd.f32 1e-05, %v505_v28  ;;  %2412 = vmatpush.bf16.msrb.mxu0 %v3695_v45  ;;  %v539_v3 = vsub.f32 1.5, %v5020_v21  ;;  %v5050_v4 = vmul.f32 0.5, %v547_v26  ;;  %v3967_v39 = vor.u32 %v4467_v59, %v3966_v20  ;;  %v3934_v21 = vld [vmem:[#allocation13 + $0x660] sm:$0xf] }
  0xe6   :  { %v5012_v5 = vpop.eup %4535  ;;  %v496_v52 = vadd.f32 %v495_v37, %v494_v30  ;;  %2425 = vmatpush.bf16.msrb.mxu1 %v3823_v0  ;;  %v3679_v19 = vor.u32 %v4395_v42, %v3678_v40  ;;  %vm541_vm7 = vweird.f32 %v4962_v36  ;;  %v3807_v47 = vor.u32 %v4427_v63, %v3806_v46  ;;  %v4459_v26 = vld [vmem:[#allocation13 + $0x66c] sm:$0xf0]  ;;  %v3646_v46 = vld [vmem:[#allocation13 + $0x420] sm:$0xf] }
  0xe7   :  { %v556_v18 = vmul.f32 %v5012_v5, %v4990_v25  ;;  %v5024_v43 = vpop.eup %4537  ;;  %2437 = vmatpush.bf16.msrb.mxu2 %v3967_v39  ;;  %v3951_v16 = vor.u32 %v4463_v44, %v3950_v48  ;;  %4539 = vrsqrt.f32 %v5043_v61  ;;  %v4079_v30 = vor.u32 %v4495_v1, %v4078_v12  ;;  %v4491_v40 = vld [vmem:[#allocation13 + $0x76c] sm:$0xf0]  ;;  %v3774_v12 = vld [vmem:[#allocation13 + $0x520] sm:$0xf] }
  0xe8   :  { %v566_v53 = vmul.f32 %v5024_v43, %v5003_v56  ;;  %v497_v59 = vrot.slane %v496_v52, 1  ;;  %v595_v42 = vmul.f32 %v524_v2, %v4899_v50  ;;  %v534_v17 = vsel %vm5060_vm8, %v4969_v54, %v5041_v60  ;;  %v4387_v63 = vld [vmem:[#allocation13 + $0x42c] sm:$0xf0] }
  0xe9   :  { %v557_v51 = vmul.f32 %v5012_v5, %v556_v18  ;;  %v4095_v18 = vor.u32 %v4499_v33, %v4094_v32  ;;  %2413 = vmatpush.bf16.msrb.mxu0 %v3679_v19  ;;  %v3663_v32 = vor.u32 %v4391_v8, %v3662_v7  ;;  %v4062_v33 = vld [vmem:[#allocation13 + $0x760] sm:$0xf]  ;;  %vm542_vm9 = vweird.f32 %v4986_v22  ;;  %v4419_v54 = vld [vmem:[#allocation13 + $0x52c] sm:$0xf0] }
  0xea   :  { %v567_v9 = vmul.f32 %v5024_v43, %v566_v53  ;;  %v549_v45 = vsub.f32 1.5, %v5050_v4  ;;  %v5073_v48 = vmul.f32 %v4986_v22, %v539_v3  ;;  %v498_v53 = vadd.f32 %v497_v59, %v496_v52  ;;  %2426 = vmatpush.bf16.msrb.mxu1 %v3807_v47  ;;  %v4455_v60 = vld [vmem:[#allocation13 + $0x64c] sm:$0xf0]  ;;  %v4046_v3 = vld [vmem:[#allocation13 + $0x740] sm:$0xf]  ;;  %vm5089_vm13 = vmor %vm541_vm7, %vm542_vm9 }
  0xeb   :  { %v5054_v28 = vmul.f32 0.5, %v557_v51  ;;  %2450 = vmatpush.bf16.msrb.mxu3 %v4095_v18  ;;  %v3791_v44 = vor.u32 %v4423_v13, %v3790_v11  ;;  %vm551_vm10 = vweird.f32 %v4974_v62  ;;  %vm552_vm11 = vweird.f32 %v5001_v41  ;;  %2438 = vmatpush.bf16.msrb.mxu2 %v3951_v16  ;;  %v4487_v4 = vld [vmem:[#allocation13 + $0x74c] sm:$0xf0]  ;;  %v3630_v52 = vld [vmem:[#allocation13 + $0x400] sm:$0xf] }
  0xec   :  { %v568_v51 = vmul.f32 0.5, %v567_v9  ;;  %vm561_vm12 = vweird.f32 %v4990_v25  ;;  %v3935_v50 = vor.u32 %v4459_v26, %v3934_v21  ;;  %v506_v0 = vmul.f32 %v498_v53, %v4889_v14  ;;  %v4383_v18 = vld [vmem:[#allocation13 + $0x40c] sm:$0xf0]  ;;  %v3758_v47 = vld [vmem:[#allocation13 + $0x500] sm:$0xf]  ;;  %vm5122_vm0 = vmor %vm551_vm10, %vm552_vm11 }
  0xed   :  { %v559_v37 = vsub.f32 1.5, %v5054_v28  ;;  %2414 = vmatpush.bf16.msrb.mxu0 %v3663_v32  ;;  %v4063_v1 = vor.u32 %v4491_v40, %v4062_v33  ;;  %v3647_v2 = vor.u32 %v4387_v63, %v3646_v46  ;;  %v5082_v39 = vmul.f32 %v604_v23, %v595_v42  ;;  %v5094_v11 = vpop.eup %4539  ;;  %v4415_v16 = vld [vmem:[#allocation13 + $0x50c] sm:$0xf0]  ;;  %v3902_v32 = vld [vmem:[#allocation13 + $0x620] sm:$0xf]  ;;  %v5113_v42 = vld [vmem:[#allocation12] sm:$0xff] }
  0xee   :  { %v596_v7 = vmul.f32 %v534_v17, %v4904_v57  ;;  %v610_v9 = vperm.slane %v4980_v15, 6  ;;  %v653_v19 = vlaneseq  ;;  %v544_v57 = vsel %vm5089_vm13, %v4986_v22, %v5073_v48  ;;  %2427 = vmatpush.bf16.msrb.mxu1 %v3791_v44  ;;  %v4451_v33 = vld [vmem:[#allocation13 + $0x62c] sm:$0xf0]  ;;  %v4030_v44 = vld [vmem:[#allocation13 + $0x720] sm:$0xf] }
  0xef   :  { %2451 = vmatpush.bf16.msrb.mxu3 %v4079_v30  ;;  %v550_v23 = vmul.f32 %v5001_v41, %v549_v45  ;;  %v569_v13 = vsub.f32 1.5, %v568_v51  ;;  %v3775_v36 = vor.u32 %v4419_v54, %v3774_v12  ;;  %vm562_vm14 = vweird.f32 %v5012_v5  ;;  %2439 = vmatpush.bf16.msrb.mxu2 %v3935_v50  ;;  %v4483_v12 = vld [vmem:[#allocation13 + $0x72c] sm:$0xf0]  ;;  %v5199_v46 = vld [vmem:[#allocation13 + $0xf0] sm:$0xf0] }
  0xf0   :  { %v3919_v28 = vor.u32 %v4455_v60, %v3918_v58  ;;  %v654_v21 = vshrl.u32 %v653_v19, 7  ;;  %v5105_v26 = vand.u32 127, %v653_v19  ;;  %v560_v22 = vmul.f32 %v5012_v5, %v559_v37  ;;  %vm5137_vm1 = vmor %vm561_vm12, %vm562_vm14  ;;  %v3886_v37 = vld [vmem:[#allocation13 + $0x600] sm:$0xf]  ;;  %v4479_v8 = vld [vmem:[#allocation13 + $0x70c] sm:$0xf0] }
  0xf1   :  { %v5108_v20 = vadd.f32 1e-05, %v506_v0  ;;  %2415 = vmatpush.bf16.msrb.mxu0 %v3647_v2  ;;  %v4047_v59 = vor.u32 %v4487_v4, %v4046_v3  ;;  %v3631_v30 = vor.u32 %v4383_v18, %v3630_v52  ;;  %vm572_vm15 = vweird.f32 %v5024_v43  ;;  %v4447_v3 = vld [vmem:[#allocation13 + $0x60c] sm:$0xf0]  ;;  %v4014_v4 = vld [vmem:[#allocation13 + $0x700] sm:$0xf] }
  0xf2   :  { %v576_v40 = vmul.f32 %v5094_v11, %v5043_v61  ;;  %v5115_v17 = vmul.u32 2654435761, %v654_v21  ;;  %v665_v45 = vmul.u32 2246822519, %v5105_v26  ;;  %v570_v63 = vmul.f32 %v5024_v43, %v569_v13  ;;  %2428 = vmatpush.bf16.msrb.mxu1 %v3775_v36 }
  0xf3   :  { %2452 = vmatpush.bf16.msrb.mxu3 %v4063_v1  ;;  %v3759_v48 = vor.u32 %v4415_v16, %v3758_v47  ;;  %v5127_v51 = vstv %s681_s2  ;;  %v657_v53 = vadd.s32 128, %v5105_v26  ;;  %v554_v50 = vsel %vm5122_vm0, %v5001_v41, %v550_v23  ;;  %2440 = vmatpush.bf16.msrb.mxu2 %v3919_v28 }
  0xf4   :  { %vm571_vm2 = vweird.f32 %v5003_v56  ;;  %v5143_v54 = vadd.s32 %v665_v45, %v5115_v17  ;;  %v3903_v58 = vor.u32 %v4451_v33, %v3902_v32  ;;  %v564_v60 = vsel %vm5137_vm1, %v5012_v5, %v560_v22 }
  0xf5   :  { %vm5150_vm3 = vmor %vm571_vm2, %vm572_vm15  ;;  %4541 = vrsqrt.f32 %v5108_v20  ;;  %2416 = vmatpush.bf16.msrb.mxu0 %v3631_v30  ;;  %v629_v25 = vperm.slane %v5113_v42, 0  ;;  %v666_v56 = vmul.u32 2246822519, %v657_v53  ;;  %v597_v0 = vmul.f32 %v544_v57, %v4920_v27 }
  0xf6   :  { %v577_v1 = vmul.f32 %v5094_v11, %v576_v40  ;;  %v683_v5 = vxor.u32 %v5127_v51, %v5143_v54  ;;  %v4031_v2 = vor.u32 %v4483_v12, %v4030_v44  ;;  %v621_v52 = vmul.f32 %v605_v24, %v596_v7  ;;  %2429 = vmatpush.bf16.msrb.mxu1 %v3759_v48  ;;  %v5208_v12 = vld [vmem:[#allocation13 + $0x1f0] sm:$0xf0] }
  0xf7   :  { %2453 = vmatpush.bf16.msrb.mxu3 %v4047_v59  ;;  %v598_v18 = vmul.f32 %v554_v50, %v4927_v34  ;;  %v574_v19 = vsel %vm5150_vm3, %v5024_v43, %v570_v63  ;;  %v5167_v27 = vadd.s32 %v666_v56, %v5115_v17  ;;  %v599_v57 = vmul.f32 %v564_v60, %v4942_v6  ;;  %v5201_v63 = vld [vmem:[#allocation13 + $0x1e4] sm:$0xf] }
  0xf8   :  { %v611_v23 = vperm.slane %v4980_v15, 7  ;;  %v691_v13 = vshrl.u32 %v683_v5, 16  ;;  %2441 = vmatpush.bf16.msrb.mxu2 %v3903_v58  ;;  %v3887_v36 = vor.u32 %v4447_v3, %v3886_v37  ;;  %v5172_v28 = vadd.f32 %v629_v25, %v5082_v39 }
  0xf9   :  { %v684_v34 = vxor.u32 %v5127_v51, %v5167_v27  ;;  %v4015_v24 = vor.u32 %v4479_v8, %v4014_v4  ;;  %v658_v43 = vadd.s32 256, %v5105_v26  ;;  %v5179_v7 = vmul.f32 %v606_v35, %v597_v0 }
  0xfa   :  { %v600_v6 = vmul.f32 %v574_v19, %v4947_v10  ;;  %v578_v47 = vmul.f32 0.5, %v577_v1  ;;  %v699_v16 = vxor.u32 %v691_v13, %v683_v5  ;;  %v630_v39 = vperm.slane %v5113_v42, 1  ;;  %v5192_v10 = vld [vmem:[#allocation13 + $0xe4] sm:$0xf]  ;;  %v5230_v5 = vld [vmem:[#allocation13 + $0xd0] sm:$0xf0] }
  0xfb   :  { %2454 = vmatpush.bf16.msrb.mxu3 %v4031_v2  ;;  %v5182_v21 = vpop.eup %4541  ;;  %v692_v22 = vshrl.u32 %v684_v34, 16  ;;  %v667_v59 = vmul.u32 2246822519, %v658_v43  ;;  %v659_v30 = vadd.s32 384, %v5105_v26  ;;  %v5188_v32 = vmul.f32 %v607_v29, %v598_v18  ;;  %v5228_v1 = vld [vmem:[#allocation13 + $0xc4] sm:$0xf] }
  0xfc   :  { %vm581_vm4 = vweird.f32 %v5043_v61  ;;  %vm582_vm5 = vweird.f32 %v5094_v11  ;;  %v707_v35 = vmul.u32 2146121005, %v699_v16  ;;  %2442 = vmatpush.bf16.msrb.mxu2 %v3887_v36  ;;  %v5196_v33 = vmul.f32 %v608_v31, %v599_v57  ;;  %v5236_v18 = vld [vmem:[#allocation13 + $0x1d0] sm:$0xf0] }
  0xfd   :  { %v787_v40 = vmul.f32 2.0, %v5172_v28  ;;  %v700_v45 = vxor.u32 %v692_v22, %v684_v34  ;;  %v5204_v29 = vadd.s32 %v667_v59, %v5115_v17  ;;  %v579_v48 = vsub.f32 1.5, %v578_v47  ;;  %vm5249_vm8 = vmor %vm581_vm4, %vm582_vm5 }
  0xfe   :  { %v586_v53 = vmul.f32 %v5182_v21, %v5108_v20  ;;  %v715_v44 = vshrl.u32 %v707_v35, 15  ;;  %v668_v31 = vmul.u32 2246822519, %v659_v30  ;;  %v5212_v50 = vmul.f32 %v609_v55, %v600_v6 }
  0xff   :  { %2455 = vmatpush.bf16.msrb.mxu3 %v4015_v24  ;;  %v5214_v62 = vadd.f32 %v630_v39, %v621_v52  ;;  %v708_v58 = vmul.u32 2146121005, %v700_v45  ;;  %v685_v60 = vxor.u32 %v5127_v51, %v5204_v29  ;;  %vm771_vm6 = vcmp.gt.f32.partialorder %v5172_v28, 0.0  ;;  %v5234_v52 = vld [vmem:[#allocation13 + $0x1c4] sm:$0xf] }
 0x100   :  { %v723_v41 = vxor.u32 %v715_v44, %v707_v35  ;;  %v3235_v25 = vor.u32 %v5192_v10, %v5199_v46  ;;  %v5222_v56 = vadd.s32 %v668_v31, %v5115_v17  ;;  %v5224_v37 = vpack.c.bf16 %v787_v40, %v787_v40 }
 0x101   :  { %v716_v0 = vshrl.u32 %v708_v58, 15  ;;  %v3363_v55 = vor.u32 %v5201_v63, %v5208_v12  ;;  %v693_v2 = vshrl.u32 %v685_v60, 16  ;;  %v580_v3 = vmul.f32 %v5094_v11, %v579_v48  ;;  %v5339_v63 = vld [vmem:[#allocation13 + $0x2d0] sm:$0xf0]  ;;  %v4269_v12 = vld [vmem:[#allocation13 + $0x84] sm:$0xf] }
 0x102   :  { %v587_v4 = vmul.f32 %v5182_v21, %v586_v53  ;;  %v731_v8 = vmul.u32 2221713035, %v723_v41  ;;  %v686_v19 = vxor.u32 %v5127_v51, %v5222_v56  ;;  %vm772_vm7 = vcmp.gt.f32.partialorder %v5214_v62, 0.0 }
 0x103   :  { %v724_v57 = vxor.u32 %v716_v0, %v708_v58  ;;  %v788_v13 = vmul.f32 2.0, %v5214_v62  ;;  %v701_v36 = vxor.u32 %v693_v2, %v685_v60  ;;  %v3219_v24 = vor.u32 %v5228_v1, %v5230_v5  ;;  %v5346_v5 = vld [vmem:[#allocation13 + $0x3c4] sm:$0xf] }
 0x104   :  { %v739_v34 = vshrl.u32 %v731_v8, 16  ;;  %v631_v43 = vperm.slane %v5113_v42, 2  ;;  %v694_v6 = vshrl.u32 %v686_v19, 16  ;;  %v3347_v39 = vor.u32 %v5234_v52, %v5236_v18 }
 0x105   :  { %v732_v16 = vmul.u32 2221713035, %v724_v57  ;;  %v709_v22 = vmul.u32 2146121005, %v701_v36  ;;  %v632_v59 = vperm.slane %v5113_v42, 3  ;;  %v584_v30 = vsel %vm5249_vm8, %v5094_v11, %v580_v3 }
 0x106   :  { %v588_v35 = vmul.f32 0.5, %v587_v4  ;;  %v747_v40 = vxor.u32 %v739_v34, %v731_v8  ;;  %v702_v45 = vxor.u32 %v694_v6, %v686_v19  ;;  %v5259_v61 = vpack.c.bf16 %v788_v13, %v788_v13  ;;  %v5270_v3 = vld [vmem:[#allocation13 + $0x2e4] sm:$0xf]  ;;  %v5277_v34 = vld [vmem:[#allocation13 + $0x2f0] sm:$0xf0] }
 0x107   :  { %v740_v48 = vshrl.u32 %v732_v16, 16  ;;  %v717_v53 = vshrl.u32 %v709_v22, 15  ;;  %v660_v44 = vadd.s32 512, %v5105_v26  ;;  %vm591_vm9 = vweird.f32 %v5108_v20 }
 0x108   :  { %v755_v31 = vshrl.u32 %v747_v40, 31  ;;  %v5264_v58 = vadd.f32 %v631_v43, %v5179_v7  ;;  %v710_v60 = vmul.u32 2146121005, %v702_v45  ;;  %v661_v41 = vadd.s32 640, %v5105_v26 }
 0x109   :  { %v748_v0 = vxor.u32 %v740_v48, %v732_v16  ;;  %v725_v11 = vxor.u32 %v717_v53, %v709_v22  ;;  %v5268_v2 = vadd.f32 %v632_v59, %v5188_v32  ;;  %v669_v4 = vmul.u32 2246822519, %v660_v44  ;;  %v5293_v59 = vld [vmem:[#allocation13 + $0x3f0] sm:$0xf0]  ;;  %v4273_v48 = vld [vmem:[#allocation13 + $0xa4] sm:$0xf] }
 0x10a   :  { %v589_v8 = vsub.f32 1.5, %v588_v35  ;;  %vm763_vm10 = vcmp.eq.s32.totalorder %v755_v31, 0  ;;  %v718_v19 = vshrl.u32 %v710_v60, 15  ;;  %v670_v57 = vmul.u32 2246822519, %v661_v41 }
 0x10b   :  { %v5273_v13 = vmul.f32 %v584_v30, %v4967_v49  ;;  %vm779_vm11 = vmand %vm763_vm10, %vm771_vm6  ;;  %v756_v7 = vshrl.u32 %v748_v0, 31  ;;  %v733_v36 = vmul.u32 2221713035, %v725_v11  ;;  %v677_v32 = vadd.s32 %v669_v4, %v5115_v17  ;;  %v5286_v49 = vld [vmem:[#allocation13 + $0x3e4] sm:$0xf] }
 0x10c   :  { %vm592_vm12 = vweird.f32 %v5182_v21  ;;  %vm5281_vm13 = vmpackc.low %vm779_vm11, %vm779_vm11  ;;  %v789_v6 = vmul.f32 2.0, %v5264_v58  ;;  %v726_v47 = vxor.u32 %v718_v19, %v710_v60  ;;  %v678_v28 = vadd.s32 %v670_v57, %v5115_v17  ;;  %v3200_v53 = vld [vmem:[#allocation13 + $0xb0] sm:$0xf0] }
 0x10d   :  { %4142 = vmatmul.msk.bf16.vlgmr.msra.gmra.mxu0 %vm5281_vm13, %v5224_v37  ;;  %vm764_vm14 = vcmp.eq.s32.totalorder %v756_v7, 0  ;;  %v741_v16 = vshrl.u32 %v733_v36, 16  ;;  %v790_v22 = vmul.f32 2.0, %v5268_v2  ;;  %v687_v30 = vxor.u32 %v5127_v51, %v677_v32  ;;  %vm5322_vm3 = vmor %vm591_vm9, %vm592_vm12  ;;  %v3328_v19 = vld [vmem:[#allocation13 + $0x1b0] sm:$0xf0] }
 0x10e   :  { %v590_v35 = vmul.f32 %v5182_v21, %v589_v8  ;;  %vm780_vm15 = vmand %vm764_vm14, %vm772_vm7  ;;  %2461 = vmatpush.bf16.msra.mxu0 %v3235_v25  ;;  %v734_v40 = vmul.u32 2221713035, %v726_v47  ;;  %v3491_v45 = vor.u32 %v5270_v3, %v5277_v34  ;;  %v688_v44 = vxor.u32 %v5127_v51, %v678_v28  ;;  %v4305_v8 = vld [vmem:[#allocation13 + $0x1a4] sm:$0xf] }
 0x10f   :  { %vm5305_vm0 = vmpackc.low %vm780_vm15, %vm780_vm15  ;;  %v749_v60 = vxor.u32 %v741_v16, %v733_v36  ;;  %vm773_vm1 = vcmp.gt.f32.partialorder %v5264_v58, 0.0  ;;  %vm774_vm2 = vcmp.gt.f32.partialorder %v5268_v2, 0.0  ;;  %v695_v62 = vshrl.u32 %v687_v30, 16  ;;  %v5337_v36 = vld [vmem:[#allocation13 + $0x2c4] sm:$0xf] }
 0x110   :  { %4145 = vmatmul.msk.bf16.vlgmr.msra.gmra.mxu1 %vm5305_vm0, %v5259_v61  ;;  %v5314_v10 = vpack.c.bf16 %v789_v6, %v789_v6  ;;  %v742_v46 = vshrl.u32 %v734_v40, 16  ;;  %v3619_v25 = vor.u32 %v5286_v49, %v5293_v59  ;;  %v696_v41 = vshrl.u32 %v688_v44, 16  ;;  %v5357_v58 = vld [vmem:[#allocation13 + $0x3d0] sm:$0xf0] }
 0x111   :  { %2474 = vmatpush.bf16.msra.mxu1 %v3363_v55  ;;  %v757_v11 = vshrl.u32 %v749_v60, 31  ;;  %v5329_v3 = vpack.c.bf16 %v790_v22, %v790_v22  ;;  %v3203_v4 = vor.u32 %v4273_v48, %v3200_v53  ;;  %v703_v57 = vxor.u32 %v695_v62, %v687_v30  ;;  %v3184_v55 = vld [vmem:[#allocation13 + $0x90] sm:$0xf0]  ;;  %v4301_v48 = vld [vmem:[#allocation13 + $0x184] sm:$0xf] }
 0x112   :  { %v594_v7 = vsel %vm5322_vm3, %v5182_v21, %v590_v35  ;;  %2462 = vmatpush.bf16.msra.mxu0 %v3219_v24  ;;  %v750_v20 = vxor.u32 %v742_v46, %v734_v40  ;;  %v704_v34 = vxor.u32 %v696_v41, %v688_v44  ;;  %v662_v32 = vadd.s32 768, %v5105_v26  ;;  %v3312_v53 = vld [vmem:[#allocation13 + $0x190] sm:$0xf0]  ;;  %v4265_v62 = vld [vmem:[#allocation13 + $0x64] sm:$0xf] }
 0x113   :  { %vm765_vm4 = vcmp.eq.s32.totalorder %v757_v11, 0  ;;  %v633_v6 = vperm.slane %v5113_v42, 4  ;;  %v711_v47 = vmul.u32 2146121005, %v703_v57  ;;  %v663_v21 = vadd.s32 896, %v5105_v26 }
 0x114   :  { %vm781_vm5 = vmand %vm765_vm4, %vm773_vm1  ;;  %v758_v1 = vshrl.u32 %v750_v20, 31  ;;  %v634_v24 = vperm.slane %v5113_v42, 5  ;;  %v712_v28 = vmul.u32 2146121005, %v704_v34  ;;  %v671_v16 = vmul.u32 2246822519, %v662_v32 }
 0x115   :  { %v602_v22 = vmul.f32 %v594_v7, %v4999_v38  ;;  %2475 = vmatpush.bf16.msra.mxu1 %v3347_v39  ;;  %vm5353_vm6 = vmpackc.low %vm781_vm5, %vm781_vm5  ;;  %v3331_v26 = vor.u32 %v4305_v8, %v3328_v19  ;;  %v719_v35 = vshrl.u32 %v711_v47, 15  ;;  %v672_v40 = vmul.u32 2246822519, %v663_v21  ;;  %v3168_v46 = vld [vmem:[#allocation13 + $0x70] sm:$0xf0] }
 0x116   :  { %4148 = vmatmul.msk.bf16.vlgmr.msra.gmra.mxu2 %vm5353_vm6, %v5314_v10  ;;  %vm766_vm7 = vcmp.eq.s32.totalorder %v758_v1, 0  ;;  %2463 = vmatpush.bf16.msra.mxu0 %v3203_v4  ;;  %v3187_v38 = vor.u32 %v4269_v12, %v3184_v55  ;;  %v720_v52 = vshrl.u32 %v712_v28, 15  ;;  %v679_v18 = vadd.s32 %v671_v16, %v5115_v17  ;;  %v3456_v11 = vld [vmem:[#allocation13 + $0x2b0] sm:$0xf0]  ;;  %v4297_v7 = vld [vmem:[#allocation13 + $0x164] sm:$0xf] }
 0x117   :  { %vm782_vm8 = vmand %vm766_vm7, %vm774_vm2  ;;  %2487 = vmatpush.bf16.msra.mxu2 %v3491_v45  ;;  %v3475_v39 = vor.u32 %v5337_v36, %v5339_v63  ;;  %v5368_v44 = vadd.f32 %v633_v6, %v5196_v33  ;;  %v727_v60 = vxor.u32 %v719_v35, %v711_v47  ;;  %v680_v41 = vadd.s32 %v672_v40, %v5115_v17  ;;  %v4337_v45 = vld [vmem:[#allocation13 + $0x2a4] sm:$0xf]  ;;  %v3584_v19 = vld [vmem:[#allocation13 + $0x3b0] sm:$0xf0] }
 0x118   :  { %v5374_v0 = vmul.f32 %v610_v9, %v5273_v13  ;;  %vm5376_vm9 = vmpackc.low %vm782_vm8, %vm782_vm8  ;;  %v5381_v4 = vadd.f32 %v634_v24, %v5212_v50  ;;  %v728_v33 = vxor.u32 %v720_v52, %v712_v28  ;;  %v689_v8 = vxor.u32 %v5127_v51, %v679_v18  ;;  %v4369_v13 = vld [vmem:[#allocation13 + $0x3a4] sm:$0xf]  ;;  %v3296_v20 = vld [vmem:[#allocation13 + $0x170] sm:$0xf0] }
 0x119   :  { %4151 = vmatmul.msk.bf16.vlgmr.msra.gmra.mxu3 %vm5376_vm9, %v5329_v3  ;;  %2476 = vmatpush.bf16.msra.mxu1 %v3331_v26  ;;  %v3603_v9 = vor.u32 %v5346_v5, %v5357_v58  ;;  %v3315_v17 = vor.u32 %v4301_v48, %v3312_v53  ;;  %v735_v57 = vmul.u32 2221713035, %v727_v60  ;;  %v690_v50 = vxor.u32 %v5127_v51, %v680_v41  ;;  %v4333_v55 = vld [vmem:[#allocation13 + $0x284] sm:$0xf]  ;;  %v3152_v51 = vld [vmem:[#allocation13 + $0x50] sm:$0xf0] }
 0x11a   :  { %v5392_v36 = vmul.f32 %v611_v23, %v602_v22  ;;  %2500 = vmatpush.bf16.msra.mxu3 %v3619_v25  ;;  %2464 = vmatpush.bf16.msra.mxu0 %v3187_v38  ;;  %v736_v63 = vmul.u32 2221713035, %v728_v33  ;;  %v3171_v12 = vor.u32 %v4265_v62, %v3168_v46  ;;  %v4261_v34 = vld [vmem:[#allocation13 + $0x44] sm:$0xf]  ;;  %v697_v32 = vshrl.u32 %v689_v8, 16 }
 0x11b   :  { %2488 = vmatpush.bf16.msra.mxu2 %v3475_v39  ;;  %v3459_v6 = vor.u32 %v4337_v45, %v3456_v11  ;;  %v743_v47 = vshrl.u32 %v735_v57, 16  ;;  %vm775_vm10 = vcmp.gt.f32.partialorder %v5368_v44, 0.0  ;;  %v698_v21 = vshrl.u32 %v690_v50, 16  ;;  %v3440_v49 = vld [vmem:[#allocation13 + $0x290] sm:$0xf0] }
 0x11c   :  { %v791_v15 = vmul.f32 2.0, %v5368_v44  ;;  %v744_v23 = vshrl.u32 %v736_v63, 16  ;;  %vm776_vm11 = vcmp.gt.f32.partialorder %v5381_v4, 0.0  ;;  %v705_v59 = vxor.u32 %v697_v32, %v689_v8  ;;  %v4365_v24 = vld [vmem:[#allocation13 + $0x384] sm:$0xf] }
 0x11d   :  { %2477 = vmatpush.bf16.msra.mxu1 %v3315_v17  ;;  %v751_v25 = vxor.u32 %v743_v47, %v735_v57  ;;  %v792_v1 = vmul.f32 2.0, %v5381_v4  ;;  %v3299_v5 = vor.u32 %v4297_v7, %v3296_v20  ;;  %v3568_v28 = vld [vmem:[#allocation13 + $0x390] sm:$0xf0]  ;;  %v4293_v16 = vld [vmem:[#allocation13 + $0x144] sm:$0xf]  ;;  %v706_v26 = vxor.u32 %v698_v21, %v690_v50 }
 0x11e   :  { %v3280_v22 = vld [vmem:[#allocation13 + $0x150] sm:$0xf0]  ;;  %2501 = vmatpush.bf16.msra.mxu3 %v3603_v9  ;;  %v3587_v58 = vor.u32 %v4369_v13, %v3584_v19  ;;  %v752_v35 = vxor.u32 %v744_v23, %v736_v63  ;;  %2465 = vmatpush.bf16.msra.mxu0 %v3171_v12  ;;  %v3155_v40 = vor.u32 %v4261_v34, %v3152_v51  ;;  %v713_v38 = vmul.u32 2146121005, %v705_v59  ;;  %v4329_v48 = vld [vmem:[#allocation13 + $0x264] sm:$0xf] }
 0x11f   :  { %v3424_v53 = vld [vmem:[#allocation13 + $0x270] sm:$0xf0]  ;;  %2489 = vmatpush.bf16.msra.mxu2 %v3459_v6  ;;  %v759_v52 = vshrl.u32 %v751_v25, 31  ;;  %v3443_v18 = vor.u32 %v4333_v55, %v3440_v49  ;;  %v635_v39 = vperm.slane %v5113_v42, 6  ;;  %v714_v60 = vmul.u32 2146121005, %v706_v26 }
 0x120   :  { %v4257_v62 = vld [vmem:[#allocation13 + $0x24] sm:$0xf]  ;;  %v5402_v46 = vpack.c.bf16 %v791_v15, %v791_v15  ;;  %v760_v41 = vshrl.u32 %v752_v35, 31  ;;  %v721_v45 = vshrl.u32 %v713_v38, 15  ;;  %v636_v11 = vperm.slane %v5113_v42, 7 }
 0x121   :  { %v3136_v33 = vld [vmem:[#allocation13 + $0x30] sm:$0xf0]  ;;  %vm767_vm12 = vcmp.eq.s32.totalorder %v759_v52, 0  ;;  %2478 = vmatpush.bf16.msra.mxu1 %v3299_v5  ;;  %v3283_v8 = vor.u32 %v4293_v16, %v3280_v22  ;;  %v722_v9 = vshrl.u32 %v714_v60, 15  ;;  %v4361_v17 = vld [vmem:[#allocation13 + $0x364] sm:$0xf]  ;;  %v5411_v57 = vpack.c.bf16 %v792_v1, %v792_v1 }
 0x122   :  { %v3552_v13 = vld [vmem:[#allocation13 + $0x370] sm:$0xf0]  ;;  %2502 = vmatpush.bf16.msra.mxu3 %v3587_v58  ;;  %vm783_vm14 = vmand %vm767_vm12, %vm775_vm10  ;;  %vm5407_vm15 = vcmp.eq.s32.totalorder %v760_v41, 0  ;;  %v3571_v7 = vor.u32 %v4365_v24, %v3568_v28  ;;  %2466 = vmatpush.bf16.msra.mxu0 %v3155_v40  ;;  %v729_v42 = vxor.u32 %v721_v45, %v713_v38  ;;  %v4289_v20 = vld [vmem:[#allocation13 + $0x124] sm:$0xf]  ;;  %v5418_v12 = vadd.f32 %v635_v39, %v5374_v0 }
 0x123   :  { %v3264_v50 = vld [vmem:[#allocation13 + $0x130] sm:$0xf0]  ;;  %vm5413_vm1 = vmpackc.low %vm783_vm14, %vm783_vm14  ;;  %2490 = vmatpush.bf16.msra.mxu2 %v3443_v18  ;;  %v730_v44 = vxor.u32 %v722_v9, %v714_v60  ;;  %v3427_v55 = vor.u32 %v4329_v48, %v3424_v53  ;;  %v3139_v34 = vor.u32 %v4257_v62, %v3136_v33  ;;  %v4325_v32 = vld [vmem:[#allocation13 + $0x244] sm:$0xf]  ;;  %v5428_v51 = vadd.f32 %v636_v11, %v5392_v36 }
 0x124   :  { %v3408_v6 = vld [vmem:[#allocation13 + $0x250] sm:$0xf0]  ;;  %4154 = vmatmul.msk.bf16.vlgmr.msrb.gmra.mxu0 %vm5413_vm1, %v5402_v46  ;;  %vm784_vm2 = vmand %vm5407_vm15, %vm776_vm11  ;;  %v737_v47 = vmul.u32 2221713035, %v729_v42  ;;  %v4253_v0 = vld [vmem:[#allocation13 + $0x4] sm:$0xf]  ;;  %v3267_v49 = vor.u32 %v4289_v20, %v3264_v50  ;;  %v3555_v5 = vor.u32 %v4361_v17, %v3552_v13 }
 0x125   :  { %v3120_v21 = vld [vmem:[#allocation13 + $0x10] sm:$0xf0]  ;;  %vm5430_vm3 = vmpackc.low %vm784_vm2, %vm784_vm2  ;;  %2479 = vmatpush.bf16.msra.mxu1 %v3283_v8  ;;  %v738_v23 = vmul.u32 2221713035, %v730_v44  ;;  %v4357_v59 = vld [vmem:[#allocation13 + $0x344] sm:$0xf]  ;;  %v3411_v26 = vor.u32 %v4325_v32, %v3408_v6 }
 0x126   :  { %v3536_v25 = vld [vmem:[#allocation13 + $0x350] sm:$0xf0]  ;;  %v4409_v1 = vld [vmem:[#allocation13 + $0x4e4] sm:$0xf]  ;;  %4157 = vmatmul.msk.bf16.vlgmr.msrb.gmra.mxu1 %vm5430_vm3, %v5411_v57  ;;  %2503 = vmatpush.bf16.msra.mxu3 %v3571_v7  ;;  %v745_v36 = vshrl.u32 %v737_v47, 16  ;;  %v793_v16 = vmul.f32 2.0, %v5418_v12  ;;  %v3123_v58 = vor.u32 %v4253_v0, %v3120_v21 }
 0x127   :  { %v3744_v4 = vld [vmem:[#allocation13 + $0x4f0] sm:$0xf0]  ;;  %v4285_v24 = vld [vmem:[#allocation13 + $0x104] sm:$0xf]  ;;  %v746_v22 = vshrl.u32 %v738_v23, 16  ;;  %2491 = vmatpush.bf16.msra.mxu2 %v3427_v55  ;;  %2467 = vmatpush.bf16.msra.mxu0 %v3139_v34  ;;  %v794_v48 = vmul.f32 2.0, %v5428_v51  ;;  %v3539_v11 = vor.u32 %v4357_v59, %v3536_v25 }
 0x128   :  { %v3248_v28 = vld [vmem:[#allocation13 + $0x110] sm:$0xf0]  ;;  %v4441_v35 = vld [vmem:[#allocation13 + $0x5e4] sm:$0xf]  ;;  %v753_v38 = vxor.u32 %v745_v36, %v737_v47  ;;  %v3747_v53 = vor.u32 %v4409_v1, %v3744_v4  ;;  %vm777_vm4 = vcmp.gt.f32.partialorder %v5418_v12, 0.0  ;;  %v5440_v17 = vpack.c.bf16 %v793_v16, %v793_v16 }
 0x129   :  { %v3872_v40 = vld [vmem:[#allocation13 + $0x5f0] sm:$0xf0]  ;;  %v4321_v52 = vld [vmem:[#allocation13 + $0x224] sm:$0xf]  ;;  %v754_v18 = vxor.u32 %v746_v22, %v738_v23  ;;  %2480 = vmatpush.bf16.msra.mxu1 %v3267_v49  ;;  %v3251_v39 = vor.u32 %v4285_v24, %v3248_v28  ;;  %vm778_vm7 = vcmp.gt.f32.partialorder %v5428_v51, 0.0  ;;  %v5449_v34 = vpack.c.bf16 %v794_v48, %v794_v48 }
 0x12a   :  { %v3392_v60 = vld [vmem:[#allocation13 + $0x230] sm:$0xf0]  ;;  %v4405_v62 = vld [vmem:[#allocation13 + $0x4c4] sm:$0xf]  ;;  %v761_v45 = vshrl.u32 %v753_v38, 31  ;;  %2504 = vmatpush.bf16.msra.mxu3 %v3555_v5  ;;  %v3875_v33 = vor.u32 %v4441_v35, %v3872_v40 }
 0x12b   :  { %v3728_v41 = vld [vmem:[#allocation13 + $0x4d0] sm:$0xf0]  ;;  %v4353_v8 = vld [vmem:[#allocation13 + $0x324] sm:$0xf]  ;;  %v762_v13 = vshrl.u32 %v754_v18, 31  ;;  %2492 = vmatpush.bf16.msra.mxu2 %v3411_v26  ;;  %2468 = vmatpush.bf16.msra.mxu0 %v3123_v58  ;;  %v3395_v42 = vor.u32 %v4321_v52, %v3392_v60 }
 0x12c   :  { %v3520_v9 = vld [vmem:[#allocation13 + $0x330] sm:$0xf0]  ;;  %v4437_v19 = vld [vmem:[#allocation13 + $0x5c4] sm:$0xf]  ;;  %vm769_vm5 = vcmp.eq.s32.totalorder %v761_v45, 0  ;;  %v3731_v20 = vor.u32 %v4405_v62, %v3728_v41 }
 0x12d   :  { %v3856_v7 = vld [vmem:[#allocation13 + $0x5d0] sm:$0xf0]  ;;  %v4317_v50 = vld [vmem:[#allocation13 + $0x204] sm:$0xf]  ;;  %vm785_vm8 = vmand %vm769_vm5, %vm777_vm4  ;;  %vm5445_vm10 = vcmp.eq.s32.totalorder %v762_v13, 0  ;;  %2481 = vmatpush.bf16.msra.mxu1 %v3251_v39  ;;  %v3523_v23 = vor.u32 %v4353_v8, %v3520_v9 }
 0x12e   :  { %v3376_v44 = vld [vmem:[#allocation13 + $0x210] sm:$0xf0]  ;;  %v4349_v32 = vld [vmem:[#allocation13 + $0x304] sm:$0xf]  ;;  %vm5451_vm11 = vmpackc.low %vm785_vm8, %vm785_vm8  ;;  %2505 = vmatpush.bf16.msra.mxu3 %v3539_v11  ;;  %v3859_v12 = vor.u32 %v4437_v19, %v3856_v7 }
 0x12f   :  { %2513 = vmatpush.bf16.msrb.mxu0 %v3747_v53  ;;  %v3504_v6 = vld [vmem:[#allocation13 + $0x310] sm:$0xf0]  ;;  %v4473_v47 = vld [vmem:[#allocation13 + $0x6e4] sm:$0xf]  ;;  %4160 = vmatmul.msk.bf16.vlgmr.msrb.gmra.mxu2 %vm5451_vm11, %v5440_v17  ;;  %vm786_vm12 = vmand %vm5445_vm10, %vm778_vm7  ;;  %v3379_v36 = vor.u32 %v4317_v50, %v3376_v44 }
 0x130   :  { %v4000_v0 = vld [vmem:[#allocation13 + $0x6f0] sm:$0xf0]  ;;  %v4401_v49 = vld [vmem:[#allocation13 + $0x4a4] sm:$0xf]  ;;  %vm5462_vm14 = vmpackc.low %vm786_vm12, %vm786_vm12  ;;  %2493 = vmatpush.bf16.msra.mxu2 %v3395_v42  ;;  %v3507_v22 = vor.u32 %v4349_v32, %v3504_v6 }
 0x131   :  { %2526 = vmatpush.bf16.msrb.mxu1 %v3875_v33  ;;  %v3712_v59 = vld [vmem:[#allocation13 + $0x4b0] sm:$0xf0]  ;;  %v4505_v25 = vld [vmem:[#allocation13 + $0x7e4] sm:$0xf]  ;;  %4163 = vmatmul.msk.bf16.vlgmr.msrb.gmra.mxu3 %vm5462_vm14, %v5449_v34  ;;  %v4003_v28 = vor.u32 %v4473_v47, %v4000_v0  ;;  %v4462_v30 = vld [vmem:[#allocation13 + $0x68c] sm:$0xf] }
 0x132   :  { %v4128_v1 = vld [vmem:[#allocation13 + $0x7f0] sm:$0xf0]  ;;  %v4433_v5 = vld [vmem:[#allocation13 + $0x5a4] sm:$0xf]  ;;  %v3715_v51 = vor.u32 %v4401_v49, %v3712_v59  ;;  %2506 = vmatpush.bf16.msra.mxu3 %v3523_v23 }
 0x133   :  { %2514 = vmatpush.bf16.msrb.mxu0 %v3731_v20  ;;  %v3840_v24 = vld [vmem:[#allocation13 + $0x5b0] sm:$0xf0]  ;;  %v4469_v16 = vld [vmem:[#allocation13 + $0x6c4] sm:$0xf]  ;;  %v4131_v40 = vor.u32 %v4505_v25, %v4128_v1 }
 0x134   :  { %v3984_v26 = vld [vmem:[#allocation13 + $0x6d0] sm:$0xf0]  ;;  %v4397_v58 = vld [vmem:[#allocation13 + $0x484] sm:$0xf]  ;;  %v3843_v38 = vor.u32 %v4433_v5, %v3840_v24  ;;  %4166 = vmatmul.msk.bf16.vlgmr.msra.gmra.mxu0 %vm5281_vm13, %v5224_v37  ;;  %2494 = vmatpush.bf16.msra.mxu2 %v3379_v36 }
 0x135   :  { %2527 = vmatpush.bf16.msrb.mxu1 %v3859_v12  ;;  %v3696_v35 = vld [vmem:[#allocation13 + $0x490] sm:$0xf0]  ;;  %v4501_v48 = vld [vmem:[#allocation13 + $0x7c4] sm:$0xf]  ;;  %v3987_v39 = vor.u32 %v4469_v16, %v3984_v26 }
 0x136   :  { %v4112_v53 = vld [vmem:[#allocation13 + $0x7d0] sm:$0xf0]  ;;  %v4429_v52 = vld [vmem:[#allocation13 + $0x584] sm:$0xf]  ;;  %v3699_v60 = vor.u32 %v4397_v58, %v3696_v35  ;;  %4169 = vmatmul.msk.bf16.vlgmr.msra.gmra.mxu1 %vm5305_vm0, %v5259_v61  ;;  %2507 = vmatpush.bf16.msra.mxu3 %v3507_v22 }
 0x137   :  { %v3824_v18 = vld [vmem:[#allocation13 + $0x590] sm:$0xf0]  ;;  %2515 = vmatpush.bf16.msrb.mxu0 %v3715_v51  ;;  %v4465_v62 = vld [vmem:[#allocation13 + $0x6a4] sm:$0xf]  ;;  %v4115_v33 = vor.u32 %v4501_v48, %v4112_v53 }
 0x138   :  { %2539 = vmatpush.bf16.msrb.mxu2 %v4003_v28  ;;  %v3968_v41 = vld [vmem:[#allocation13 + $0x6b0] sm:$0xf0]  ;;  %v4393_v45 = vld [vmem:[#allocation13 + $0x464] sm:$0xf]  ;;  %v3827_v8 = vor.u32 %v4429_v52, %v3824_v18 }
 0x139   :  { %v3680_v11 = vld [vmem:[#allocation13 + $0x470] sm:$0xf0]  ;;  %2528 = vmatpush.bf16.msrb.mxu1 %v3843_v38  ;;  %v4497_v9 = vld [vmem:[#allocation13 + $0x7a4] sm:$0xf]  ;;  %v3971_v19 = vor.u32 %v4465_v62, %v3968_v41  ;;  %v3238_v41 = vld [vmem:[#allocation13 + $0xe8] sm:$0xf] }
 0x13a   :  { %2552 = vmatpush.bf16.msrb.mxu3 %v4131_v40  ;;  %v4096_v13 = vld [vmem:[#allocation13 + $0x7b0] sm:$0xf0]  ;;  %v3683_v7 = vor.u32 %v4393_v45, %v3680_v11  ;;  %v4425_v42 = vld [vmem:[#allocation13 + $0x564] sm:$0xf]  ;;  %v4284_v45 = vld [vmem:[#allocation13 + $0xf4] sm:$0xf0] }
 0x13b   :  { %2516 = vmatpush.bf16.msrb.mxu0 %v3699_v60  ;;  %v3808_v20 = vld [vmem:[#allocation13 + $0x570] sm:$0xf0]  ;;  %v4461_v50 = vld [vmem:[#allocation13 + $0x684] sm:$0xf]  ;;  %v4099_v55 = vor.u32 %v4497_v9, %v4096_v13  ;;  %v3366_v9 = vld [vmem:[#allocation13 + $0x1e8] sm:$0xf] }
 0x13c   :  { %2540 = vmatpush.bf16.msrb.mxu2 %v3987_v39  ;;  %v3952_v44 = vld [vmem:[#allocation13 + $0x690] sm:$0xf0]  ;;  %v4389_v32 = vld [vmem:[#allocation13 + $0x444] sm:$0xf]  ;;  %v3811_v47 = vor.u32 %v4425_v42, %v3808_v20 }
 0x13d   :  { %2529 = vmatpush.bf16.msrb.mxu1 %v3827_v8  ;;  %v3664_v6 = vld [vmem:[#allocation13 + $0x450] sm:$0xf0]  ;;  %v4493_v0 = vld [vmem:[#allocation13 + $0x784] sm:$0xf]  ;;  %v3955_v12 = vor.u32 %v4461_v50, %v3952_v44  ;;  %v3239_v50 = vor.u32 %v4284_v45, %v3238_v41  ;;  %v3606_v45 = vld [vmem:[#allocation13 + $0x3c8] sm:$0xf] }
 0x13e   :  { %2553 = vmatpush.bf16.msrb.mxu3 %v4115_v33  ;;  %v4080_v23 = vld [vmem:[#allocation13 + $0x790] sm:$0xf0]  ;;  %v4421_v49 = vld [vmem:[#allocation13 + $0x544] sm:$0xf]  ;;  %v3667_v25 = vor.u32 %v4389_v32, %v3664_v6 }
 0x13f   :  { %2517 = vmatpush.bf16.msrb.mxu0 %v3683_v7  ;;  %v3792_v59 = vld [vmem:[#allocation13 + $0x550] sm:$0xf0]  ;;  %v4457_v1 = vld [vmem:[#allocation13 + $0x664] sm:$0xf]  ;;  %4172 = vmatmul.msk.bf16.vlgmr.msra.gmra.mxu2 %vm5353_vm6, %v5314_v10  ;;  %v4083_v5 = vor.u32 %v4493_v0, %v4080_v23  ;;  %v3222_v0 = vld [vmem:[#allocation13 + $0xc8] sm:$0xf] }
 0x140   :  { %2541 = vmatpush.bf16.msrb.mxu2 %v3971_v19  ;;  %v3936_v36 = vld [vmem:[#allocation13 + $0x670] sm:$0xf0]  ;;  %v4385_v24 = vld [vmem:[#allocation13 + $0x424] sm:$0xf]  ;;  %v3795_v51 = vor.u32 %v4421_v49, %v3792_v59  ;;  %v4316_v19 = vld [vmem:[#allocation13 + $0x1f4] sm:$0xf0] }
 0x141   :  { %v3648_v28 = vld [vmem:[#allocation13 + $0x430] sm:$0xf0]  ;;  %2530 = vmatpush.bf16.msrb.mxu1 %v3811_v47  ;;  %v4489_v16 = vld [vmem:[#allocation13 + $0x764] sm:$0xf]  ;;  %4175 = vmatmul.msk.bf16.vlgmr.msra.gmra.mxu3 %vm5376_vm9, %v5329_v3  ;;  %v3939_v26 = vor.u32 %v4457_v1, %v3936_v36  ;;  %v3367_v6 = vor.u32 %v4316_v19, %v3366_v9  ;;  %v4280_v23 = vld [vmem:[#allocation13 + $0xd4] sm:$0xf0] }
 0x142   :  { %2554 = vmatpush.bf16.msrb.mxu3 %v4099_v55  ;;  %v4064_v22 = vld [vmem:[#allocation13 + $0x770] sm:$0xf0]  ;;  %v4417_v58 = vld [vmem:[#allocation13 + $0x524] sm:$0xf]  ;;  %v3651_v40 = vor.u32 %v4385_v24, %v3648_v28  ;;  %v4312_v49 = vld [vmem:[#allocation13 + $0x1d4] sm:$0xf0]  ;;  %v3223_v24 = vor.u32 %v4280_v23, %v3222_v0 }
 0x143   :  { %v3776_v35 = vld [vmem:[#allocation13 + $0x530] sm:$0xf0]  ;;  %2518 = vmatpush.bf16.msrb.mxu0 %v3667_v25  ;;  %v4453_v38 = vld [vmem:[#allocation13 + $0x644] sm:$0xf]  ;;  %v4067_v53 = vor.u32 %v4489_v16, %v4064_v22  ;;  %v3494_v36 = vld [vmem:[#allocation13 + $0x2e8] sm:$0xf] }
 0x144   :  { %2542 = vmatpush.bf16.msrb.mxu2 %v3955_v12  ;;  %v3920_v48 = vld [vmem:[#allocation13 + $0x650] sm:$0xf0]  ;;  %v4485_v52 = vld [vmem:[#allocation13 + $0x744] sm:$0xf]  ;;  %v3779_v60 = vor.u32 %v4417_v58, %v3776_v35  ;;  %v3350_v12 = vld [vmem:[#allocation13 + $0x1c8] sm:$0xf] }
 0x145   :  { %v4381_v18 = vld [vmem:[#allocation13 + $0x404] sm:$0xf]  ;;  %v3632_v39 = vld [vmem:[#allocation13 + $0x410] sm:$0xf0]  ;;  %2531 = vmatpush.bf16.msrb.mxu1 %v3795_v51  ;;  %v3923_v11 = vor.u32 %v4453_v38, %v3920_v48  ;;  %v3351_v16 = vor.u32 %v4312_v49, %v3350_v12  ;;  %v4380_v58 = vld [vmem:[#allocation13 + $0x3f4] sm:$0xf0] }
 0x146   :  { %2555 = vmatpush.bf16.msrb.mxu3 %v4083_v5  ;;  %v4048_v62 = vld [vmem:[#allocation13 + $0x750] sm:$0xf0]  ;;  %v4413_v33 = vld [vmem:[#allocation13 + $0x504] sm:$0xf]  ;;  %v3635_v13 = vor.u32 %v4381_v18, %v3632_v39  ;;  %v4348_v5 = vld [vmem:[#allocation13 + $0x2f4] sm:$0xf0] }
 0x147   :  { %v3760_v8 = vld [vmem:[#allocation13 + $0x510] sm:$0xf0]  ;;  %2519 = vmatpush.bf16.msrb.mxu0 %v3651_v40  ;;  %v4449_v7 = vld [vmem:[#allocation13 + $0x624] sm:$0xf]  ;;  %v4051_v20 = vor.u32 %v4485_v52, %v4048_v62  ;;  %v3206_v35 = vld [vmem:[#allocation13 + $0xa8] sm:$0xf]  ;;  %v3495_v40 = vor.u32 %v4348_v5, %v3494_v36 }
 0x148   :  { %2543 = vmatpush.bf16.msrb.mxu2 %v3939_v26  ;;  %v3904_v42 = vld [vmem:[#allocation13 + $0x630] sm:$0xf0]  ;;  %v3763_v44 = vor.u32 %v4413_v33, %v3760_v8  ;;  %v4481_v55 = vld [vmem:[#allocation13 + $0x724] sm:$0xf]  ;;  %v3622_v26 = vld [vmem:[#allocation13 + $0x3e8] sm:$0xf] }
 0x149   :  { %2532 = vmatpush.bf16.msrb.mxu1 %v3779_v60  ;;  %v4032_v32 = vld [vmem:[#allocation13 + $0x730] sm:$0xf0]  ;;  %v3907_v47 = vor.u32 %v4449_v7, %v3904_v42  ;;  %v4445_v59 = vld [vmem:[#allocation13 + $0x604] sm:$0xf]  ;;  %v4276_v38 = vld [vmem:[#allocation13 + $0xb4] sm:$0xf0]  ;;  %v3623_v60 = vor.u32 %v4380_v58, %v3622_v26 }
 0x14a   :  { %2556 = vmatpush.bf16.msrb.mxu3 %v4067_v53  ;;  %v3888_v25 = vld [vmem:[#allocation13 + $0x610] sm:$0xf0]  ;;  %v4035_v1 = vor.u32 %v4481_v55, %v4032_v32  ;;  %v4477_v28 = vld [vmem:[#allocation13 + $0x704] sm:$0xf]  ;;  %v3334_v48 = vld [vmem:[#allocation13 + $0x1a8] sm:$0xf]  ;;  %v3207_v62 = vor.u32 %v4276_v38, %v3206_v35 }
 0x14b   :  { %2520 = vmatpush.bf16.msrb.mxu0 %v3635_v13  ;;  %v4016_v51 = vld [vmem:[#allocation13 + $0x710] sm:$0xf0]  ;;  %v3891_v22 = vor.u32 %v4445_v59, %v3888_v25  ;;  %v4308_v53 = vld [vmem:[#allocation13 + $0x1b4] sm:$0xf0]  ;;  %v3478_v18 = vld [vmem:[#allocation13 + $0x2c8] sm:$0xf] }
 0x14c   :  { %2544 = vmatpush.bf16.msrb.mxu2 %v3923_v11  ;;  %v4019_v52 = vor.u32 %v4477_v28, %v4016_v51  ;;  %v4344_v39 = vld [vmem:[#allocation13 + $0x2d4] sm:$0xf0]  ;;  %v3335_v41 = vor.u32 %v4308_v53, %v3334_v48  ;;  %v3190_v33 = vld [vmem:[#allocation13 + $0x88] sm:$0xf] }
 0x14d   :  { %2533 = vmatpush.bf16.msrb.mxu1 %v3763_v44  ;;  %v4376_v11 = vld [vmem:[#allocation13 + $0x3d4] sm:$0xf0]  ;;  %v3479_v8 = vor.u32 %v4344_v39, %v3478_v18  ;;  %v3318_v13 = vld [vmem:[#allocation13 + $0x188] sm:$0xf] }
 0x14e   :  { %2557 = vmatpush.bf16.msrb.mxu3 %v4051_v20  ;;  %4178 = vmatmul.msk.bf16.vlgmr.msrb.gmra.mxu0 %vm5413_vm1, %v5402_v46  ;;  %v4272_v9 = vld [vmem:[#allocation13 + $0x94] sm:$0xf0]  ;;  %v3462_v7 = vld [vmem:[#allocation13 + $0x2a8] sm:$0xf]  ;;  %v3607_v20 = vor.u32 %v4376_v11, %v3606_v45 }
 0x14f   :  { %2565 = vmatpush.bf16.msra.mxu0 %v3239_v50  ;;  %v4304_v19 = vld [vmem:[#allocation13 + $0x194] sm:$0xf0]  ;;  %v3191_v50 = vor.u32 %v4272_v9, %v3190_v33  ;;  %v3590_v55 = vld [vmem:[#allocation13 + $0x3a8] sm:$0xf] }
 0x150   :  { %2545 = vmatpush.bf16.msrb.mxu2 %v3907_v47  ;;  %4181 = vmatmul.msk.bf16.vlgmr.msrb.gmra.mxu1 %vm5430_vm3, %v5411_v57  ;;  %v4340_v42 = vld [vmem:[#allocation13 + $0x2b4] sm:$0xf0]  ;;  %v3319_v44 = vor.u32 %v4304_v19, %v3318_v13  ;;  %v3302_v23 = vld [vmem:[#allocation13 + $0x168] sm:$0xf] }
 0x151   :  { %2578 = vmatpush.bf16.msra.mxu1 %v3367_v6  ;;  %v4372_v32 = vld [vmem:[#allocation13 + $0x3b4] sm:$0xf0]  ;;  %v3174_v6 = vld [vmem:[#allocation13 + $0x68] sm:$0xf]  ;;  %v3463_v47 = vor.u32 %v4340_v42, %v3462_v7 }
 0x152   :  { %2558 = vmatpush.bf16.msrb.mxu3 %v4035_v1  ;;  %v4268_v0 = vld [vmem:[#allocation13 + $0x74] sm:$0xf0]  ;;  %v3446_v49 = vld [vmem:[#allocation13 + $0x288] sm:$0xf]  ;;  %v3591_v25 = vor.u32 %v4372_v32, %v3590_v55 }
 0x153   :  { %2566 = vmatpush.bf16.msra.mxu0 %v3223_v24  ;;  %v4300_v12 = vld [vmem:[#allocation13 + $0x174] sm:$0xf0]  ;;  %v3175_v1 = vor.u32 %v4268_v0, %v3174_v6  ;;  %v3574_v5 = vld [vmem:[#allocation13 + $0x388] sm:$0xf] }
 0x154   :  { %2546 = vmatpush.bf16.msrb.mxu2 %v3891_v22  ;;  %v4336_v59 = vld [vmem:[#allocation13 + $0x294] sm:$0xf0]  ;;  %v3303_v36 = vor.u32 %v4300_v12, %v3302_v23  ;;  %v3158_v28 = vld [vmem:[#allocation13 + $0x48] sm:$0xf] }
 0x155   :  { %2579 = vmatpush.bf16.msra.mxu1 %v3351_v16  ;;  %v4368_v24 = vld [vmem:[#allocation13 + $0x394] sm:$0xf0]  ;;  %v3447_v51 = vor.u32 %v4336_v59, %v3446_v49  ;;  %v3286_v22 = vld [vmem:[#allocation13 + $0x148] sm:$0xf] }
 0x156   :  { %2559 = vmatpush.bf16.msrb.mxu3 %v4019_v52  ;;  %v4264_v16 = vld [vmem:[#allocation13 + $0x54] sm:$0xf0]  ;;  %v3430_v58 = vld [vmem:[#allocation13 + $0x268] sm:$0xf] }
 0x157   :  { %4184 = vmatmul.msk.bf16.vlgmr.msrb.gmra.mxu2 %vm5451_vm11, %v5440_v17  ;;  %2567 = vmatpush.bf16.msra.mxu0 %v3207_v62  ;;  %v4296_v26 = vld [vmem:[#allocation13 + $0x154] sm:$0xf0]  ;;  %v3159_v38 = vor.u32 %v4264_v16, %v3158_v28  ;;  %v3558_v53 = vld [vmem:[#allocation13 + $0x368] sm:$0xf] }
 0x158   :  { %2591 = vmatpush.bf16.msra.mxu2 %v3495_v40  ;;  %v4332_v35 = vld [vmem:[#allocation13 + $0x274] sm:$0xf0]  ;;  %v3575_v40 = vor.u32 %v4368_v24, %v3574_v5  ;;  %v3287_v48 = vor.u32 %v4296_v26, %v3286_v22  ;;  %v3142_v18 = vld [vmem:[#allocation13 + $0x28] sm:$0xf] }
 0x159   :  { %2580 = vmatpush.bf16.msra.mxu1 %v3335_v41  ;;  %4187 = vmatmul.msk.bf16.vlgmr.msrb.gmra.mxu3 %vm5462_vm14, %v5449_v34  ;;  %v4364_v52 = vld [vmem:[#allocation13 + $0x374] sm:$0xf0]  ;;  %v3431_v39 = vor.u32 %v4332_v35, %v3430_v58  ;;  %v3270_v62 = vld [vmem:[#allocation13 + $0x128] sm:$0xf] }
 0x15a   :  { %2604 = vmatpush.bf16.msra.mxu3 %v3623_v60  ;;  %v4260_v60 = vld [vmem:[#allocation13 + $0x34] sm:$0xf0]  ;;  %v3414_v45 = vld [vmem:[#allocation13 + $0x248] sm:$0xf]  ;;  %v3559_v33 = vor.u32 %v4364_v52, %v3558_v53 }
 0x15b   :  { %2568 = vmatpush.bf16.msra.mxu0 %v3191_v50  ;;  %v4292_v41 = vld [vmem:[#allocation13 + $0x134] sm:$0xf0]  ;;  %v3143_v9 = vor.u32 %v4260_v60, %v3142_v18  ;;  %v3126_v7 = vld [vmem:[#allocation13 + $0x8] sm:$0xf] }
 0x15c   :  { %2592 = vmatpush.bf16.msra.mxu2 %v3479_v8  ;;  %v4328_v11 = vld [vmem:[#allocation13 + $0x254] sm:$0xf0]  ;;  %v3542_v8 = vld [vmem:[#allocation13 + $0x348] sm:$0xf]  ;;  %v3271_v13 = vor.u32 %v4292_v41, %v3270_v62 }
 0x15d   :  { %2581 = vmatpush.bf16.msra.mxu1 %v3319_v44  ;;  %v4360_v19 = vld [vmem:[#allocation13 + $0x354] sm:$0xf0]  ;;  %v3254_v50 = vld [vmem:[#allocation13 + $0x108] sm:$0xf] }
 0x15e   :  { %2605 = vmatpush.bf16.msra.mxu3 %v3607_v20  ;;  %v4256_v42 = vld [vmem:[#allocation13 + $0x14] sm:$0xf0]  ;;  %v3415_v20 = vor.u32 %v4328_v11, %v3414_v45  ;;  %v3750_v55 = vld [vmem:[#allocation13 + $0x4e8] sm:$0xf]  ;;  %v3543_v0 = vor.u32 %v4360_v19, %v3542_v8 }
 0x15f   :  { %2569 = vmatpush.bf16.msra.mxu0 %v3175_v1  ;;  %v4288_v44 = vld [vmem:[#allocation13 + $0x114] sm:$0xf0]  ;;  %v3878_v6 = vld [vmem:[#allocation13 + $0x5e8] sm:$0xf]  ;;  %v3127_v49 = vor.u32 %v4256_v42, %v3126_v7 }
 0x160   :  { %2593 = vmatpush.bf16.msra.mxu2 %v3463_v47  ;;  %v4412_v32 = vld [vmem:[#allocation13 + $0x4f4] sm:$0xf0]  ;;  %v3398_v23 = vld [vmem:[#allocation13 + $0x228] sm:$0xf]  ;;  %v3255_v59 = vor.u32 %v4288_v44, %v3254_v50 }
 0x161   :  { %2582 = vmatpush.bf16.msra.mxu1 %v3303_v36  ;;  %v4444_v47 = vld [vmem:[#allocation13 + $0x5f4] sm:$0xf0]  ;;  %v3751_v36 = vor.u32 %v4412_v32, %v3750_v55  ;;  %v3734_v24 = vld [vmem:[#allocation13 + $0x4c8] sm:$0xf] }
 0x162   :  { %2606 = vmatpush.bf16.msra.mxu3 %v3591_v25  ;;  %v4324_v12 = vld [vmem:[#allocation13 + $0x234] sm:$0xf0]  ;;  %v3526_v25 = vld [vmem:[#allocation13 + $0x328] sm:$0xf]  ;;  %v3879_v5 = vor.u32 %v4444_v47, %v3878_v6 }
 0x163   :  { %2570 = vmatpush.bf16.msra.mxu0 %v3159_v38  ;;  %v4356_v1 = vld [vmem:[#allocation13 + $0x334] sm:$0xf0]  ;;  %v3399_v28 = vor.u32 %v4324_v12, %v3398_v23  ;;  %v3862_v16 = vld [vmem:[#allocation13 + $0x5c8] sm:$0xf] }
 0x164   :  { %2594 = vmatpush.bf16.msra.mxu2 %v3447_v51  ;;  %v4408_v51 = vld [vmem:[#allocation13 + $0x4d4] sm:$0xf0]  ;;  %v3527_v26 = vor.u32 %v4356_v1, %v3526_v25  ;;  %v3382_v58 = vld [vmem:[#allocation13 + $0x208] sm:$0xf] }
 0x165   :  { %2583 = vmatpush.bf16.msra.mxu1 %v3287_v48  ;;  %v4440_v22 = vld [vmem:[#allocation13 + $0x5d4] sm:$0xf0]  ;;  %v4006_v48 = vld [vmem:[#allocation13 + $0x6e8] sm:$0xf]  ;;  %v3735_v52 = vor.u32 %v4408_v51, %v3734_v24 }
 0x166   :  { %2607 = vmatpush.bf16.msra.mxu3 %v3575_v40  ;;  %v4320_v35 = vld [vmem:[#allocation13 + $0x214] sm:$0xf0]  ;;  %v3510_v40 = vld [vmem:[#allocation13 + $0x308] sm:$0xf]  ;;  %v3863_v18 = vor.u32 %v4440_v22, %v3862_v16 }
 0x167   :  { %2571 = vmatpush.bf16.msra.mxu0 %v3143_v9  ;;  %v4352_v38 = vld [vmem:[#allocation13 + $0x314] sm:$0xf0]  ;;  %v3383_v62 = vor.u32 %v4320_v35, %v3382_v58  ;;  %v3718_v41 = vld [vmem:[#allocation13 + $0x4a8] sm:$0xf] }
 0x168   :  { %2595 = vmatpush.bf16.msra.mxu2 %v3431_v39  ;;  %v4476_v53 = vld [vmem:[#allocation13 + $0x6f4] sm:$0xf0]  ;;  %v4134_v39 = vld [vmem:[#allocation13 + $0x7e8] sm:$0xf]  ;;  %v3511_v11 = vor.u32 %v4352_v38, %v3510_v40 }
 0x169   :  { %2584 = vmatpush.bf16.msra.mxu1 %v3271_v13  ;;  %v4508_v60 = vld [vmem:[#allocation13 + $0x7f4] sm:$0xf0]  ;;  %v3846_v8 = vld [vmem:[#allocation13 + $0x5a8] sm:$0xf] }
 0x16a   :  { %2608 = vmatpush.bf16.msra.mxu3 %v3559_v33  ;;  %v4404_v45 = vld [vmem:[#allocation13 + $0x4b4] sm:$0xf0]  ;;  %v4007_v33 = vor.u32 %v4476_v53, %v4006_v48  ;;  %v4135_v13 = vor.u32 %v4508_v60, %v4134_v39  ;;  %v3990_v19 = vld [vmem:[#allocation13 + $0x6c8] sm:$0xf] }
 0x16b   :  { %2572 = vmatpush.bf16.msra.mxu0 %v3127_v49  ;;  %v4436_v9 = vld [vmem:[#allocation13 + $0x5b4] sm:$0xf0]  ;;  %v3719_v42 = vor.u32 %v4404_v45, %v3718_v41  ;;  %v3702_v55 = vld [vmem:[#allocation13 + $0x488] sm:$0xf] }
 0x16c   :  { %2596 = vmatpush.bf16.msra.mxu2 %v3415_v20  ;;  %v4472_v7 = vld [vmem:[#allocation13 + $0x6d4] sm:$0xf0]  ;;  %v4118_v20 = vld [vmem:[#allocation13 + $0x7c8] sm:$0xf]  ;;  %v3847_v44 = vor.u32 %v4436_v9, %v3846_v8 }
 0x16d   :  { %2585 = vmatpush.bf16.msra.mxu1 %v3255_v59  ;;  %v4504_v50 = vld [vmem:[#allocation13 + $0x7d4] sm:$0xf0]  ;;  %v3991_v6 = vor.u32 %v4472_v7, %v3990_v19  ;;  %v3830_v47 = vld [vmem:[#allocation13 + $0x588] sm:$0xf] }
 0x16e   :  { %2609 = vmatpush.bf16.msra.mxu3 %v3543_v0  ;;  %4190 = vmatmul.msk.bf16.vlgmr.msra.gmra.mxu0 %vm5281_vm13, %v5224_v37  ;;  %v4400_v32 = vld [vmem:[#allocation13 + $0x494] sm:$0xf0]  ;;  %v4119_v23 = vor.u32 %v4504_v50, %v4118_v20  ;;  %v3974_v12 = vld [vmem:[#allocation13 + $0x6a8] sm:$0xf] }
 0x16f   :  { %2617 = vmatpush.bf16.msrb.mxu0 %v3751_v36  ;;  %v4432_v0 = vld [vmem:[#allocation13 + $0x594] sm:$0xf0]  ;;  %v3703_v59 = vor.u32 %v4400_v32, %v3702_v55  ;;  %v4102_v25 = vld [vmem:[#allocation13 + $0x7a8] sm:$0xf] }
 0x170   :  { %2597 = vmatpush.bf16.msra.mxu2 %v3399_v28  ;;  %4193 = vmatmul.msk.bf16.vlgmr.msra.gmra.mxu1 %vm5305_vm0, %v5259_v61  ;;  %v4468_v49 = vld [vmem:[#allocation13 + $0x6b4] sm:$0xf0]  ;;  %v3831_v36 = vor.u32 %v4432_v0, %v3830_v47  ;;  %v3814_v51 = vld [vmem:[#allocation13 + $0x568] sm:$0xf] }
 0x171   :  { %2630 = vmatpush.bf16.msrb.mxu1 %v3879_v5  ;;  %v4500_v1 = vld [vmem:[#allocation13 + $0x7b4] sm:$0xf0]  ;;  %v3686_v5 = vld [vmem:[#allocation13 + $0x468] sm:$0xf]  ;;  %v3975_v28 = vor.u32 %v4468_v49, %v3974_v12 }
 0x172   :  { %2610 = vmatpush.bf16.msra.mxu3 %v3527_v26  ;;  %v4396_v24 = vld [vmem:[#allocation13 + $0x474] sm:$0xf0]  ;;  %v4103_v22 = vor.u32 %v4500_v1, %v4102_v25  ;;  %v3958_v26 = vld [vmem:[#allocation13 + $0x688] sm:$0xf]  ;;  %v4282_v1 = vld [vmem:[#allocation13 + $0xec] sm:$0xf] }
 0x173   :  { %2618 = vmatpush.bf16.msrb.mxu0 %v3735_v52  ;;  %v4428_v16 = vld [vmem:[#allocation13 + $0x574] sm:$0xf0]  ;;  %v3687_v35 = vor.u32 %v4396_v24, %v3686_v5  ;;  %v4086_v40 = vld [vmem:[#allocation13 + $0x788] sm:$0xf]  ;;  %v4314_v5 = vld [vmem:[#allocation13 + $0x1ec] sm:$0xf] }
 0x174   :  { %2598 = vmatpush.bf16.msra.mxu2 %v3383_v62  ;;  %v4464_v58 = vld [vmem:[#allocation13 + $0x694] sm:$0xf0]  ;;  %v3815_v48 = vor.u32 %v4428_v16, %v3814_v51  ;;  %v3670_v53 = vld [vmem:[#allocation13 + $0x448] sm:$0xf] }
 0x175   :  { %2631 = vmatpush.bf16.msrb.mxu1 %v3863_v18  ;;  %v4496_v38 = vld [vmem:[#allocation13 + $0x794] sm:$0xf0]  ;;  %v3959_v18 = vor.u32 %v4464_v58, %v3958_v26  ;;  %v3798_v39 = vld [vmem:[#allocation13 + $0x548] sm:$0xf] }
 0x176   :  { %2611 = vmatpush.bf16.msra.mxu3 %v3511_v11  ;;  %v4392_v52 = vld [vmem:[#allocation13 + $0x454] sm:$0xf0]  ;;  %v4087_v62 = vor.u32 %v4496_v38, %v4086_v40  ;;  %v3942_v41 = vld [vmem:[#allocation13 + $0x668] sm:$0xf]  ;;  %v4278_v38 = vld [vmem:[#allocation13 + $0xcc] sm:$0xf] }
 0x177   :  { %4196 = vmatmul.msk.bf16.vlgmr.msra.gmra.mxu2 %vm5353_vm6, %v5314_v10  ;;  %2619 = vmatpush.bf16.msrb.mxu0 %v3719_v42  ;;  %v4424_v60 = vld [vmem:[#allocation13 + $0x554] sm:$0xf0]  ;;  %v3671_v11 = vor.u32 %v4392_v52, %v3670_v53  ;;  %v3782_v42 = vld [vmem:[#allocation13 + $0x528] sm:$0xf] }
 0x178   :  { %2643 = vmatpush.bf16.msrb.mxu2 %v4007_v33  ;;  %v4460_v45 = vld [vmem:[#allocation13 + $0x674] sm:$0xf0]  ;;  %v4070_v33 = vld [vmem:[#allocation13 + $0x768] sm:$0xf]  ;;  %v3799_v9 = vor.u32 %v4424_v60, %v3798_v39  ;;  %v3352_v39 = vld [vmem:[#allocation13 + $0x1d8] sm:$0xf0] }
 0x179   :  { %4199 = vmatmul.msk.bf16.vlgmr.msra.gmra.mxu3 %vm5376_vm9, %v5329_v3  ;;  %2632 = vmatpush.bf16.msrb.mxu1 %v3847_v44  ;;  %v4492_v8 = vld [vmem:[#allocation13 + $0x774] sm:$0xf0]  ;;  %v3943_v7 = vor.u32 %v4460_v45, %v3942_v41  ;;  %v3926_v44 = vld [vmem:[#allocation13 + $0x648] sm:$0xf]  ;;  %v5508_v60 = vld [vmem:[%s5629_s7] sm:$0xf] }
 0x17a   :  { %2656 = vmatpush.bf16.msrb.mxu3 %v4135_v13  ;;  %v3654_v13 = vld [vmem:[#allocation13 + $0x428] sm:$0xf]  ;;  %v4388_v19 = vld [vmem:[#allocation13 + $0x434] sm:$0xf0]  ;;  %v4071_v50 = vor.u32 %v4492_v8, %v4070_v33  ;;  %v4346_v8 = vld [vmem:[#allocation13 + $0x2ec] sm:$0xf] }
 0x17b   :  { %2620 = vmatpush.bf16.msrb.mxu0 %v3703_v59  ;;  %v4420_v20 = vld [vmem:[#allocation13 + $0x534] sm:$0xf0]  ;;  %v3655_v32 = vor.u32 %v4388_v19, %v3654_v13  ;;  %v3638_v0 = vld [vmem:[#allocation13 + $0x408] sm:$0xf]  ;;  %v4378_v19 = vld [vmem:[#allocation13 + $0x3ec] sm:$0xf] }
 0x17c   :  { %2644 = vmatpush.bf16.msrb.mxu2 %v3991_v6  ;;  %v4456_v55 = vld [vmem:[#allocation13 + $0x654] sm:$0xf0]  ;;  %v4054_v6 = vld [vmem:[#allocation13 + $0x748] sm:$0xf] }
 0x17d   :  { %2633 = vmatpush.bf16.msrb.mxu1 %v3831_v36  ;;  %v4488_v47 = vld [vmem:[#allocation13 + $0x754] sm:$0xf0]  ;;  %v3766_v49 = vld [vmem:[#allocation13 + $0x508] sm:$0xf]  ;;  %v3927_v25 = vor.u32 %v4456_v55, %v3926_v44  ;;  %v3240_v36 = vld [vmem:[#allocation13 + $0xf8] sm:$0xf0] }
 0x17e   :  { %2657 = vmatpush.bf16.msrb.mxu3 %v4119_v23  ;;  %v3783_v23 = vor.u32 %v4420_v20, %v3782_v42  ;;  %v4384_v12 = vld [vmem:[#allocation13 + $0x414] sm:$0xf0]  ;;  %v4055_v24 = vor.u32 %v4488_v47, %v4054_v6  ;;  %v3910_v51 = vld [vmem:[#allocation13 + $0x628] sm:$0xf]  ;;  %v3243_v40 = vor.u32 %v4282_v1, %v3240_v36  ;;  %v1069_v42 = vperm.slane %v5508_v60, 0 }
 0x17f   :  { %2621 = vmatpush.bf16.msrb.mxu0 %v3687_v35  ;;  %v4416_v59 = vld [vmem:[#allocation13 + $0x514] sm:$0xf0]  ;;  %v4038_v26 = vld [vmem:[#allocation13 + $0x728] sm:$0xf]  ;;  %v4274_v44 = vld [vmem:[#allocation13 + $0xac] sm:$0xf] }
 0x180   :  { %2645 = vmatpush.bf16.msrb.mxu2 %v3975_v28  ;;  %v3368_v28 = vld [vmem:[#allocation13 + $0x1f8] sm:$0xf0]  ;;  %v4452_v16 = vld [vmem:[#allocation13 + $0x634] sm:$0xf0]  ;;  %v3767_v35 = vor.u32 %v4416_v59, %v3766_v49  ;;  %v3894_v41 = vld [vmem:[#allocation13 + $0x608] sm:$0xf] }
 0x181   :  { %2634 = vmatpush.bf16.msrb.mxu1 %v3815_v48  ;;  %v4484_v58 = vld [vmem:[#allocation13 + $0x734] sm:$0xf0]  ;;  %v3224_v48 = vld [vmem:[#allocation13 + $0xd8] sm:$0xf0]  ;;  %v3371_v53 = vor.u32 %v4314_v5, %v3368_v28  ;;  %v3911_v52 = vor.u32 %v4452_v16, %v3910_v51  ;;  %v4306_v47 = vld [vmem:[#allocation13 + $0x1ac] sm:$0xf] }
 0x182   :  { %2658 = vmatpush.bf16.msrb.mxu3 %v4103_v22  ;;  %v3639_v22 = vor.u32 %v4384_v12, %v3638_v0  ;;  %v4448_v45 = vld [vmem:[#allocation13 + $0x614] sm:$0xf0]  ;;  %v3227_v13 = vor.u32 %v4278_v38, %v3224_v48  ;;  %v3208_v55 = vld [vmem:[#allocation13 + $0xb8] sm:$0xf0]  ;;  %v4342_v49 = vld [vmem:[#allocation13 + $0x2cc] sm:$0xf] }
 0x183   :  { %2622 = vmatpush.bf16.msrb.mxu0 %v3671_v11  ;;  %v4022_v11 = vld [vmem:[#allocation13 + $0x708] sm:$0xf]  ;;  %v4480_v33 = vld [vmem:[#allocation13 + $0x714] sm:$0xf0]  ;;  %v3336_v0 = vld [vmem:[#allocation13 + $0x1b8] sm:$0xf0] }
 0x184   :  { %2646 = vmatpush.bf16.msrb.mxu2 %v3959_v18  ;;  %v4310_v18 = vld [vmem:[#allocation13 + $0x1cc] sm:$0xf]  ;;  %v3480_v59 = vld [vmem:[#allocation13 + $0x2d8] sm:$0xf0] }
 0x185   :  { %2635 = vmatpush.bf16.msrb.mxu1 %v3799_v9  ;;  %v3496_v9 = vld [vmem:[#allocation13 + $0x2f8] sm:$0xf0]  ;;  %v3355_v20 = vor.u32 %v4310_v18, %v3352_v39  ;;  %v4374_v36 = vld [vmem:[#allocation13 + $0x3cc] sm:$0xf] }
 0x186   :  { %2659 = vmatpush.bf16.msrb.mxu3 %v4087_v62  ;;  %v4039_v62 = vor.u32 %v4484_v58, %v4038_v26  ;;  %v3499_v6 = vor.u32 %v4346_v8, %v3496_v9  ;;  %v3608_v5 = vld [vmem:[#allocation13 + $0x3d8] sm:$0xf0]  ;;  %v4270_v28 = vld [vmem:[#allocation13 + $0x8c] sm:$0xf] }
 0x187   :  { %2623 = vmatpush.bf16.msrb.mxu0 %v3655_v32  ;;  %v4023_v32 = vor.u32 %v4480_v33, %v4022_v11  ;;  %v3192_v51 = vld [vmem:[#allocation13 + $0x98] sm:$0xf0]  ;;  %v4302_v26 = vld [vmem:[#allocation13 + $0x18c] sm:$0xf] }
 0x188   :  { %2647 = vmatpush.bf16.msrb.mxu2 %v3943_v7  ;;  %v3624_v7 = vld [vmem:[#allocation13 + $0x3f8] sm:$0xf0]  ;;  %v4338_v38 = vld [vmem:[#allocation13 + $0x2ac] sm:$0xf] }
 0x189   :  { %2636 = vmatpush.bf16.msrb.mxu1 %v3783_v23  ;;  %v3627_v23 = vor.u32 %v4378_v19, %v3624_v7  ;;  %v3320_v58 = vld [vmem:[#allocation13 + $0x198] sm:$0xf0]  ;;  %v4298_v11 = vld [vmem:[#allocation13 + $0x16c] sm:$0xf] }
 0x18a   :  { %2660 = vmatpush.bf16.msrb.mxu3 %v4071_v50  ;;  %v3895_v50 = vor.u32 %v4448_v45, %v3894_v41  ;;  %v2366_v12 = vpop.f32.mrf.mxu0  ;;  %v3464_v48 = vld [vmem:[#allocation13 + $0x2b8] sm:$0xf0]  ;;  %v3323_v39 = vor.u32 %v4302_v26, %v3320_v58 }
 0x18b   :  { %2624 = vmatpush.bf16.msrb.mxu0 %v3639_v22  ;;  %v2367_v1 = vadd.f32 %v2366_v12, %v1069_v42  ;;  %v3483_v22 = vor.u32 %v4342_v49, %v3480_v59  ;;  %v3592_v18 = vld [vmem:[#allocation13 + $0x3b8] sm:$0xf0]  ;;  %v3467_v45 = vor.u32 %v4338_v38, %v3464_v48  ;;  %v4366_v42 = vld [vmem:[#allocation13 + $0x38c] sm:$0xf] }
 0x18c   :  { %2648 = vmatpush.bf16.msrb.mxu2 %v3927_v25  ;;  %v3211_v25 = vor.u32 %v4274_v44, %v3208_v55  ;;  %v3176_v41 = vld [vmem:[#allocation13 + $0x78] sm:$0xf0]  ;;  %v4262_v44 = vld [vmem:[#allocation13 + $0x4c] sm:$0xf] }
 0x18d   :  { %2637 = vmatpush.bf16.msrb.mxu1 %v3767_v35  ;;  %v2379_v16 = vpop.f32.mrf.mxu1  ;;  %v3304_v33 = vld [vmem:[#allocation13 + $0x178] sm:$0xf0]  ;;  %v4330_v12 = vld [vmem:[#allocation13 + $0x26c] sm:$0xf] }
 0x18e   :  { %2661 = vmatpush.bf16.msrb.mxu3 %v4055_v24  ;;  %4202 = vmatmul.msk.bf16.vlgmr.msrb.gmra.mxu0 %vm5413_vm1, %v5402_v46  ;;  %v3339_v24 = vor.u32 %v4306_v47, %v3336_v0  ;;  %v2380_v35 = vadd.f32 %v2379_v16, %v2367_v1  ;;  %v3448_v19 = vld [vmem:[#allocation13 + $0x298] sm:$0xf0]  ;;  %v4294_v47 = vld [vmem:[#allocation13 + $0x14c] sm:$0xf] }
 0x18f   :  { %2669 = vmatpush.bf16.msra.mxu0 %v3243_v40  ;;  %v3611_v40 = vor.u32 %v4374_v36, %v3608_v5  ;;  %v3160_v55 = vld [vmem:[#allocation13 + $0x58] sm:$0xf0]  ;;  %v4258_v5 = vld [vmem:[#allocation13 + $0x2c] sm:$0xf] }
 0x190   :  { %2649 = vmatpush.bf16.msrb.mxu2 %v3911_v52  ;;  %4205 = vmatmul.msk.bf16.vlgmr.msrb.gmra.mxu1 %vm5430_vm3, %v5411_v57  ;;  %v4370_v52 = vld [vmem:[#allocation13 + $0x3ac] sm:$0xf]  ;;  %v3288_v0 = vld [vmem:[#allocation13 + $0x158] sm:$0xf0]  ;;  %v3163_v59 = vor.u32 %v4262_v44, %v3160_v55 }
 0x191   :  { %2682 = vmatpush.bf16.msra.mxu1 %v3371_v53  ;;  %v3195_v53 = vor.u32 %v4270_v28, %v3192_v51  ;;  %v3595_v8 = vor.u32 %v4370_v52, %v3592_v18  ;;  %v3432_v49 = vld [vmem:[#allocation13 + $0x278] sm:$0xf0]  ;;  %v3291_v36 = vor.u32 %v4294_v47, %v3288_v0  ;;  %v4290_v16 = vld [vmem:[#allocation13 + $0x12c] sm:$0xf] }
 0x192   :  { %2662 = vmatpush.bf16.msrb.mxu3 %v4039_v62  ;;  %v4266_v62 = vld [vmem:[#allocation13 + $0x6c] sm:$0xf]  ;;  %v2368_v9 = vpop.f32.mrf.mxu0  ;;  %v3560_v1 = vld [vmem:[#allocation13 + $0x378] sm:$0xf0]  ;;  %v3435_v51 = vor.u32 %v4330_v12, %v3432_v49 }
 0x193   :  { %2670 = vmatpush.bf16.msra.mxu0 %v3227_v13  ;;  %v4334_v13 = vld [vmem:[#allocation13 + $0x28c] sm:$0xf]  ;;  %v3179_v7 = vor.u32 %v4266_v62, %v3176_v41  ;;  %v3416_v38 = vld [vmem:[#allocation13 + $0x258] sm:$0xf0] }
 0x194   :  { %2650 = vmatpush.bf16.msrb.mxu2 %v3895_v50  ;;  %v3307_v50 = vor.u32 %v4298_v11, %v3304_v33  ;;  %v3544_v52 = vld [vmem:[#allocation13 + $0x358] sm:$0xf0]  ;;  %v4254_v18 = vld [vmem:[#allocation13 + $0xc] sm:$0xf] }
 0x195   :  { %2683 = vmatpush.bf16.msra.mxu1 %v3355_v20  ;;  %v3576_v20 = vld [vmem:[#allocation13 + $0x398] sm:$0xf0]  ;;  %v4410_v9 = vld [vmem:[#allocation13 + $0x4ec] sm:$0xf] }
 0x196   :  { %2663 = vmatpush.bf16.msrb.mxu3 %v4023_v32  ;;  %v2381_v32 = vpop.f32.mrf.mxu1  ;;  %v3128_v41 = vld [vmem:[#allocation13 + $0x18] sm:$0xf0]  ;;  %v4354_v44 = vld [vmem:[#allocation13 + $0x32c] sm:$0xf] }
 0x197   :  { %4208 = vmatmul.msk.bf16.vlgmr.msrb.gmra.mxu2 %vm5451_vm11, %v5440_v17  ;;  %2671 = vmatpush.bf16.msra.mxu0 %v3211_v25  ;;  %v4362_v25 = vld [vmem:[#allocation13 + $0x36c] sm:$0xf]  ;;  %v3256_v11 = vld [vmem:[#allocation13 + $0x118] sm:$0xf0] }
 0x198   :  { %2695 = vmatpush.bf16.msra.mxu2 %v3499_v6  ;;  %v3451_v6 = vor.u32 %v4334_v13, %v3448_v19  ;;  %v3563_v58 = vor.u32 %v4362_v25, %v3560_v1  ;;  %v3752_v13 = vld [vmem:[#allocation13 + $0x4f8] sm:$0xf0]  ;;  %v4406_v47 = vld [vmem:[#allocation13 + $0x4cc] sm:$0xf] }
 0x199   :  { %4211 = vmatmul.msk.bf16.vlgmr.msrb.gmra.mxu3 %vm5462_vm14, %v5449_v34  ;;  %2684 = vmatpush.bf16.msra.mxu1 %v3339_v24  ;;  %v3144_v24 = vld [vmem:[#allocation13 + $0x38] sm:$0xf0]  ;;  %v2392_v28 = vpop.f32.mrf.mxu2  ;;  %v4438_v25 = vld [vmem:[#allocation13 + $0x5cc] sm:$0xf] }
 0x19a   :  { %2708 = vmatpush.bf16.msra.mxu3 %v3627_v23  ;;  %v3579_v23 = vor.u32 %v4366_v42, %v3576_v20  ;;  %v2393_v26 = vadd.f32 %v2392_v28, %v2380_v35  ;;  %v3147_v48 = vor.u32 %v4258_v5, %v3144_v24  ;;  %v4442_v35 = vld [vmem:[#allocation13 + $0x5ec] sm:$0xf]  ;;  %v3400_v20 = vld [vmem:[#allocation13 + $0x238] sm:$0xf0] }
 0x19b   :  { %2672 = vmatpush.bf16.msra.mxu0 %v3195_v53  ;;  %v4358_v53 = vld [vmem:[#allocation13 + $0x34c] sm:$0xf]  ;;  %v3528_v55 = vld [vmem:[#allocation13 + $0x338] sm:$0xf0] }
 0x19c   :  { %2696 = vmatpush.bf16.msra.mxu2 %v3483_v22  ;;  %v3272_v22 = vld [vmem:[#allocation13 + $0x138] sm:$0xf0]  ;;  %v3547_v19 = vor.u32 %v4358_v53, %v3544_v52  ;;  %v4322_v42 = vld [vmem:[#allocation13 + $0x22c] sm:$0xf]  ;;  %v3531_v5 = vor.u32 %v4354_v44, %v3528_v55 }
 0x19d   :  { %2685 = vmatpush.bf16.msra.mxu1 %v3323_v39  ;;  %v2405_v39 = vpop.f32.mrf.mxu3  ;;  %v3275_v62 = vor.u32 %v4290_v16, %v3272_v22  ;;  %v3403_v49 = vor.u32 %v4322_v42, %v3400_v20  ;;  %v3864_v1 = vld [vmem:[#allocation13 + $0x5d8] sm:$0xf0]  ;;  %v4318_v24 = vld [vmem:[#allocation13 + $0x20c] sm:$0xf] }
 0x19e   :  { %2709 = vmatpush.bf16.msra.mxu3 %v3611_v40  ;;  %v4326_v40 = vld [vmem:[#allocation13 + $0x24c] sm:$0xf]  ;;  %v2406_v33 = vadd.f32 %v2405_v39, %v2393_v26  ;;  %v3384_v28 = vld [vmem:[#allocation13 + $0x218] sm:$0xf0] }
 0x19f   :  { %2673 = vmatpush.bf16.msra.mxu0 %v3179_v7  ;;  %v3880_v7 = vld [vmem:[#allocation13 + $0x5f8] sm:$0xf0]  ;;  %v4474_v26 = vld [vmem:[#allocation13 + $0x6ec] sm:$0xf]  ;;  %v3387_v39 = vor.u32 %v4318_v24, %v3384_v28 }
 0x1a0   :  { %2697 = vmatpush.bf16.msra.mxu2 %v3467_v45  ;;  %v4286_v45 = vld [vmem:[#allocation13 + $0x10c] sm:$0xf]  ;;  %v3883_v12 = vor.u32 %v4442_v35, %v3880_v7  ;;  %v3512_v22 = vld [vmem:[#allocation13 + $0x318] sm:$0xf0] }
 0x1a1   :  { %2686 = vmatpush.bf16.msra.mxu1 %v3307_v50  ;;  %v3131_v50 = vor.u32 %v4254_v18, %v3128_v41  ;;  %v3259_v32 = vor.u32 %v4286_v45, %v3256_v11  ;;  %v2418_v0 = vpop.f32.mrf.mxu0  ;;  %v4506_v53 = vld [vmem:[#allocation13 + $0x7ec] sm:$0xf]  ;;  %v4136_v52 = vld [vmem:[#allocation13 + $0x7f8] sm:$0xf0]  ;;  %v3867_v18 = vor.u32 %v4438_v25, %v3864_v1  ;;  %v1070_v1 = vperm.slane %v5508_v60, 1 }
 0x1a2   :  { %2710 = vmatpush.bf16.msra.mxu3 %v3595_v8  ;;  %v3419_v8 = vor.u32 %v4326_v40, %v3416_v38  ;;  %v3720_v41 = vld [vmem:[#allocation13 + $0x4b8] sm:$0xf0]  ;;  %v4502_v7 = vld [vmem:[#allocation13 + $0x7cc] sm:$0xf] }
 0x1a3   :  { %2674 = vmatpush.bf16.msra.mxu0 %v3163_v59  ;;  %v3736_v59 = vld [vmem:[#allocation13 + $0x4d8] sm:$0xf0]  ;;  %v2431_v16 = vpop.f32.mrf.mxu1  ;;  %v4430_v55 = vld [vmem:[#allocation13 + $0x58c] sm:$0xf] }
 0x1a4   :  { %2698 = vmatpush.bf16.msra.mxu2 %v3451_v6  ;;  %v3755_v6 = vor.u32 %v4410_v9, %v3752_v13  ;;  %v4139_v9 = vor.u32 %v4506_v53, %v4136_v52  ;;  %v4470_v13 = vld [vmem:[#allocation13 + $0x6cc] sm:$0xf]  ;;  %v3992_v35 = vld [vmem:[#allocation13 + $0x6d8] sm:$0xf0] }
 0x1a5   :  { %2687 = vmatpush.bf16.msra.mxu1 %v3291_v36  ;;  %v2419_v36 = vadd.f32 %v2418_v0, %v2406_v33  ;;  %v2407_v38 = vpop.f32.mrf.mxu3  ;;  %v4434_v33 = vld [vmem:[#allocation13 + $0x5ac] sm:$0xf]  ;;  %v4120_v42 = vld [vmem:[#allocation13 + $0x7d8] sm:$0xf0]  ;;  %v3995_v44 = vor.u32 %v4470_v13, %v3992_v35 }
 0x1a6   :  { %2711 = vmatpush.bf16.msra.mxu3 %v3579_v23  ;;  %v2394_v23 = vpop.f32.mrf.mxu2  ;;  %v3688_v25 = vld [vmem:[#allocation13 + $0x478] sm:$0xf0]  ;;  %v4422_v52 = vld [vmem:[#allocation13 + $0x54c] sm:$0xf] }
 0x1a7   :  { %2675 = vmatpush.bf16.msra.mxu0 %v3147_v48  ;;  %v5523_v40 = vadd.f32 %v2431_v16, %v2419_v36  ;;  %v3739_v48 = vor.u32 %v4406_v47, %v3736_v59  ;;  %v3976_v47 = vld [vmem:[#allocation13 + $0x6b8] sm:$0xf0]  ;;  %v4498_v23 = vld [vmem:[#allocation13 + $0x7ac] sm:$0xf] }
 0x1a8   :  { %2699 = vmatpush.bf16.msra.mxu2 %v3435_v51  ;;  %v4350_v51 = vld [vmem:[#allocation13 + $0x30c] sm:$0xf]  ;;  %v3816_v24 = vld [vmem:[#allocation13 + $0x578] sm:$0xf0] }
 0x1a9   :  { %2688 = vmatpush.bf16.msra.mxu1 %v3275_v62  ;;  %v4402_v62 = vld [vmem:[#allocation13 + $0x4ac] sm:$0xf]  ;;  %v3515_v45 = vor.u32 %v4350_v51, %v3512_v22  ;;  %v2420_v20 = vpop.f32.mrf.mxu0  ;;  %v3960_v28 = vld [vmem:[#allocation13 + $0x698] sm:$0xf0] }
 0x1aa   :  { %2712 = vmatpush.bf16.msra.mxu3 %v3563_v58  ;;  %v4008_v58 = vld [vmem:[#allocation13 + $0x6f8] sm:$0xf0]  ;;  %v4394_v59 = vld [vmem:[#allocation13 + $0x46c] sm:$0xf]  ;;  %v3963_v53 = vor.u32 %v4462_v30, %v3960_v28 }
 0x1ab   :  { %2676 = vmatpush.bf16.msra.mxu0 %v3131_v50  ;;  %v4011_v11 = vor.u32 %v4474_v26, %v4008_v58  ;;  %v3704_v50 = vld [vmem:[#allocation13 + $0x498] sm:$0xf0]  ;;  %v2433_v31 = vpop.f32.mrf.mxu1  ;;  %v3691_v51 = vor.u32 %v4394_v59, %v3688_v25  ;;  %v4494_v16 = vld [vmem:[#allocation13 + $0x78c] sm:$0xf] }
 0x1ac   :  { %2700 = vmatpush.bf16.msra.mxu2 %v3419_v8  ;;  %v3848_v8 = vld [vmem:[#allocation13 + $0x5b8] sm:$0xf0]  ;;  %v4390_v26 = vld [vmem:[#allocation13 + $0x44c] sm:$0xf] }
 0x1ad   :  { %2689 = vmatpush.bf16.msra.mxu1 %v3259_v32  ;;  %v3851_v43 = vor.u32 %v4434_v33, %v3848_v8  ;;  %v3832_v32 = vld [vmem:[#allocation13 + $0x598] sm:$0xf0]  ;;  %v4490_v13 = vld [vmem:[#allocation13 + $0x76c] sm:$0xf] }
 0x1ae   :  { %2713 = vmatpush.bf16.msra.mxu3 %v3547_v19  ;;  %4214 = vmatmul.msk.bf16.vlgmr.msra.gmra.mxu0 %vm5281_vm13, %v5224_v37  ;;  %v3723_v19 = vor.u32 %v4402_v62, %v3720_v41  ;;  %v4398_v37 = vld [vmem:[#allocation13 + $0x48c] sm:$0xf]  ;;  %v4088_v22 = vld [vmem:[#allocation13 + $0x798] sm:$0xf0] }
 0x1af   :  { %2721 = vmatpush.bf16.msrb.mxu0 %v3755_v6  ;;  %v4466_v6 = vld [vmem:[#allocation13 + $0x6ac] sm:$0xf]  ;;  %v3707_v0 = vor.u32 %v4398_v37, %v3704_v50  ;;  %v3672_v58 = vld [vmem:[#allocation13 + $0x458] sm:$0xf0]  ;;  %v4091_v41 = vor.u32 %v4494_v16, %v4088_v22 }
 0x1b0   :  { %2701 = vmatpush.bf16.msra.mxu2 %v3403_v49  ;;  %4217 = vmatmul.msk.bf16.vlgmr.msra.gmra.mxu1 %vm5305_vm0, %v5259_v61  ;;  %v4123_v61 = vor.u32 %v4502_v7, %v4120_v42  ;;  %v3835_v49 = vor.u32 %v4430_v55, %v3832_v32  ;;  %v3979_v36 = vor.u32 %v4466_v6, %v3976_v47  ;;  %v4072_v35 = vld [vmem:[#allocation13 + $0x778] sm:$0xf0]  ;;  %v4386_v42 = vld [vmem:[#allocation13 + $0x42c] sm:$0xf] }
 0x1b1   :  { %2734 = vmatpush.bf16.msrb.mxu1 %v3883_v12  ;;  %v4104_v12 = vld [vmem:[#allocation13 + $0x7b8] sm:$0xf0]  ;;  %v2470_v2 = vpop.f32.mrf.mxu0  ;;  %v4454_v55 = vld [vmem:[#allocation13 + $0x64c] sm:$0xf] }
 0x1b2   :  { %2714 = vmatpush.bf16.msra.mxu3 %v3531_v5  ;;  %v4426_v5 = vld [vmem:[#allocation13 + $0x56c] sm:$0xf]  ;;  %v2444_v38 = vpop.f32.mrf.mxu2  ;;  %v3656_v20 = vld [vmem:[#allocation13 + $0x438] sm:$0xf0] }
 0x1b3   :  { %2722 = vmatpush.bf16.msrb.mxu0 %v3739_v48  ;;  %v2471_v48 = vadd.f32 %v2470_v2, %v1070_v1  ;;  %v2483_v62 = vpop.f32.mrf.mxu1  ;;  %v3784_v37 = vld [vmem:[#allocation13 + $0x538] sm:$0xf0]  ;;  %v3659_v31 = vor.u32 %v4386_v42, %v3656_v20  ;;  %v4414_v1 = vld [vmem:[#allocation13 + $0x50c] sm:$0xf] }
 0x1b4   :  { %2702 = vmatpush.bf16.msra.mxu2 %v3387_v39  ;;  %v2445_v39 = vadd.f32 %v2444_v38, %v5523_v40  ;;  %v2457_v33 = vpop.f32.mrf.mxu3  ;;  %v3928_v32 = vld [vmem:[#allocation13 + $0x658] sm:$0xf0]  ;;  %v4450_v30 = vld [vmem:[#allocation13 + $0x62c] sm:$0xf] }
 0x1b5   :  { %2735 = vmatpush.bf16.msrb.mxu1 %v3867_v18  ;;  %v3800_v18 = vld [vmem:[#allocation13 + $0x558] sm:$0xf0]  ;;  %v5539_v8 = vadd.f32 %v2483_v62, %v2471_v48  ;;  %v3931_v25 = vor.u32 %v4454_v55, %v3928_v32  ;;  %v4482_v22 = vld [vmem:[#allocation13 + $0x72c] sm:$0xf] }
 0x1b6   :  { %2715 = vmatpush.bf16.msra.mxu3 %v3515_v45  ;;  %v4458_v45 = vld [vmem:[#allocation13 + $0x66c] sm:$0xf]  ;;  %v3803_v7 = vor.u32 %v4422_v52, %v3800_v18  ;;  %v4056_v6 = vld [vmem:[#allocation13 + $0x758] sm:$0xf0] }
 0x1b7   :  { %4220 = vmatmul.msk.bf16.vlgmr.msra.gmra.mxu2 %vm5353_vm6, %v5314_v10  ;;  %2723 = vmatpush.bf16.msrb.mxu0 %v3723_v19  ;;  %v4107_v10 = vor.u32 %v4498_v23, %v4104_v12  ;;  %v5541_v19 = vadd.f32 %v2457_v33, %v2445_v39  ;;  %v4382_v12 = vld [vmem:[#allocation13 + $0x40c] sm:$0xf]  ;;  %v3912_v28 = vld [vmem:[#allocation13 + $0x638] sm:$0xf0] }
 0x1b8   :  { %2747 = vmatpush.bf16.msrb.mxu2 %v4011_v11  ;;  %v3944_v11 = vld [vmem:[#allocation13 + $0x678] sm:$0xf0]  ;;  %v4478_v18 = vld [vmem:[#allocation13 + $0x70c] sm:$0xf] }
 0x1b9   :  { %4223 = vmatmul.msk.bf16.vlgmr.msra.gmra.mxu3 %vm5376_vm9, %v5329_v3  ;;  %2736 = vmatpush.bf16.msrb.mxu1 %v3851_v43  ;;  %v3819_v3 = vor.u32 %v4426_v5, %v3816_v24  ;;  %v3947_v40 = vor.u32 %v4458_v45, %v3944_v11  ;;  %v4418_v43 = vld [vmem:[#allocation13 + $0x52c] sm:$0xf]  ;;  %v2775_v50 = vrot.slane %v5541_v19, 4  ;;  %v4040_v2 = vld [vmem:[#allocation13 + $0x738] sm:$0xf0] }
 0x1ba   :  { %2760 = vmatpush.bf16.msrb.mxu3 %v4139_v9  ;;  %v3675_v9 = vor.u32 %v4390_v26, %v3672_v58  ;;  %v3787_v23 = vor.u32 %v4418_v43, %v3784_v37  ;;  %v2446_v59 = vpop.f32.mrf.mxu2  ;;  %v3915_v58 = vor.u32 %v4450_v30, %v3912_v28  ;;  %v4043_v48 = vor.u32 %v4482_v22, %v4040_v2  ;;  %v3896_v52 = vld [vmem:[#allocation13 + $0x618] sm:$0xf0] }
 0x1bb   :  { %2724 = vmatpush.bf16.msrb.mxu0 %v3707_v0  ;;  %v2776_v47 = vadd.f32 %v2775_v50, %v5541_v19  ;;  %v2472_v0 = vpop.f32.mrf.mxu0  ;;  %v2485_v24 = vpop.f32.mrf.mxu1  ;;  %v4024_v39 = vld [vmem:[#allocation13 + $0x718] sm:$0xf0] }
 0x1bc   :  { %2748 = vmatpush.bf16.msrb.mxu2 %v3995_v44  ;;  %v4075_v44 = vor.u32 %v4490_v13, %v4072_v35 }
 0x1bd   :  { %2737 = vmatpush.bf16.msrb.mxu1 %v3835_v49  ;;  %v3640_v49 = vld [vmem:[#allocation13 + $0x418] sm:$0xf0]  ;;  %v2777_v5 = vrot.slane %v2776_v47, 2 }
 0x1be   :  { %2761 = vmatpush.bf16.msrb.mxu3 %v4123_v61  ;;  %v4486_v61 = vld [vmem:[#allocation13 + $0x74c] sm:$0xf]  ;;  %v3643_v16 = vor.u32 %v4382_v12, %v3640_v49 }
 0x1bf   :  { %2725 = vmatpush.bf16.msrb.mxu0 %v3691_v51  ;;  %v2459_v51 = vpop.f32.mrf.mxu3 }
 0x1c0   :  { %2749 = vmatpush.bf16.msrb.mxu2 %v3979_v36  ;;  %v3768_v36 = vld [vmem:[#allocation13 + $0x518] sm:$0xf0] }
 0x1c1   :  { %2738 = vmatpush.bf16.msrb.mxu1 %v3819_v3  ;;  %v2778_v3 = vadd.f32 %v2777_v5, %v2776_v47  ;;  %v3771_v26 = vor.u32 %v4414_v1, %v3768_v36  ;;  %v1071_v36 = vperm.slane %v5508_v60, 2 }
 0x1c2   :  { %2762 = vmatpush.bf16.msrb.mxu3 %v4107_v10  ;;  %v4059_v10 = vor.u32 %v4486_v61, %v4056_v6 }
 0x1c3   :  { %2726 = vmatpush.bf16.msrb.mxu0 %v3675_v9  ;;  %v2779_v38 = vrot.slane %v2778_v3, 1  ;;  %v4027_v9 = vor.u32 %v4478_v18, %v4024_v39 }
 0x1c4   :  { %2750 = vmatpush.bf16.msrb.mxu2 %v3963_v53  ;;  %v4446_v53 = vld [vmem:[#allocation13 + $0x60c] sm:$0xf] }
 0x1c5   :  { %2739 = vmatpush.bf16.msrb.mxu1 %v3803_v7  ;;  %v2780_v62 = vadd.f32 %v2779_v38, %v2778_v3  ;;  %v3899_v45 = vor.u32 %v4446_v53, %v3896_v52 }
 0x1c6   :  { %2763 = vmatpush.bf16.msrb.mxu3 %v4091_v41  ;;  %v2496_v41 = vpop.f32.mrf.mxu2 }
 0x1c7   :  { %2727 = vmatpush.bf16.msrb.mxu0 %v3659_v31  ;;  %v2799_v11 = vmul.f32 %v2780_v62, %v4889_v14  ;;  %v2497_v33 = vadd.f32 %v2496_v41, %v5539_v8  ;;  %v2509_v13 = vpop.f32.mrf.mxu3 }
 0x1c8   :  { %2751 = vmatpush.bf16.msrb.mxu2 %v3947_v40 }
 0x1c9   :  { %2740 = vmatpush.bf16.msrb.mxu1 %v3787_v23  ;;  %v5554_v35 = vsub.f32 %v5541_v19, %v2799_v11  ;;  %v2510_v7 = vadd.f32 %v2509_v13, %v2497_v33 }
 0x1ca   :  { %2764 = vmatpush.bf16.msrb.mxu3 %v4075_v44 }
 0x1cb   :  { %2728 = vmatpush.bf16.msrb.mxu0 %v3643_v16  ;;  %v2807_v42 = vmul.f32 %v5554_v35, %v5554_v35  ;;  %v2522_v63 = vpop.f32.mrf.mxu0 }
 0x1cc   :  { %2752 = vmatpush.bf16.msrb.mxu2 %v3931_v25  ;;  %v2523_v19 = vadd.f32 %v2522_v63, %v2510_v7  ;;  %v5568_v25 = vstv %s2913_s4 }
 0x1cd   :  { %2741 = vmatpush.bf16.msrb.mxu1 %v3771_v26  ;;  %v2811_v8 = vrot.slane %v2807_v42, 4  ;;  %v2535_v20 = vpop.f32.mrf.mxu1  ;;  %v2915_v5 = vxor.u32 %v5568_v25, %v5143_v54  ;;  %v2916_v26 = vxor.u32 %v5568_v25, %v5167_v27 }
 0x1ce   :  { %2765 = vmatpush.bf16.msrb.mxu3 %v4059_v10  ;;  %4226 = vmatmul.msk.bf16.vlgmr.msrb.gmra.mxu0 %vm5413_vm1, %v5402_v46  ;;  %v2498_v46 = vpop.f32.mrf.mxu2  ;;  %v2536_v43 = vadd.f32 %v2535_v20, %v2523_v19 }
 0x1cf   :  { %v2511_v15 = vpop.f32.mrf.mxu3  ;;  %v2919_v22 = vshrl.u32 %v2915_v5, 16  ;;  %v2920_v53 = vshrl.u32 %v2916_v26, 16 }
 0x1d0   :  { %2753 = vmatpush.bf16.msrb.mxu2 %v3915_v58  ;;  %4229 = vmatmul.msk.bf16.vlgmr.msrb.gmra.mxu1 %vm5430_vm3, %v5411_v57  ;;  %v2812_v57 = vadd.f32 %v2811_v8, %v2807_v42 }
 0x1d1   :  { %v2924_v11 = vxor.u32 %v2920_v53, %v2916_v26 }
 0x1d2   :  { %2766 = vmatpush.bf16.msrb.mxu3 %v4043_v48  ;;  %v2813_v40 = vrot.slane %v2812_v57, 2  ;;  %v2923_v48 = vxor.u32 %v2919_v22, %v2915_v5 }
 0x1d3   :  { %v2524_v50 = vpop.f32.mrf.mxu0 }
 0x1d4   :  { %2754 = vmatpush.bf16.msrb.mxu2 %v3899_v45  ;;  %v2814_v37 = vadd.f32 %v2813_v40, %v2812_v57  ;;  %v2927_v41 = vmul.u32 2146121005, %v2923_v48  ;;  %v2928_v57 = vmul.u32 2146121005, %v2924_v11 }
 0x1d5   :  { %v2537_v55 = vpop.f32.mrf.mxu1 }
 0x1d6   :  { %2767 = vmatpush.bf16.msrb.mxu3 %v4027_v9  ;;  %v2815_v44 = vrot.slane %v2814_v37, 1  ;;  %v2931_v8 = vshrl.u32 %v2927_v41, 15  ;;  %v2932_v40 = vshrl.u32 %v2928_v57, 15 }
 0x1d7   :  { %4232 = vmatmul.msk.bf16.vlgmr.msrb.gmra.mxu2 %vm5451_vm11, %v5440_v17 }
 0x1d8   :  { %v2816_v31 = vadd.f32 %v2815_v44, %v2814_v37  ;;  %v2935_v19 = vxor.u32 %v2931_v8, %v2927_v41  ;;  %v2936_v55 = vxor.u32 %v2932_v40, %v2928_v57 }
 0x1d9   :  { %4235 = vmatmul.msk.bf16.vlgmr.msrb.gmra.mxu3 %vm5462_vm14, %v5449_v34 }
 0x1da   :  { %v2548_v32 = vpop.f32.mrf.mxu2  ;;  %v2835_v6 = vmul.f32 %v2816_v31, %v4889_v14  ;;  %v2939_v44 = vmul.u32 2221713035, %v2935_v19 }
 0x1db   :  { %v2549_v21 = vadd.f32 %v2548_v32, %v2536_v43  ;;  %v5584_v32 = vld [vmem:[%s5630_s8] sm:$0xf] }
 0x1dc   :  { %v2561_v17 = vpop.f32.mrf.mxu3  ;;  %v2839_v0 = vadd.f32 1e-05, %v2835_v6  ;;  %v2888_v6 = vperm.slane %v5584_v32, 0 }
 0x1dd   :  { %v2562_v61 = vadd.f32 %v2561_v17, %v2549_v21  ;;  %v2943_v21 = vshrl.u32 %v2939_v44, 16 }
 0x1de   :  { %4543 = vrsqrt.f32 %v2839_v0  ;;  %vm2849_vm0 = vweird.f32 %v2839_v0 }
 0x1df   :  { %v2781_v4 = vrot.slane %v2562_v61, 4 }
 0x1e1   :  { %v2782_v34 = vadd.f32 %v2781_v4, %v2562_v61  ;;  %v2940_v4 = vmul.u32 2221713035, %v2936_v55 }
 0x1e2   :  { %v2550_v47 = vpop.f32.mrf.mxu2 }
 0x1e3   :  { %v2783_v23 = vrot.slane %v2782_v34, 2  ;;  %v5588_v47 = vld [vmem:[#allocation15] sm:$0xf]  ;;  %v2944_v5 = vshrl.u32 %v2940_v4, 16 }
 0x1e4   :  { %v2563_v12 = vpop.f32.mrf.mxu3  ;;  %v4544_v30 = vpop.eup %4543  ;;  %v2902_v48 = vperm.slane %v5588_v47, 1 }
 0x1e5   :  { %v2784_v49 = vadd.f32 %v2783_v23, %v2782_v34  ;;  %v2844_v58 = vmul.f32 %v4544_v30, %v2839_v0  ;;  %vm2850_vm13 = vweird.f32 %v4544_v30 }
 0x1e6   :  { %vm2851_vm6 = vmor %vm2849_vm0, %vm2850_vm13 }
 0x1e7   :  { %v2785_v59 = vrot.slane %v2784_v49, 1  ;;  %v2845_v52 = vmul.f32 %v4544_v30, %v2844_v58 }
 0x1e9   :  { %v2786_v1 = vadd.f32 %v2785_v59, %v2784_v49  ;;  %v2846_v33 = vmul.f32 0.5, %v2845_v52  ;;  %v2947_v59 = vxor.u32 %v2943_v21, %v2939_v44  ;;  %v2917_v21 = vxor.u32 %v5568_v25, %v5204_v29 }
 0x1eb   :  { %v2800_v24 = vmul.f32 %v2786_v1, %v4889_v14  ;;  %v2574_v10 = vpop.f32.mrf.mxu0  ;;  %v2847_v63 = vsub.f32 1.5, %v2846_v33 }
 0x1ec   :  { %v2575_v51 = vadd.f32 %v2574_v10, %v1071_v36  ;;  %v2901_v36 = vperm.slane %v5588_v47, 0 }
 0x1ed   :  { %v5574_v28 = vsub.f32 %v2562_v61, %v2800_v24  ;;  %v2587_v16 = vpop.f32.mrf.mxu1  ;;  %v2848_v43 = vmul.f32 %v4544_v30, %v2847_v63 }
 0x1ee   :  { %v2588_v3 = vadd.f32 %v2587_v16, %v2575_v51  ;;  %v2948_v16 = vxor.u32 %v2944_v5, %v2940_v4  ;;  %v2921_v4 = vshrl.u32 %v2917_v21, 16 }
 0x1ef   :  { %v2808_v2 = vmul.f32 %v5574_v28, %v5574_v28  ;;  %v2852_v31 = vsel %vm2851_vm6, %v4544_v30, %v2848_v43 }
 0x1f0   :  { %v2883_v61 = vmul.f32 %v2852_v31, %v5554_v35  ;;  %v2951_v35 = vshrl.u32 %v2947_v59, 31 }
 0x1f1   :  { %v2817_v38 = vrot.slane %v2808_v2, 4 }
 0x1f2   :  { %v2896_v1 = vmul.f32 %v2888_v6, %v2883_v61  ;;  %vm2955_vm2 = vcmp.eq.s32.totalorder %v2951_v35, 0 }
 0x1f3   :  { %v2818_v54 = vadd.f32 %v2817_v38, %v2808_v2  ;;  %v2576_v18 = vpop.f32.mrf.mxu0  ;;  %v2889_v2 = vperm.slane %v5584_v32, 1 }
 0x1f4   :  { %v2909_v51 = vadd.f32 %v2901_v36, %v2896_v1 }
 0x1f5   :  { %v2819_v39 = vrot.slane %v2818_v54, 2  ;;  %v2589_v62 = vpop.f32.mrf.mxu1 }
 0x1f6   :  { %vm2959_vm3 = vcmp.gt.f32.partialorder %v2909_v51, 0.0  ;;  %v2967_v18 = vmul.f32 2.0, %v2909_v51 }
 0x1f7   :  { %v2820_v45 = vadd.f32 %v2819_v39, %v2818_v54  ;;  %v2952_v54 = vshrl.u32 %v2948_v16, 31  ;;  %v5597_v39 = vld [vmem:[%s5632_s10] sm:$0xf]  ;;  %vm2963_vm4 = vmand %vm2955_vm2, %vm2959_vm3  ;;  %s4770_s10 = smov [#allocation16]  }
 0x1f8   :  { %v2978_v33 = vperm.slane %v5597_v39, 1  ;;  %s3029_s24 = sshll.u32 %s4770_s10, 4  ;;  %s3030_s24 = int_to_ptr.vmem [resolvable:$true] %s3029_s24 }
 0x1f9   :  { %v2821_v13 = vrot.slane %v2820_v45, 1  ;;  %vm2956_vm5 = vcmp.eq.s32.totalorder %v2952_v54, 0 }
 0x1fa   :  { %v2600_v9 = vpop.f32.mrf.mxu2 }
 0x1fb   :  { %v2601_v7 = vadd.f32 %v2600_v9, %v2588_v3  ;;  %v2822_v46 = vadd.f32 %v2821_v13, %v2820_v45  ;;  %v2971_v13 = vsel %vm2963_vm4, %v2967_v18, 0.0 }
 0x1fc   :  { %v2613_v42 = vpop.f32.mrf.mxu3 }
 0x1fd   :  { %v2614_v27 = vadd.f32 %v2613_v42, %v2601_v7  ;;  %v2836_v15 = vmul.f32 %v2822_v46, %v4889_v14 }
 0x1ff   :  { %v2840_v20 = vadd.f32 1e-05, %v2836_v15 }
 0x201   :  { %4545 = vrsqrt.f32 %v2840_v20  ;;  %vm2859_vm15 = vweird.f32 %v2840_v20 }
 0x202   :  { %v2602_v37 = vpop.f32.mrf.mxu2 }
 0x204   :  { %v2615_v50 = vpop.f32.mrf.mxu3 }
 0x207   :  { %v4546_v17 = vpop.eup %4545 }
 0x208   :  { %v2854_v34 = vmul.f32 %v4546_v17, %v2840_v20  ;;  %vm2860_vm9 = vweird.f32 %v4546_v17 }
 0x209   :  { %vm2861_vm1 = vmor %vm2859_vm15, %vm2860_vm9 }
 0x20a   :  { %v2855_v23 = vmul.f32 %v4546_v17, %v2854_v34 }
 0x20b   :  { %v2626_v0 = vpop.f32.mrf.mxu0 }
 0x20c   :  { %v2627_v12 = vadd.f32 %v2626_v0, %v2614_v27  ;;  %v2856_v24 = vmul.f32 0.5, %v2855_v23 }
 0x20d   :  { %v2639_v49 = vpop.f32.mrf.mxu1 }
 0x20e   :  { %v2640_v10 = vadd.f32 %v2639_v49, %v2627_v12  ;;  %v2857_v30 = vsub.f32 1.5, %v2856_v24  ;;  %v2925_v49 = vxor.u32 %v2921_v4, %v2917_v21 }
 0x210   :  { %v2858_v22 = vmul.f32 %v4546_v17, %v2857_v30  ;;  %v2929_v5 = vmul.u32 2146121005, %v2925_v49  ;;  %v1072_v30 = vperm.slane %v5508_v60, 3 }
 0x212   :  { %v2862_v26 = vsel %vm2861_vm1, %v4546_v17, %v2858_v22  ;;  %v2933_v29 = vshrl.u32 %v2929_v5, 15 }
 0x213   :  { %v2628_v3 = vpop.f32.mrf.mxu0  ;;  %v2884_v38 = vmul.f32 %v2862_v26, %v5574_v28  ;;  %v2977_v28 = vperm.slane %v5597_v39, 0 }
 0x214   :  { %v2937_v22 = vxor.u32 %v2933_v29, %v2929_v5 }
 0x215   :  { %v2641_v58 = vpop.f32.mrf.mxu1  ;;  %v2897_v53 = vmul.f32 %v2889_v2, %v2884_v38  ;;  %v2985_v46 = vmul.f32 %v2977_v28, %v2971_v13 }
 0x216   :  { %v2941_v26 = vmul.u32 2221713035, %v2937_v22 }
 0x217   :  { %v2910_v45 = vadd.f32 %v2902_v48, %v2897_v53 }
 0x219   :  { %vm2960_vm7 = vcmp.gt.f32.partialorder %v2910_v45, 0.0  ;;  %v2968_v9 = vmul.f32 2.0, %v2910_v45 }
 0x21a   :  { %v2652_v52 = vpop.f32.mrf.mxu2  ;;  %vm2964_vm8 = vmand %vm2956_vm5, %vm2960_vm7 }
 0x21b   :  { %v2653_v62 = vadd.f32 %v2652_v52, %v2640_v10  ;;  %v2972_v42 = vsel %vm2964_vm8, %v2968_v9, 0.0  ;;  %v2945_v52 = vshrl.u32 %v2941_v26, 16 }
 0x21c   :  { %v2665_v41 = vpop.f32.mrf.mxu3  ;;  %v2986_v27 = vmul.f32 %v2978_v33, %v2972_v42  ;;  %v2890_v33 = vperm.slane %v5584_v32, 2 }
 0x21d   :  { %v2666_v11 = vadd.f32 %v2665_v41, %v2653_v62  ;;  %v2949_v45 = vxor.u32 %v2945_v52, %v2941_v26  ;;  %v2891_v52 = vperm.slane %v5584_v32, 3  ;;  %v4524_v32 = vld [vmem:[#allocation3] ss:$0 sm:$0xff] }
 0x21e   :  { %v5601_v19 = vadd.f32 %v2986_v27, %v2985_v46 }
 0x21f   :  { %v2787_v7 = vrot.slane %v2666_v11, 4  ;;  %v2953_v46 = vshrl.u32 %v2949_v45, 31 }
 0x221   :  { %v2788_v8 = vadd.f32 %v2787_v7, %v2666_v11  ;;  %vm2957_vm14 = vcmp.eq.s32.totalorder %v2953_v46, 0 }
 0x222   :  { %v2654_v57 = vpop.f32.mrf.mxu2 }
 0x223   :  { %v2789_v63 = vrot.slane %v2788_v8, 2 }
 0x224   :  { %v2667_v15 = vpop.f32.mrf.mxu3 }
 0x225   :  { %v2790_v20 = vadd.f32 %v2789_v63, %v2788_v8  ;;  %v2903_v8 = vperm.slane %v5588_v47, 2 }
 0x227   :  { %v2791_v40 = vrot.slane %v2790_v20, 1 }
 0x229   :  { %v2792_v43 = vadd.f32 %v2791_v40, %v2790_v20 }
 0x22b   :  { %v2801_v37 = vmul.f32 %v2792_v43, %v4889_v14  ;;  %v2678_v50 = vpop.f32.mrf.mxu0  ;;  %v2979_v43 = vperm.slane %v5597_v39, 2 }
 0x22c   :  { %v2679_v16 = vadd.f32 %v2678_v50, %v1072_v30 }
 0x22d   :  { %v2691_v44 = vpop.f32.mrf.mxu1  ;;  %v2805_v55 = vsub.f32 %v2666_v11, %v2801_v37 }
 0x22e   :  { %v2692_v3 = vadd.f32 %v2691_v44, %v2679_v16 }
 0x22f   :  { %v2809_v31 = vmul.f32 %v2805_v55, %v2805_v55 }
 0x231   :  { %v2823_v17 = vrot.slane %v2809_v31, 4 }
 0x233   :  { %v2824_v61 = vadd.f32 %v2823_v17, %v2809_v31  ;;  %v2680_v6 = vpop.f32.mrf.mxu0 }
 0x235   :  { %v2693_v34 = vpop.f32.mrf.mxu1  ;;  %v2825_v0 = vrot.slane %v2824_v61, 2 }
 0x237   :  { %v2826_v23 = vadd.f32 %v2825_v0, %v2824_v61 }
 0x239   :  { %v2827_v1 = vrot.slane %v2826_v23, 1 }
 0x23a   :  { %v2704_v12 = vpop.f32.mrf.mxu2 }
 0x23b   :  { %v2828_v36 = vadd.f32 %v2827_v1, %v2826_v23  ;;  %v2705_v48 = vadd.f32 %v2704_v12, %v2692_v3 }
 0x23c   :  { %v2717_v59 = vpop.f32.mrf.mxu3 }
 0x23d   :  { %v2837_v24 = vmul.f32 %v2828_v36, %v4889_v14  ;;  %v2718_v62 = vadd.f32 %v2717_v59, %v2705_v48  ;;  %v2918_v59 = vxor.u32 %v5568_v25, %v5222_v56 }
 0x23f   :  { %v2841_v10 = vadd.f32 1e-05, %v2837_v24  ;;  %v2922_v5 = vshrl.u32 %v2918_v59, 16 }
 0x241   :  { %4547 = vrsqrt.f32 %v2841_v10  ;;  %vm2869_vm11 = vweird.f32 %v2841_v10  ;;  %v2926_v30 = vxor.u32 %v2922_v5, %v2918_v59 }
 0x242   :  { %v2706_v35 = vpop.f32.mrf.mxu2 }
 0x244   :  { %v2719_v51 = vpop.f32.mrf.mxu3 }
 0x245   :  { %v2930_v51 = vmul.u32 2146121005, %v2926_v30 }
 0x247   :  { %v4548_v2 = vpop.eup %4547  ;;  %v2934_v22 = vshrl.u32 %v2930_v51, 15 }
 0x248   :  { %v2864_v58 = vmul.f32 %v4548_v2, %v2841_v10  ;;  %vm2870_vm10 = vweird.f32 %v4548_v2 }
 0x249   :  { %vm2871_vm12 = vmor %vm2869_vm11, %vm2870_vm10 }
 0x24a   :  { %v2865_v53 = vmul.f32 %v4548_v2, %v2864_v58 }
 0x24b   :  { %v2730_v38 = vpop.f32.mrf.mxu0 }
 0x24c   :  { %v2866_v18 = vmul.f32 0.5, %v2865_v53  ;;  %v2731_v60 = vadd.f32 %v2730_v38, %v2718_v62  ;;  %v2904_v62 = vperm.slane %v5588_v47, 3 }
 0x24d   :  { %v2743_v54 = vpop.f32.mrf.mxu1 }
 0x24e   :  { %v2867_v41 = vsub.f32 1.5, %v2866_v18  ;;  %v2744_v42 = vadd.f32 %v2743_v54, %v2731_v60 }
 0x250   :  { %v2868_v11 = vmul.f32 %v4548_v2, %v2867_v41 }
 0x252   :  { %v2872_v13 = vsel %vm2871_vm12, %v4548_v2, %v2868_v11  ;;  %v2938_v2 = vxor.u32 %v2934_v22, %v2930_v51  ;;  %v2980_v11 = vperm.slane %v5597_v39, 3 }
 0x253   :  { %v2732_v28 = vpop.f32.mrf.mxu0  ;;  %v2885_v7 = vmul.f32 %v2872_v13, %v2805_v55 }
 0x254   :  { %v2942_v26 = vmul.u32 2221713035, %v2938_v2 }
 0x255   :  { %v2745_v9 = vpop.f32.mrf.mxu1  ;;  %v2898_v57 = vmul.f32 %v2890_v33, %v2885_v7  ;;  %v4769_v7 = vmov 0  }
 0x256   :  { %v2946_v56 = vshrl.u32 %v2942_v26, 16  ;;  %4523 = vset.pattern.permute.xlu0 %v4769_v7 }
 0x257   :  { %v2911_v40 = vadd.f32 %v2903_v8, %v2898_v57 }
 0x258   :  { %v2950_v54 = vxor.u32 %v2946_v56, %v2942_v26 }
 0x259   :  { %vm2961_vm13 = vcmp.gt.f32.partialorder %v2911_v40, 0.0  ;;  %v2969_v50 = vmul.f32 2.0, %v2911_v40 }
 0x25a   :  { %v2756_v27 = vpop.f32.mrf.mxu2  ;;  %vm2965_vm0 = vmand %vm2957_vm14, %vm2961_vm13  ;;  %v2954_v41 = vshrl.u32 %v2950_v54, 31 }
 0x25b   :  { %v2757_v63 = vadd.f32 %v2756_v27, %v2744_v42  ;;  %v2973_v31 = vsel %vm2965_vm0, %v2969_v50, 0.0 }
 0x25c   :  { %v2769_v15 = vpop.f32.mrf.mxu3  ;;  %v2987_v21 = vmul.f32 %v2979_v43, %v2973_v31  ;;  %vm2958_vm1 = vcmp.eq.s32.totalorder %v2954_v41, 0 }
 0x25d   :  { %v2770_v20 = vadd.f32 %v2769_v15, %v2757_v63 }
 0x25e   :  { %v2990_v6 = vadd.f32 %v5601_v19, %v2987_v21 }
 0x25f   :  { %v2793_v37 = vrot.slane %v2770_v20, 4 }
 0x261   :  { %v2794_v44 = vadd.f32 %v2793_v37, %v2770_v20 }
 0x262   :  { %v2758_v55 = vpop.f32.mrf.mxu2 }
 0x263   :  { %v2795_v17 = vrot.slane %v2794_v44, 2 }
 0x264   :  { %v2771_v61 = vpop.f32.mrf.mxu3 }
 0x265   :  { %v2796_v4 = vadd.f32 %v2795_v17, %v2794_v44 }
 0x267   :  { %v2797_v34 = vrot.slane %v2796_v4, 1 }
 0x269   :  { %v2798_v0 = vadd.f32 %v2797_v34, %v2796_v4 }
 0x26b   :  { %v2802_v23 = vmul.f32 %v2798_v0, %v4889_v14 }
 0x26d   :  { %v2806_v12 = vsub.f32 %v2770_v20, %v2802_v23 }
 0x26f   :  { %v2810_v49 = vmul.f32 %v2806_v12, %v2806_v12 }
 0x271   :  { %v2829_v1 = vrot.slane %v2810_v49, 4 }
 0x273   :  { %v2830_v36 = vadd.f32 %v2829_v1, %v2810_v49 }
 0x275   :  { %v2831_v24 = vrot.slane %v2830_v36, 2 }
 0x277   :  { %v2832_v10 = vadd.f32 %v2831_v24, %v2830_v36 }
 0x279   :  { %v2833_v35 = vrot.slane %v2832_v10, 1 }
 0x27b   :  { %v2834_v29 = vadd.f32 %v2833_v35, %v2832_v10 }
 0x27d   :  { %v2838_v19 = vmul.f32 %v2834_v29, %v4889_v14 }
 0x27f   :  { %v2842_v16 = vadd.f32 1e-05, %v2838_v19 }
 0x281   :  { %4549 = vrsqrt.f32 %v2842_v16  ;;  %vm2879_vm9 = vweird.f32 %v2842_v16 }
 0x287   :  { %v4550_v3 = vpop.eup %4549 }
 0x288   :  { %v2874_v58 = vmul.f32 %v4550_v3, %v2842_v16  ;;  %vm2880_vm6 = vweird.f32 %v4550_v3 }
 0x289   :  { %vm2881_vm15 = vmor %vm2879_vm9, %vm2880_vm6 }
 0x28a   :  { %v2875_v38 = vmul.f32 %v4550_v3, %v2874_v58 }
 0x28c   :  { %v2876_v25 = vmul.f32 0.5, %v2875_v38 }
 0x28e   :  { %v2877_v48 = vsub.f32 1.5, %v2876_v25 }
 0x290   :  { %v2878_v53 = vmul.f32 %v4550_v3, %v2877_v48 }
 0x292   :  { %v2882_v18 = vsel %vm2881_vm15, %v4550_v3, %v2878_v53 }
 0x293   :  { %v2886_v14 = vmul.f32 %v2882_v18, %v2806_v12 }
 0x295   :  { %v2899_v60 = vmul.f32 %v2891_v52, %v2886_v14 }
 0x297   :  { %v2912_v45 = vadd.f32 %v2904_v62, %v2899_v60 }
 0x299   :  { %vm2962_vm2 = vcmp.gt.f32.partialorder %v2912_v45, 0.0  ;;  %v2970_v28 = vmul.f32 2.0, %v2912_v45 }
 0x29a   :  { %vm2966_vm3 = vmand %vm2958_vm1, %vm2962_vm2 }
 0x29b   :  { %v2974_v33 = vsel %vm2966_vm3, %v2970_v28, 0.0 }
 0x29c   :  { %v2988_v9 = vmul.f32 %v2980_v11, %v2974_v33 }
 0x29e   :  { %v2991_v13 = vadd.f32 %v2990_v6, %v2988_v9 }
 0x2a0   :  { %2992 = vadd.xlane.f32.xlu0 %v2991_v13 }
 0x313   :  { %v2993_v42 = vpop.xlane.xlu0 %2992 }
 0x314   :  { %v2998_v8 = vadd.f32 %v4524_v32, %v2993_v42 }
 0x316   :  { %v4236_v46 = vmul.f32 -1.442695, %v2998_v8 }
 0x318   :  { %4551 = vpow2.f32 %v4236_v46 }
 0x31e   :  { %v4552_v47 = vpop.eup %4551 }
 0x31f   :  { %v3002_v27 = vadd.f32 1.0, %v4552_v47 }
 0x321   :  { %4553 = vrcp.f32 %v3002_v27  ;;  %v3014_v15 = vand.u32 2147483648, %v3002_v27  ;;  %v3012_v40 = vand.u32 2147483647, %v3002_v27  ;;  %vm3008_vm5 = vweird.f32 %v3002_v27 }
 0x323   :  { %v3015_v37 = vor.u32 1.1754944e-38, %v3014_v15  ;;  %vm3013_vm8 = vcmp.eq.f32.partialorder %v3012_v40, 8.507059e+37 }
 0x327   :  { %v4554_v57 = vpop.eup %4553 }
 0x328   :  { %v3004_v63 = vmul.f32 %v4554_v57, %v3002_v27  ;;  %vm3009_vm4 = vweird.f32 %v4554_v57 }
 0x329   :  { %vm3010_vm7 = vmor %vm3008_vm5, %vm3009_vm4 }
 0x32a   :  { %v3005_v39 = vsub.f32 1.0, %v3004_v63 }
 0x32c   :  { %v3006_v20 = vmul.f32 %v4554_v57, %v3005_v39 }
 0x32e   :  { %v3007_v43 = vadd.f32 %v4554_v57, %v3006_v20 }
 0x330   :  { %v3011_v50 = vsel %vm3010_vm7, %v4554_v57, %v3007_v43 }
 0x331   :  { %v3016_v44 = vsel %vm3013_vm8, %v3015_v37, %v3011_v50 }
 0x332   :  { %3020 = vperm.xlu0 %4523, %v3016_v44  }
 0x3a4   :  { %v3021_v31 = vpop.permute.xlu0 %3020 }
 0x3a5   :  { %3023 = vst [vmem:[#allocation16] sm:$0xff] %v3021_v31 }
 0x3a6   :  { %3034 = dma.vmem_to_hbm [thread:$0]  %s3030_s24, 128, %s3032_s27, [#allocation6]  }
 0x3a7   :  { %4755 = dma.done.wait [#allocation6], 128  }
 0x3a8   :  { %4756 = vsyncadd [#allocation6], 4294967168 }
 0x3a9   :  { %3039 = vsyncpa [#allocation5], 1 }
 0x3aa   :  { %3040 = vsyncpa [#allocation8], 1 }
 0x3ab   :  { %3041 = vsyncpa [#allocation11], 1 }
 0x3ac   :  { %3042 = vsyncpa [#allocation14], 1 }
 0x3ad   :  { %3043 = vsyncpa [#allocation6], 1 }

</bundles_post_ra>
